<compile_context>
chip_gen: v7x
topology: tpu7x:2x2x1
jax: 0.10.0
libtpu: 0.0.40
codegen_flags: <defaults>
</compile_context>

<pallas_src>
import functools

import jax
import jax.numpy as jnp
from jax.experimental import pallas as pl
from jax.experimental.pallas import tpu as pltpu


# ----------------------------------------------------------------------------
# Pallas kernel: S = x1^T x1, unnormalized exp, O = P @ V^T, epilogue normalize
# + residual add.  One grid step == one batch element (TQ = N).
# ----------------------------------------------------------------------------
def _pos_attn_kernel(x1_ref, vt_ref, res_ref, o_ref, *, bf16_softmax):
    c_out = o_ref.shape[-1]

    xk = x1_ref[0]                                   # (C1, N) bf16

    # S[q, k] = sum_r xk[r, q] * xk[r, k]  — contract the tiny channel dim of
    # both operands (S is symmetric, so orientation is irrelevant).  The implied
    # (C1, N) -> (N, C1) transpose of one operand is ~2 vregs of XLU work.
    s = jax.lax.dot_general(
        xk, xk,
        dimension_numbers=(((0,), (0,)), ((), ())),
        preferred_element_type=jnp.float32)          # (N, N) f32

    # Row max for numerical stability (lane reduction on the XLU).
    m = jnp.max(s, axis=-1, keepdims=True)           # (N, 1) f32

    # Unnormalized softmax numerators.  bf16 exp on v6e/v7x (bf16 VPU/EUP);
    # f32 exp then bf16 cast on v5e and older.  Either way the MXU operand is
    # bf16 and accumulation is f32.
    if bf16_softmax:
        p = jnp.exp((s - m).astype(jnp.bfloat16))    # (N, N) bf16
    else:
        p = jnp.exp(s - m).astype(jnp.bfloat16)      # (N, N) bf16

    # V^T carries an appended ones column, so column `c_out` of the matmul
    # output is exactly the softmax denominator (row-sum of p) — computed by
    # the MXU with f32 accumulation, no extra XLU reduction needed.
    vt = vt_ref[0]                                   # (N, C+1) bf16
    acc = jnp.dot(p, vt, preferred_element_type=jnp.float32)   # (N, C+1) f32

    denom = acc[:, c_out:c_out + 1]                  # (N, 1) f32, >= ~1.0
    inv = pl.reciprocal(denom, approx=True)          # EUP, ~free

    # Epilogue: normalize only the (N, C) output rows, add the residual.
    o_ref[0] = (acc[:, :c_out] * inv + res_ref[0]).astype(o_ref.dtype)


def _bf16_softmax_ok():
    """bf16 VPU/EUP exists on v6e/v7x; keep softmax math f32 on v5e and older."""
    try:
        kind = jax.devices()[0].device_kind.lower()
    except Exception:
        return False
    return not any(tag in kind for tag in ("v2", "v3", "v4", "v5"))


def _attention_pallas(x1, vt_aug, res):
    """x1: (B, C1, N) bf16 projected queries/keys; vt_aug: (B, N, C+1) bf16
    gamma-scaled values (transposed) with a ones column appended; res: (B, N, C)
    f32 residual.  Returns gamma*attn + res in (B, N, C) layout (f32)."""
    b, c1, n = x1.shape
    _, _, c_aug = vt_aug.shape
    _, _, c_out = res.shape

    kernel = functools.partial(_pos_attn_kernel, bf16_softmax=_bf16_softmax_ok())

    return pl.pallas_call(
        kernel,
        out_shape=jax.ShapeDtypeStruct((b, n, c_out), jnp.float32),
        grid_spec=pltpu.PrefetchScalarGridSpec(
            num_scalar_prefetch=0,
            grid=(b,),                                   # one step per batch (TQ = N)
            in_specs=[
                pl.BlockSpec((1, c1, n), lambda bi: (bi, 0, 0)),      # x1 (Q == K)
                pl.BlockSpec((1, n, c_aug), lambda bi: (bi, 0, 0)),   # V^T + ones col
                pl.BlockSpec((1, n, c_out), lambda bi: (bi, 0, 0)),   # residual
            ],
            out_specs=pl.BlockSpec((1, n, c_out), lambda bi: (bi, 0, 0)),
        ),
        compiler_params=pltpu.CompilerParams(
            dimension_semantics=("parallel",),
            # ~3 MiB actually live per step; 32 MiB fits every generation
            # (v7x: 64 MiB physical, v5e/v6e: 128 MiB).
            vmem_limit_bytes=32 * 1024 * 1024,
        ),
    )(x1, vt_aug, res)


# ----------------------------------------------------------------------------
# Module forward: tiny 1x1x1 convs (K = l = 8) stay as host XLA einsums; ONE
# fused Pallas call does both N x N matmuls, the softmax and the residual add.
# No host-side transposes on the residual / output path (direct (b,N,c) layout).
# ----------------------------------------------------------------------------
def position_attention(params, inputs):
    w1, b1, w2, b2, gamma = params          # w1: (l//2, l), w2: (l, l), gamma: (1,)
    b, l, h, w_, c = inputs.shape
    n = l * h * w_
    assert c % 2 == 0

    # conv1 over the `l` axis, produced directly in the reference's permuted
    # layout (b, c, l//2, h, w), then the row-major regroup to (b, c//2, N)
    # (this reproduces PyTorch's permute(0,4,1,2,3).view(b, c//2, N) exactly).
    y1 = jnp.einsum("ol,blhwc->bcohw", w1, inputs) + b1[None, None, :, None, None]
    x1 = y1.reshape(b, c // 2, n).astype(jnp.bfloat16)

    # conv2 with gamma folded into weights/bias (gamma*(x2@A^T) == (gamma*x2)@A^T).
    # Produced directly in (b, l, h, w, c) layout == x2^T — no permute needed.
    y2t = jnp.einsum("ol,blhwc->bohwc", gamma * w2, inputs) \
        + (gamma * b2)[None, :, None, None, None]
    vt = y2t.reshape(b, n, c).astype(jnp.bfloat16)
    # Ones column -> the MXU emits the softmax denominator as the extra column.
    vt_aug = jnp.concatenate([vt, jnp.ones((b, n, 1), jnp.bfloat16)], axis=-1)

    # Residual already in the kernel's output layout (contiguous reshape, no copy).
    res = inputs.reshape(b, n, c).astype(jnp.float32)

    out = _attention_pallas(x1, vt_aug, res)          # (b, N, c) f32
    return out.reshape(b, l, h, w_, c)                # direct reshape, no transpose


# ----------------------------------------------------------------------------
# Pure-JAX reference (float32), mirroring the PyTorch forward op-by-op
# ----------------------------------------------------------------------------
def position_attention_ref(params, inputs):
    w1, b1, w2, b2, gamma = params
    b, l, h, w_, c = inputs.shape
    n = l * h * w_
    y1 = jnp.einsum("ol,blhwc->bohwc", w1, inputs) + b1[None, :, None, None, None]
    x1 = jnp.transpose(y1, (0, 4, 1, 2, 3)).reshape(b, c // 2, n)
    a = jax.nn.softmax(jnp.einsum("bcm,bcn->bmn", x1, x1), axis=-1)
    y2 = jnp.einsum("ol,blhwc->bohwc", w2, inputs) + b2[None, :, None, None, None]
    x2 = jnp.transpose(y2, (0, 4, 1, 2, 3)).reshape(b, c, n)
    o = jnp.einsum("bcn,bmn->bcm", x2, a)                          # x2 @ A^T
    o = o.reshape(b, c, l, h, w_).transpose(0, 2, 3, 4, 1)
    return gamma * o + inputs


# ----------------------------------------------------------------------------
# Deterministic parameters (Conv3d 1x1x1 weights stored as squeezed matrices)
# ----------------------------------------------------------------------------
def init_params(key, channels):
    k1, k2, k3, k4 = jax.random.split(key, 4)
    scale = 1.0 / jnp.sqrt(jnp.float32(channels))
    w1 = scale * jax.random.normal(k1, (channels // 2, channels), jnp.float32)
    b1 = 0.1 * jax.random.normal(k2, (channels // 2,), jnp.float32)
    w2 = scale * jax.random.normal(k3, (channels, channels), jnp.float32)
    b2 = 0.1 * jax.random.normal(k4, (channels,), jnp.float32)
    gamma = jnp.ones((1,), jnp.float32)     # nn.Parameter(torch.ones(1))
    return (w1, b1, w2, b2, gamma)


if __name__ == "__main__":
    key = jax.random.PRNGKey(0)
    pkey, xkey = jax.random.split(key)

    # inputs: (b, l, h, w, c). Conv3d consumes dim 1 as channels, so l == channels.
    B, L, H, W, C = 2, 8, 8, 8, 8          # channels = L = 8, N = L*H*W = 512
    params = init_params(pkey, channels=L)
    x = jax.random.normal(xkey, (B, L, H, W, C), jnp.float32)

    fwd = jax.jit(position_attention)
    y = jax.block_until_ready(fwd(params, x))

    y_ref = position_attention_ref(params, x)
    assert y.shape == x.shape, (y.shape, x.shape)
    assert bool(jnp.all(jnp.isfinite(y)))
    max_err = float(jnp.max(jnp.abs(y - y_ref)))
    # bf16 MXU operands / bf16 exp with f32 accumulation & epilogue: ~1e-2 expected.
    assert bool(jnp.allclose(y, y_ref, atol=3e-2, rtol=3e-2)), f"max_err={max_err}"
    print("KERNEL_OK")
</pallas_src>

<mosaic_0001>
module attributes {stable_mosaic.version = 11 : i64} {
  func.func @_pos_attn_kernel(%arg0: i32, %arg1: memref<1x4x512xbf16, #tpu.memory_space<vmem>>, %arg2: memref<1x512x9xbf16, #tpu.memory_space<vmem>>, %arg3: memref<1x512x8xf32, #tpu.memory_space<vmem>>, %arg4: memref<1x512x8xf32, #tpu.memory_space<vmem>>) attributes {dimension_semantics = [#tpu.dimension_semantics<parallel>], iteration_bounds = array<i64: 2>, scalar_prefetch = 0 : i64, scratch_operands = 0 : i64, tpu.core_type = #tpu.core_type<tc>, window_params = [{transform_indices = @transform_0, window_bounds = array<i64: 1, 4, 512>}, {transform_indices = @transform_1, window_bounds = array<i64: 1, 512, 9>}, {transform_indices = @transform_2, window_bounds = array<i64: 1, 512, 8>}, {transform_indices = @transform_3, window_bounds = array<i64: 1, 512, 8>}]} {
    %c0 = arith.constant 0 : index
    %c0_0 = arith.constant 0 : index
    %c0_1 = arith.constant 0 : index
    %0 = vector.load %arg1[%c0, %c0_0, %c0_1] : memref<1x4x512xbf16, #tpu.memory_space<vmem>>, vector<1x4x512xbf16>
    %1 = vector.shape_cast %0 : vector<1x4x512xbf16> to vector<4x512xbf16>
    %cst = arith.constant dense<0.000000e+00> : vector<512x512xf32>
    %2 = tpu.matmul %1, %1, %cst {dimension_numbers = #tpu.dot_dimension_numbers<[0], [0], [1], [1], [0, 1, 1, 1], [], []>} : vector<4x512xbf16>, vector<4x512xbf16>, vector<512x512xf32> -> vector<512x512xf32>
    %cst_2 = arith.constant dense<0xFF800000> : vector<512xf32>
    %3 = vector.multi_reduction <maximumf>, %2, %cst_2 [1] : vector<512x512xf32> to vector<512xf32>
    %4 = vector.shape_cast %3 : vector<512xf32> to vector<512x1xf32>
    %5 = vector.broadcast %4 : vector<512x1xf32> to vector<512x512xf32>
    %6 = arith.subf %2, %5 : vector<512x512xf32>
    %7 = arith.truncf %6 : vector<512x512xf32> to vector<512x512xbf16>
    %8 = math.exp %7 : vector<512x512xbf16>
    %c0_3 = arith.constant 0 : index
    %c0_4 = arith.constant 0 : index
    %c0_5 = arith.constant 0 : index
    %9 = vector.load %arg2[%c0_3, %c0_4, %c0_5] : memref<1x512x9xbf16, #tpu.memory_space<vmem>>, vector<1x512x9xbf16>
    %10 = vector.shape_cast %9 : vector<1x512x9xbf16> to vector<512x9xbf16>
    %cst_6 = arith.constant dense<0.000000e+00> : vector<512x9xf32>
    %11 = tpu.matmul %8, %10, %cst_6 {dimension_numbers = #tpu.dot_dimension_numbers<[1], [0], [0], [1], [0, 0, 1, 1], [], []>} : vector<512x512xbf16>, vector<512x9xbf16>, vector<512x9xf32> -> vector<512x9xf32>
    %12 = vector.extract_strided_slice %11 {offsets = [0, 8], sizes = [512, 1], strides = [1, 1]} : vector<512x9xf32> to vector<512x1xf32>
    %13 = tpu.reciprocal %12 {approx = true} : vector<512x1xf32> -> vector<512x1xf32>
    %14 = vector.extract_strided_slice %11 {offsets = [0, 0], sizes = [512, 8], strides = [1, 1]} : vector<512x9xf32> to vector<512x8xf32>
    %15 = vector.broadcast %13 : vector<512x1xf32> to vector<512x8xf32>
    %16 = arith.mulf %14, %15 : vector<512x8xf32>
    %c0_7 = arith.constant 0 : index
    %c0_8 = arith.constant 0 : index
    %c0_9 = arith.constant 0 : index
    %17 = vector.load %arg3[%c0_7, %c0_8, %c0_9] : memref<1x512x8xf32, #tpu.memory_space<vmem>>, vector<1x512x8xf32>
    %18 = vector.shape_cast %17 : vector<1x512x8xf32> to vector<512x8xf32>
    %19 = arith.addf %16, %18 : vector<512x8xf32>
    %c0_10 = arith.constant 0 : index
    %c0_11 = arith.constant 0 : index
    %c0_12 = arith.constant 0 : index
    %20 = vector.load %arg4[%c0_10, %c0_11, %c0_12] : memref<1x512x8xf32, #tpu.memory_space<vmem>>, vector<1x512x8xf32>
    %21 = vector.shape_cast %20 : vector<1x512x8xf32> to vector<512x8xf32>
    %22 = vector.shape_cast %19 : vector<512x8xf32> to vector<1x512x8xf32>
    tpu.vector_store %arg4[%c0_10, %c0_11, %c0_12], %22 {strides = array<i32>} : memref<1x512x8xf32, #tpu.memory_space<vmem>>, vector<1x512x8xf32>,
    return
  }
  func.func @transform_0(%arg0: i32) -> (i32, i32, i32) {
    %c0_i32 = arith.constant 0 : i32
    %c0_i32_0 = arith.constant 0 : i32
    %c0_i32_1 = arith.constant 0 : i32
    return %arg0, %c0_i32, %c0_i32_0 : i32, i32, i32
  }
  func.func @transform_1(%arg0: i32) -> (i32, i32, i32) {
    %c0_i32 = arith.constant 0 : i32
    %c0_i32_0 = arith.constant 0 : i32
    %c0_i32_1 = arith.constant 0 : i32
    return %arg0, %c0_i32, %c0_i32_0 : i32, i32, i32
  }
  func.func @transform_2(%arg0: i32) -> (i32, i32, i32) {
    %c0_i32 = arith.constant 0 : i32
    %c0_i32_0 = arith.constant 0 : i32
    %c0_i32_1 = arith.constant 0 : i32
    return %arg0, %c0_i32, %c0_i32_0 : i32, i32, i32
  }
  func.func @transform_3(%arg0: i32) -> (i32, i32, i32) {
    %c0_i32 = arith.constant 0 : i32
    %c0_i32_0 = arith.constant 0 : i32
    %c0_i32_1 = arith.constant 0 : i32
    return %arg0, %c0_i32, %c0_i32_0 : i32, i32, i32
  }
}

</mosaic_0001>

<bundles_post_ra>
// kernel: position_attention.1
= control target key start
LH: loop header
LB: loop body
LE: loop exit
PB: predicated region body
PF: predicated region fallthrough
CT: control target
= control target key end

     0   :  { %8 = vsyncpa [#allocation3], 0  ;;  %s6300_s0 = inlined_call_operand.vmem [shape: bf16[2,4,512], index: 0, kind: input, shape index: {}]   ;;  %s6301_s1 = inlined_call_operand.vmem [shape: bf16[2,512,9], index: 1, kind: input, shape index: {}]   ;;  %s6302_s2 = inlined_call_operand.vmem [shape: f32[2,512,8], index: 2, kind: input, shape index: {}]   ;;  %s6303_s3 = inlined_call_operand.hbm [shape: f32[2,512,8], index: 3, kind: output, shape index: {}]  }
   0x1   :  { %10 = vsyncpa [#allocation3 + $0x1], 0  ;;  %s4511_s12 = smov 0   ;;  %s4513_s13 = smov 0  }
   0x2   :  { %s4515_s14 = smov 0   ;;  %s4517_s15 = smov 0  }
   0x3 LB: > { %s4532_s16 = sadd.s32 4294967295, %s4483_s15   ;;  %s3776_s17 = sadd.s32 4294967294, %s4483_s15   ;;  %s4483_s15 = sphi %s4517_s15, %s6831_s15   ;;  %s4479_s14 = sphi %s4515_s14, %s6830_s14   ;;  %s4475_s13 = sphi %s4513_s13, %s6829_s13   ;;  %s4471_s12 = sphi %s4511_s12, %s6828_s12  }
   0x4   : > { %s4536_s18 = sadd.s32 1, %s4483_s15   ;;  %s101_s19 = sadd.s32 1, %s4479_s14 }
   0x5   : > { %s98_s20 = ssub.s32 %s4483_s15, %s4536_s18  ;;  %p111_p0 = scmp.ne.s32.totalorder %s4479_s14, %s4475_s13 }
   0x6   : > { %p99_p1 = scmp.eq.s32.totalorder %s98_s20, 0  ;;  %p112_p2 = scmp.eq.s32.totalorder %s4532_s16, 1 }
   0x7   : > { %p117_p3 = scmp.ne.s32.totalorder %s4475_s13, %s4471_s12  ;;  %p118_p4 = scmp.eq.s32.totalorder %s3776_s17, 1 }
   0x8   : > { %s4547_s21 = scalar_select %p99_p1, %s4479_s14, %s101_s19  }
   0x9   : > { %p4549_p5 = por %p112_p2, %p111_p0  ;;  %p4553_p6 = por %p118_p4, %p117_p3 }
   0xa   : > { %p3779_p7 = scmp.ge.s32.totalorder %s4483_s15, 1  ;;  %p160_p8 = scmp.lt.s32.totalorder %s4483_s15, 3 }
   0xc   : > { %p161_p9 = pnand %p3779_p7, %p160_p8 }
   0xe   : > { %164 = sbr.rel (%p161_p9) target bundleno = 1143 (0x477), region = 32 }
  0x15   : > { %p194_p10 = scmp.lt.s32.totalorder %s4532_s16, 1  ;;  %v216_v0 = vlaneseq  ;;  %v4485_v1 = vmov 1983009808   ;;  %v4486_v3 = vmov 0   ;;  %vm394_vm0 = vcmask 1041408   ;;  %s191_s7 = sand.u32 1, %s4475_s13  }
  0x16   : > { %v214_v2 = vunpack.c.l.s4 %v4485_v1  ;;  %439 = vmatprep.mubr.bf16.mxu0 %v4486_v3  ;;  %792 = vmatprep.mubr.bf16.mxu1 %v4486_v3  ;;  %vm297_vm1 = vcmask 31744   ;;  %s3780_s11 = sshll.u32 %s191_s7, 9  ;;  %vm3611_vm2 = vcmask 64512   ;;  %s3893_s19 = sshll.u32 %s4532_s16, 13 }
  0x17   : > { %s4563_s24 = scalar_select %p194_p10, %s4532_s16, 1  ;;  %v217_v4 = vshrl.u32 %v216_v0, 7 }
  0x18   : > { %v215_v5 = vunpack.c.0.s8 %v214_v2  ;;  %s5910_s17 = scalar_lea.vmem [#allocation2], %s3780_s11  ;;  %s6259_s16 = scalar_lea.sflag [#allocation3], %s191_s7 }
  0x19   : > { %s3890_s25 = sshll.u32 %s4563_s24, 3  ;;  %s3891_s26 = sshll.u32 %s4563_s24, 8 }
  0x1a   : > { %s198_s29 = scalar_lea.vmem %s6300_s0, %s3890_s25  ;;  %s4573_s5 = scalar_lea.vmem %s6301_s1, %s3891_s26  ;;  %v218_v6 = vsub.s32 %v215_v5, %v217_v4 }
  0x1b   : > { %v210_v7 = vld [vmem:[%s198_s29] sm:$0xff]  ;;  %v4007_v19 = vld [vmem:[%s4573_s5 + $0x8] sm:$0xff]   ;;  %v4009_v23 = vld [vmem:[%s4573_s5 + $0x10] sm:$0xff]   ;;  %s3892_s6 = sshll.u32 %s4563_s24, 9  ;;  %s3690_s20 = sshll.u32 %s5910_s17, 4  ;;  %s6251_s20 = int_to_ptr.vmem [resolvable:$true] %s3690_s20 }
  0x1c   : > { %v219_v8 = vrot.slane %v210_v7, %v218_v6  ;;  %v212_v9 = vcombine.high %v210_v7, %v210_v7  ;;  %v4005_v15 = vld [vmem:[%s4573_s5] sm:$0xff]   ;;  %v4008_v20 = vld [vmem:[%s4573_s5 + $0x88] sm:$0xff]   ;;  %v4010_v24 = vld [vmem:[%s4573_s5 + $0x90] sm:$0xff]   ;;  %s5898_s10 = scalar_lea.vmem %s6302_s2, %s3892_s6  ;;  %s6249_s26 = scalar_lea.hbm %s6303_s3, %s3893_s19 }
  0x1d   : > { %v4006_v16 = vld [vmem:[%s4573_s5 + $0x80] sm:$0xff]   ;;  %v4011_v27 = vld [vmem:[%s4573_s5 + $0x18] sm:$0xff]   ;;  %v4015_v35 = vld [vmem:[%s4573_s5 + $0x28] sm:$0xff]   ;;  %s4421_s27 = scalar_lea.vmem %s6251_s20, 8192  ;;  %s4488_s28 = smov [#allocation2]  }
  0x1e   : > { %233 = vxpose.xlu0.c.b16.start.end [1/1] (short) %v219_v8, 128  ;;  %v227_v10 = vcombine.high %v219_v8, %v219_v8  ;;  %v226_v11 = vrot.slane %v212_v9, %v218_v6  ;;  %v396_v12 = vsel %vm394_vm0, %v219_v8, 0  ;;  %v4012_v28 = vld [vmem:[%s4573_s5 + $0x98] sm:$0xff]   ;;  %v4013_v31 = vld [vmem:[%s4573_s5 + $0x20] sm:$0xff]   ;;  %v4016_v36 = vld [vmem:[%s4573_s5 + $0xa8] sm:$0xff]   ;;  %p4422_p11 = scmp.ne.s32.totalorder %s6251_s20, %s4421_s27  ;;  %s4425_s29 = sshll.u32 %s4488_s28, 4  ;;  %s4426_s29 = int_to_ptr.vmem [resolvable:$false] %s4425_s29 }
  0x1f   : > { %v4014_v32 = vld [vmem:[%s4573_s5 + $0xa0] sm:$0xff]   ;;  %v4017_v40 = vld [vmem:[%s4573_s5 + $0x30] sm:$0xff]   ;;  %v4019_v44 = vld [vmem:[%s4573_s5 + $0x38] sm:$0xff]   ;;  %s4427_s30 = scalar_lea.vmem %s4426_s29, 16384  ;;  %p4428_p0 = scmp.lt.s32.totalorder %s6251_s20, %s4426_s29 }
  0x20   : > { %3787 = vmatprep.subr.msk.bf16.mxu0 %vm394_vm0, %v227_v10  ;;  %v228_v13 = vcombine.high %v226_v11, %v226_v11  ;;  %v402_v14 = vsel %vm394_vm0, %v226_v11, 0  ;;  %265 = vxpose.xlu1.c.b16.start.end [1/1] (short) %v226_v11, 128  ;;  %v4018_v41 = vld [vmem:[%s4573_s5 + $0xb0] sm:$0xff]   ;;  %v4020_v45 = vld [vmem:[%s4573_s5 + $0xb8] sm:$0xff]   ;;  %v4021_v48 = vld [vmem:[%s4573_s5 + $0x40] sm:$0xff]   ;;  %p4423_p12 = pnand %p4422_p11, %p4549_p5  ;;  %p4429_p1 = scmp.lt.s32.totalorder %s4427_s30, %s4421_s27 }
  0x21   : > { %408 = vmatpush1.bf16.msra.mxu0 %v396_v12  ;;  %v4022_v49 = vld [vmem:[%s4573_s5 + $0xc0] sm:$0xff]   ;;  %v4023_v52 = vld [vmem:[%s4573_s5 + $0x48] sm:$0xff]   ;;  %v4025_v56 = vld [vmem:[%s4573_s5 + $0x50] sm:$0xff]  }
  0x22   : > { %3820 = vmatprep.subr.msk.bf16.mxu1 %vm394_vm0, %v228_v13  ;;  %2746 = vmatprep.subr.bf16.mxu0 %v4486_v3  ;;  %v4024_v53 = vld [vmem:[%s4573_s5 + $0xc8] sm:$0xff]   ;;  %v4026_v57 = vld [vmem:[%s4573_s5 + $0xd0] sm:$0xff]   ;;  %v4027_v60 = vld [vmem:[%s4573_s5 + $0x58] sm:$0xff]   ;;  %p4424_p13 = pneg %p4423_p12  ;;  %p4430_p2 = por %p4429_p1, %p4428_p0 }
  0x23   : > { %761 = vmatpush1.bf16.msra.mxu1 %v402_v14  ;;  %v4028_v61 = vld [vmem:[%s4573_s5 + $0xd8] sm:$0xff]   ;;  %v4029_v0 = vld [vmem:[%s4573_s5 + $0x60] sm:$0xff]   ;;  %v4031_v5 = vld [vmem:[%s4573_s5 + $0x68] sm:$0xff]  }
  0x24   : > { %2457 = vmatprep.subr.bf16.mxu1 %v4486_v3  ;;  %v4030_v1 = vld [vmem:[%s4573_s5 + $0xe0] sm:$0xff]   ;;  %v4032_v6 = vld [vmem:[%s4573_s5 + $0xe8] sm:$0xff]   ;;  %p4431_p3 = pnand %p4430_p2, %p4424_p13 }
  0x3b   : > { %249 = vxpose.xlu0.c.b16.start.end [1/1] (short) %v227_v10, 128 }
  0x3d   : > { %281 = vxpose.xlu1.c.b16.start.end [1/1] (short) %v228_v13, 128 }
  0x84   : > { %v241_v17 = vpop.trf.xlu0 }
  0x85   : > { %3788 = vmatmul.mubr.msk.bf16.vlgmr.msra.gmra.mrb[0].mxu0 %vm297_vm1, %v241_v17  ;;  %3821 = vmatmul.mubr.msk.bf16.vlgmr.msra.gmra.mrb[0].mxu1 %vm297_vm1, %v241_v17 }
  0x86   : > { %449 = vmatprep.mubr.bf16.mxu0 %v4486_v3  ;;  %802 = vmatprep.mubr.bf16.mxu1 %v4486_v3  ;;  %v273_v47 = vpop.trf.xlu1 }
  0x87   : > { %2458 = vmatpush1.bf16.msra.mxu1 %v4005_v15  ;;  %2747 = vmatpush1.bf16.msra.mxu0 %v4006_v16 }
  0x88   : > { %2459 = vmatprep.subr.bf16.mxu1 %v4486_v3  ;;  %2748 = vmatprep.subr.bf16.mxu0 %v4486_v3  ;;  %v242_v18 = vpop.trf.xlu0 }
  0x8a   : > { %v274_v50 = vpop.trf.xlu1 }
  0x8b   : > { %2460 = vmatpush1.bf16.msra.mxu1 %v4007_v19  ;;  %2749 = vmatpush1.bf16.msra.mxu0 %v4008_v20 }
  0x8c   : > { %2461 = vmatprep.subr.bf16.mxu1 %v4486_v3  ;;  %2750 = vmatprep.subr.bf16.mxu0 %v4486_v3  ;;  %v243_v21 = vpop.trf.xlu0 }
  0x8d   : > { %3789 = vmatmul.mubr.msk.bf16.gmra.mrb[4].mxu0 %vm297_vm1, %v242_v18  ;;  %3822 = vmatmul.mubr.msk.bf16.gmra.mrb[4].mxu1 %vm297_vm1, %v242_v18 }
  0x8e   : > { %459 = vmatprep.mubr.bf16.mxu0 %v4486_v3  ;;  %812 = vmatprep.mubr.bf16.mxu1 %v4486_v3  ;;  %v275_v51 = vpop.trf.xlu1 }
  0x8f   : > { %2462 = vmatpush1.bf16.msra.mxu1 %v4009_v23  ;;  %2751 = vmatpush1.bf16.msra.mxu0 %v4010_v24 }
  0x90   : > { %v244_v22 = vpop.trf.xlu0  ;;  %2463 = vmatprep.subr.bf16.mxu1 %v4486_v3  ;;  %2752 = vmatprep.subr.bf16.mxu0 %v4486_v3 }
  0x92   : > { %v276_v54 = vpop.trf.xlu1 }
  0x93   : > { %2464 = vmatpush1.bf16.msra.mxu1 %v4011_v27  ;;  %2753 = vmatpush1.bf16.msra.mxu0 %v4012_v28 }
  0x94   : > { %v245_v25 = vpop.trf.xlu0  ;;  %2465 = vmatprep.subr.bf16.mxu1 %v4486_v3  ;;  %2754 = vmatprep.subr.bf16.mxu0 %v4486_v3 }
  0x95   : > { %3790 = vmatmul.mubr.msk.bf16.gmra.mrb[8].mxu0 %vm297_vm1, %v243_v21  ;;  %3823 = vmatmul.mubr.msk.bf16.gmra.mrb[8].mxu1 %vm297_vm1, %v243_v21 }
  0x96   : > { %469 = vmatprep.mubr.bf16.mxu0 %v4486_v3  ;;  %822 = vmatprep.mubr.bf16.mxu1 %v4486_v3  ;;  %v277_v55 = vpop.trf.xlu1 }
  0x97   : > { %2466 = vmatpush1.bf16.msra.mxu1 %v4013_v31  ;;  %2755 = vmatpush1.bf16.msra.mxu0 %v4014_v32 }
  0x98   : > { %v246_v26 = vpop.trf.xlu0  ;;  %2467 = vmatprep.subr.bf16.mxu1 %v4486_v3  ;;  %2756 = vmatprep.subr.bf16.mxu0 %v4486_v3 }
  0x9a   : > { %v278_v58 = vpop.trf.xlu1 }
  0x9b   : > { %2468 = vmatpush1.bf16.msra.mxu1 %v4015_v35  ;;  %2757 = vmatpush1.bf16.msra.mxu0 %v4016_v36  ;;  %v4034_v35 = vld [vmem:[%s4573_s5 + $0xf0] sm:$0xff]  }
  0x9c   : > { %v247_v29 = vpop.trf.xlu0  ;;  %2469 = vmatprep.subr.bf16.mxu1 %v4486_v3  ;;  %2758 = vmatprep.subr.bf16.mxu0 %v4486_v3 }
  0x9d   : > { %3791 = vmatmul.mubr.msk.bf16.gmra.mrb[12].mxu0 %vm297_vm1, %v244_v22  ;;  %3824 = vmatmul.mubr.msk.bf16.gmra.mrb[12].mxu1 %vm297_vm1, %v244_v22 }
  0x9e   : > { %479 = vmatprep.mubr.bf16.mxu0 %v4486_v3  ;;  %832 = vmatprep.mubr.bf16.mxu1 %v4486_v3  ;;  %v279_v59 = vpop.trf.xlu1 }
  0x9f   : > { %2470 = vmatpush1.bf16.msra.mxu1 %v4017_v40  ;;  %2759 = vmatpush1.bf16.msra.mxu0 %v4018_v41 }
  0xa0   : > { %v248_v30 = vpop.trf.xlu0  ;;  %2471 = vmatprep.subr.bf16.mxu1 %v4486_v3  ;;  %2760 = vmatprep.subr.bf16.mxu0 %v4486_v3 }
  0xa2   : > { %v280_v62 = vpop.trf.xlu1 }
  0xa3   : > { %2472 = vmatpush1.bf16.msra.mxu1 %v4019_v44  ;;  %2761 = vmatpush1.bf16.msra.mxu0 %v4020_v45 }
  0xa4   : > { %v257_v33 = vpop.trf.xlu0  ;;  %2473 = vmatprep.subr.bf16.mxu1 %v4486_v3  ;;  %2762 = vmatprep.subr.bf16.mxu0 %v4486_v3 }
  0xa5   : > { %3792 = vmatmul.mubr.msk.bf16.gmra.mrb[16].mxu0 %vm297_vm1, %v245_v25  ;;  %3825 = vmatmul.mubr.msk.bf16.gmra.mrb[16].mxu1 %vm297_vm1, %v245_v25 }
  0xa6   : > { %489 = vmatprep.mubr.bf16.mxu0 %v4486_v3  ;;  %842 = vmatprep.mubr.bf16.mxu1 %v4486_v3  ;;  %v289_v63 = vpop.trf.xlu1 }
  0xa7   : > { %2474 = vmatpush1.bf16.msra.mxu1 %v4021_v48  ;;  %2763 = vmatpush1.bf16.msra.mxu0 %v4022_v49 }
  0xa8   : > { %v258_v34 = vpop.trf.xlu0  ;;  %2475 = vmatprep.subr.bf16.mxu1 %v4486_v3  ;;  %2764 = vmatprep.subr.bf16.mxu0 %v4486_v3 }
  0xaa   : > { %v290_v2 = vpop.trf.xlu1 }
  0xab   : > { %2476 = vmatpush1.bf16.msra.mxu1 %v4023_v52  ;;  %2765 = vmatpush1.bf16.msra.mxu0 %v4024_v53 }
  0xac   : > { %v259_v37 = vpop.trf.xlu0  ;;  %2477 = vmatprep.subr.bf16.mxu1 %v4486_v3  ;;  %2766 = vmatprep.subr.bf16.mxu0 %v4486_v3 }
  0xad   : > { %3793 = vmatmul.mubr.msk.bf16.gmra.mrb[20].mxu0 %vm297_vm1, %v246_v26  ;;  %3826 = vmatmul.mubr.msk.bf16.gmra.mrb[20].mxu1 %vm297_vm1, %v246_v26 }
  0xae   : > { %499 = vmatprep.mubr.bf16.mxu0 %v4486_v3  ;;  %852 = vmatprep.mubr.bf16.mxu1 %v4486_v3  ;;  %v291_v4 = vpop.trf.xlu1 }
  0xaf   : > { %2478 = vmatpush1.bf16.msra.mxu1 %v4025_v56  ;;  %2767 = vmatpush1.bf16.msra.mxu0 %v4026_v57 }
  0xb0   : > { %v260_v38 = vpop.trf.xlu0  ;;  %2479 = vmatprep.subr.bf16.mxu1 %v4486_v3  ;;  %2768 = vmatprep.subr.bf16.mxu0 %v4486_v3 }
  0xb2   : > { %v292_v7 = vpop.trf.xlu1 }
  0xb3   : > { %2480 = vmatpush1.bf16.msra.mxu1 %v4027_v60  ;;  %2769 = vmatpush1.bf16.msra.mxu0 %v4028_v61 }
  0xb4   : > { %v261_v39 = vpop.trf.xlu0  ;;  %2481 = vmatprep.subr.bf16.mxu1 %v4486_v3  ;;  %2770 = vmatprep.subr.bf16.mxu0 %v4486_v3 }
  0xb5   : > { %3794 = vmatmul.mubr.msk.bf16.gmra.mrb[24].mxu0 %vm297_vm1, %v247_v29  ;;  %3827 = vmatmul.mubr.msk.bf16.gmra.mrb[24].mxu1 %vm297_vm1, %v247_v29 }
  0xb6   : > { %509 = vmatprep.mubr.bf16.mxu0 %v4486_v3  ;;  %862 = vmatprep.mubr.bf16.mxu1 %v4486_v3  ;;  %v293_v21 = vpop.trf.xlu1 }
  0xb7   : > { %2482 = vmatpush1.bf16.msra.mxu1 %v4029_v0  ;;  %2771 = vmatpush1.bf16.msra.mxu0 %v4030_v1 }
  0xb8   : > { %v262_v42 = vpop.trf.xlu0  ;;  %2483 = vmatprep.subr.bf16.mxu1 %v4486_v3  ;;  %2772 = vmatprep.subr.bf16.mxu0 %v4486_v3 }
  0xbb   : > { %2484 = vmatpush1.bf16.msra.mxu1 %v4031_v5  ;;  %2773 = vmatpush1.bf16.msra.mxu0 %v4032_v6 }
  0xbc   : > { %v263_v43 = vpop.trf.xlu0  ;;  %2485 = vmatprep.subr.bf16.mxu1 %v4486_v3  ;;  %2774 = vmatprep.subr.bf16.mxu0 %v4486_v3 }
  0xbd   : > { %3795 = vmatmul.mubr.msk.bf16.gmra.mrb[28].mxu0 %vm297_vm1, %v248_v30  ;;  %3828 = vmatmul.mubr.msk.bf16.gmra.mrb[28].mxu1 %vm297_vm1, %v248_v30 }
  0xbe   : > { %519 = vmatprep.mubr.bf16.mxu0 %v4486_v3  ;;  %872 = vmatprep.mubr.bf16.mxu1 %v4486_v3 }
  0xbf   : > { %2775 = vmatpush1.bf16.msra.mxu0 %v4034_v35 }
  0xc0   : > { %v264_v46 = vpop.trf.xlu0  ;;  %2776 = vmatprep.subr.bf16.mxu0 %v4486_v3 }
  0xc5   : > { %3796 = vmatmul.mubr.msk.bf16.gmra.mrb[32].mxu0 %vm297_vm1, %v257_v33  ;;  %3829 = vmatmul.mubr.msk.bf16.gmra.mrb[32].mxu1 %vm297_vm1, %v257_v33 }
  0xc6   : > { %529 = vmatprep.mubr.bf16.mxu0 %v4486_v3  ;;  %882 = vmatprep.mubr.bf16.mxu1 %v4486_v3 }
  0xcd   : > { %3797 = vmatmul.mubr.msk.bf16.gmra.mrb[36].mxu0 %vm297_vm1, %v258_v34  ;;  %3830 = vmatmul.mubr.msk.bf16.gmra.mrb[36].mxu1 %vm297_vm1, %v258_v34  ;;  %v4033_v34 = vld [vmem:[%s4573_s5 + $0x70] sm:$0xff]  }
  0xce   : > { %539 = vmatprep.mubr.bf16.mxu0 %v4486_v3  ;;  %892 = vmatprep.mubr.bf16.mxu1 %v4486_v3 }
  0xcf   : > { %2486 = vmatpush1.bf16.msra.mxu1 %v4033_v34 }
  0xd0   : > { %2487 = vmatprep.subr.bf16.mxu1 %v4486_v3 }
  0xd5   : > { %3798 = vmatmul.mubr.msk.bf16.gmra.mrb[40].mxu0 %vm297_vm1, %v259_v37  ;;  %3831 = vmatmul.mubr.msk.bf16.gmra.mrb[40].mxu1 %vm297_vm1, %v259_v37 }
  0xd6   : > { %549 = vmatprep.mubr.bf16.mxu0 %v4486_v3  ;;  %902 = vmatprep.mubr.bf16.mxu1 %v4486_v3 }
  0xdd   : > { %3799 = vmatmul.mubr.msk.bf16.gmra.mrb[44].mxu0 %vm297_vm1, %v260_v38  ;;  %3832 = vmatmul.mubr.msk.bf16.gmra.mrb[44].mxu1 %vm297_vm1, %v260_v38  ;;  %v294_v38 = vpop.trf.xlu1 }
  0xde   : > { %559 = vmatprep.mubr.bf16.mxu0 %v4486_v3  ;;  %912 = vmatprep.mubr.bf16.mxu1 %v4486_v3 }
  0xe1   : > { %v295_v53 = vpop.trf.xlu1 }
  0xe5   : > { %3800 = vmatmul.mubr.msk.bf16.gmra.mrb[48].mxu0 %vm297_vm1, %v261_v39  ;;  %3833 = vmatmul.mubr.msk.bf16.gmra.mrb[48].mxu1 %vm297_vm1, %v261_v39  ;;  %v296_v5 = vpop.trf.xlu1 }
  0xe6   : > { %569 = vmatprep.mubr.bf16.mxu0 %v4486_v3  ;;  %922 = vmatprep.mubr.bf16.mxu1 %v4486_v3 }
  0xed   : > { %3801 = vmatmul.mubr.msk.bf16.gmra.mrb[52].mxu0 %vm297_vm1, %v262_v42  ;;  %3834 = vmatmul.mubr.msk.bf16.gmra.mrb[52].mxu1 %vm297_vm1, %v262_v42 }
  0xee   : > { %579 = vmatprep.mubr.bf16.mxu0 %v4486_v3  ;;  %932 = vmatprep.mubr.bf16.mxu1 %v4486_v3 }
  0xf5   : > { %3802 = vmatmul.mubr.msk.bf16.gmra.mrb[56].mxu0 %vm297_vm1, %v263_v43  ;;  %3835 = vmatmul.mubr.msk.bf16.gmra.mrb[56].mxu1 %vm297_vm1, %v263_v43 }
  0xf6   : > { %589 = vmatprep.mubr.bf16.mxu0 %v4486_v3  ;;  %942 = vmatprep.mubr.bf16.mxu1 %v4486_v3 }
  0xfd   : > { %3803 = vmatmul.mubr.msk.bf16.gmra.mrb[60].mxu0 %vm297_vm1, %v264_v46  ;;  %3836 = vmatmul.mubr.msk.bf16.gmra.mrb[60].mxu1 %vm297_vm1, %v264_v46 }
  0xfe   : > { %599 = vmatprep.mubr.bf16.mxu0 %v4486_v3  ;;  %952 = vmatprep.mubr.bf16.mxu1 %v4486_v3 }
 0x105   : > { %3804 = vmatmul.mubr.msk.bf16.gmra.mrb[64].mxu0 %vm297_vm1, %v273_v47  ;;  %3837 = vmatmul.mubr.msk.bf16.gmra.mrb[64].mxu1 %vm297_vm1, %v273_v47 }
 0x106   : > { %609 = vmatprep.mubr.bf16.mxu0 %v4486_v3  ;;  %962 = vmatprep.mubr.bf16.mxu1 %v4486_v3 }
 0x10d   : > { %3805 = vmatmul.mubr.msk.bf16.gmra.mrb[68].mxu0 %vm297_vm1, %v274_v50  ;;  %3838 = vmatmul.mubr.msk.bf16.gmra.mrb[68].mxu1 %vm297_vm1, %v274_v50 }
 0x10e   : > { %619 = vmatprep.mubr.bf16.mxu0 %v4486_v3  ;;  %972 = vmatprep.mubr.bf16.mxu1 %v4486_v3 }
 0x115   : > { %3806 = vmatmul.mubr.msk.bf16.gmra.mrb[72].mxu0 %vm297_vm1, %v275_v51  ;;  %3839 = vmatmul.mubr.msk.bf16.gmra.mrb[72].mxu1 %vm297_vm1, %v275_v51 }
 0x116   : > { %629 = vmatprep.mubr.bf16.mxu0 %v4486_v3  ;;  %982 = vmatprep.mubr.bf16.mxu1 %v4486_v3 }
 0x11d   : > { %3807 = vmatmul.mubr.msk.bf16.gmra.mrb[76].mxu0 %vm297_vm1, %v276_v54  ;;  %3840 = vmatmul.mubr.msk.bf16.gmra.mrb[76].mxu1 %vm297_vm1, %v276_v54 }
 0x11e   : > { %639 = vmatprep.mubr.bf16.mxu0 %v4486_v3  ;;  %992 = vmatprep.mubr.bf16.mxu1 %v4486_v3 }
 0x125   : > { %3808 = vmatmul.mubr.msk.bf16.gmra.mrb[80].mxu0 %vm297_vm1, %v277_v55  ;;  %3841 = vmatmul.mubr.msk.bf16.gmra.mrb[80].mxu1 %vm297_vm1, %v277_v55 }
 0x126   : > { %649 = vmatprep.mubr.bf16.mxu0 %v4486_v3  ;;  %1002 = vmatprep.mubr.bf16.mxu1 %v4486_v3 }
 0x12d   : > { %3809 = vmatmul.mubr.msk.bf16.gmra.mrb[84].mxu0 %vm297_vm1, %v278_v58  ;;  %3842 = vmatmul.mubr.msk.bf16.gmra.mrb[84].mxu1 %vm297_vm1, %v278_v58 }
 0x12e   : > { %659 = vmatprep.mubr.bf16.mxu0 %v4486_v3  ;;  %1012 = vmatprep.mubr.bf16.mxu1 %v4486_v3 }
 0x135   : > { %3810 = vmatmul.mubr.msk.bf16.gmra.mrb[88].mxu0 %vm297_vm1, %v279_v59  ;;  %3843 = vmatmul.mubr.msk.bf16.gmra.mrb[88].mxu1 %vm297_vm1, %v279_v59 }
 0x136   : > { %669 = vmatprep.mubr.bf16.mxu0 %v4486_v3  ;;  %1022 = vmatprep.mubr.bf16.mxu1 %v4486_v3 }
 0x13d   : > { %3811 = vmatmul.mubr.msk.bf16.gmra.mrb[92].mxu0 %vm297_vm1, %v280_v62  ;;  %3844 = vmatmul.mubr.msk.bf16.gmra.mrb[92].mxu1 %vm297_vm1, %v280_v62 }
 0x13e   : > { %679 = vmatprep.mubr.bf16.mxu0 %v4486_v3  ;;  %1032 = vmatprep.mubr.bf16.mxu1 %v4486_v3 }
 0x145   : > { %3812 = vmatmul.mubr.msk.bf16.gmra.mrb[96].mxu0 %vm297_vm1, %v289_v63  ;;  %3845 = vmatmul.mubr.msk.bf16.gmra.mrb[96].mxu1 %vm297_vm1, %v289_v63 }
 0x146   : > { %689 = vmatprep.mubr.bf16.mxu0 %v4486_v3  ;;  %1042 = vmatprep.mubr.bf16.mxu1 %v4486_v3 }
 0x14d   : > { %3813 = vmatmul.mubr.msk.bf16.gmra.mrb[100].mxu0 %vm297_vm1, %v290_v2  ;;  %3846 = vmatmul.mubr.msk.bf16.gmra.mrb[100].mxu1 %vm297_vm1, %v290_v2 }
 0x14e   : > { %699 = vmatprep.mubr.bf16.mxu0 %v4486_v3  ;;  %1052 = vmatprep.mubr.bf16.mxu1 %v4486_v3 }
 0x155   : > { %3814 = vmatmul.mubr.msk.bf16.gmra.mrb[104].mxu0 %vm297_vm1, %v291_v4  ;;  %3847 = vmatmul.mubr.msk.bf16.gmra.mrb[104].mxu1 %vm297_vm1, %v291_v4 }
 0x156   : > { %709 = vmatprep.mubr.bf16.mxu0 %v4486_v3  ;;  %1062 = vmatprep.mubr.bf16.mxu1 %v4486_v3 }
 0x158   : > { %v4739_v8 = vpop.f32.mrb[0].mxu0  ;;  %v4741_v9 = vpop.f32.mrb[0].mxu1 }
 0x159   : > { %v4745_v10 = vpop.f32.mrb[1].mxu0  ;;  %v4747_v11 = vpop.f32.mrb[1].mxu1 }
 0x15a   : > { %v1113_v12 = vmax.f32 %v4739_v8, %v4745_v10  ;;  %v4751_v13 = vpop.f32.mrb[2].mxu0  ;;  %v4753_v14 = vpop.f32.mrb[2].mxu1 }
 0x15b   : > { %v4755_v15 = vpop.f32.mrb[3].mxu0  ;;  %v4757_v16 = vpop.f32.mrb[3].mxu1 }
 0x15c   : > { %v1118_v17 = vmax.f32 %v4751_v13, %v4755_v15  ;;  %v1114_v18 = vmax.f32 %v1113_v12, %v4741_v9 }
 0x15d   : > { %3815 = vmatmul.mubr.msk.bf16.gmra.mrb[108].mxu0 %vm297_vm1, %v292_v7  ;;  %3848 = vmatmul.mubr.msk.bf16.gmra.mrb[108].mxu1 %vm297_vm1, %v292_v7 }
 0x15e   : > { %v1115_v19 = vmax.f32 %v1114_v18, %v4747_v11  ;;  %v1119_v20 = vmax.f32 %v1118_v17, %v4753_v14  ;;  %719 = vmatprep.mubr.bf16.mxu0 %v4486_v3  ;;  %1072 = vmatprep.mubr.bf16.mxu1 %v4486_v3 }
 0x160   : > { %v4768_v22 = vpop.f32.mrb[4].mxu0  ;;  %1116 = vmax.xlane.f32.xlu0 %v1115_v19  ;;  %v4770_v23 = vpop.f32.mrb[4].mxu1  ;;  %v1120_v24 = vmax.f32 %v1119_v20, %v4757_v16  ;;  %v4035_v19 = vld [vmem:[%s4573_s5 + $0x78] sm:$0xff]  }
 0x161   : > { %v4773_v25 = vpop.f32.mrb[5].mxu0  ;;  %v4775_v26 = vpop.f32.mrb[5].mxu1  ;;  %v4036_v20 = vld [vmem:[%s4573_s5 + $0xf8] sm:$0xff]   ;;  %2488 = vmatpush1.bf16.msra.mxu1 %v4035_v19 }
 0x162   : > { %v1123_v27 = vmax.f32 %v4768_v22, %v4773_v25  ;;  %v4779_v28 = vpop.f32.mrb[6].mxu0  ;;  %1121 = vmax.xlane.f32.xlu1 %v1120_v24  ;;  %v4781_v29 = vpop.f32.mrb[6].mxu1  ;;  %2777 = vmatpush1.bf16.msra.mxu0 %v4036_v20 }
 0x163   : > { %v4783_v30 = vpop.f32.mrb[7].mxu0  ;;  %v4785_v31 = vpop.f32.mrb[7].mxu1 }
 0x164   : > { %v1128_v32 = vmax.f32 %v4779_v28, %v4783_v30  ;;  %v1124_v33 = vmax.f32 %v1123_v27, %v4770_v23 }
 0x165   : > { %3816 = vmatmul.mubr.msk.bf16.gmra.mrb[112].mxu0 %vm297_vm1, %v293_v21  ;;  %3849 = vmatmul.mubr.msk.bf16.gmra.mrb[112].mxu1 %vm297_vm1, %v293_v21 }
 0x166   : > { %v1125_v36 = vmax.f32 %v1124_v33, %v4775_v26  ;;  %v1129_v37 = vmax.f32 %v1128_v32, %v4781_v29  ;;  %729 = vmatprep.mubr.bf16.mxu0 %v4486_v3  ;;  %1082 = vmatprep.mubr.bf16.mxu1 %v4486_v3 }
 0x168   : > { %v4798_v39 = vpop.f32.mrb[8].mxu0  ;;  %1126 = vmax.xlane.f32.xlu0 %v1125_v36  ;;  %v4800_v40 = vpop.f32.mrb[8].mxu1  ;;  %v1130_v41 = vmax.f32 %v1129_v37, %v4785_v31 }
 0x169   : > { %v4804_v42 = vpop.f32.mrb[9].mxu0  ;;  %v4806_v43 = vpop.f32.mrb[9].mxu1 }
 0x16a   : > { %v1133_v44 = vmax.f32 %v4798_v39, %v4804_v42  ;;  %v4811_v45 = vpop.f32.mrb[10].mxu0  ;;  %1131 = vmax.xlane.f32.xlu1 %v1130_v41  ;;  %v4813_v46 = vpop.f32.mrb[10].mxu1 }
 0x16b   : > { %v4815_v47 = vpop.f32.mrb[11].mxu0  ;;  %v4817_v48 = vpop.f32.mrb[11].mxu1 }
 0x16c   : > { %v1138_v49 = vmax.f32 %v4811_v45, %v4815_v47  ;;  %v1134_v50 = vmax.f32 %v1133_v44, %v4800_v40 }
 0x16d   : > { %3817 = vmatmul.mubr.msk.bf16.gmra.mrb[116].mxu0 %vm297_vm1, %v294_v38  ;;  %3850 = vmatmul.mubr.msk.bf16.gmra.mrb[116].mxu1 %vm297_vm1, %v294_v38 }
 0x16e   : > { %v1135_v51 = vmax.f32 %v1134_v50, %v4806_v43  ;;  %v1139_v52 = vmax.f32 %v1138_v49, %v4813_v46  ;;  %739 = vmatprep.mubr.bf16.mxu0 %v4486_v3  ;;  %1092 = vmatprep.mubr.bf16.mxu1 %v4486_v3 }
 0x170   : > { %v4828_v54 = vpop.f32.mrb[12].mxu0  ;;  %1136 = vmax.xlane.f32.xlu0 %v1135_v51  ;;  %v4830_v55 = vpop.f32.mrb[12].mxu1  ;;  %v1140_v56 = vmax.f32 %v1139_v52, %v4817_v48 }
 0x171   : > { %v4833_v57 = vpop.f32.mrb[13].mxu0  ;;  %v4835_v58 = vpop.f32.mrb[13].mxu1 }
 0x172   : > { %v1143_v59 = vmax.f32 %v4828_v54, %v4833_v57  ;;  %v4839_v60 = vpop.f32.mrb[14].mxu0  ;;  %1141 = vmax.xlane.f32.xlu1 %v1140_v56  ;;  %v4841_v61 = vpop.f32.mrb[14].mxu1 }
 0x173   : > { %v4843_v62 = vpop.f32.mrb[15].mxu0  ;;  %v4845_v63 = vpop.f32.mrb[15].mxu1 }
 0x174   : > { %v1148_v0 = vmax.f32 %v4839_v60, %v4843_v62  ;;  %v1144_v1 = vmax.f32 %v1143_v59, %v4830_v55 }
 0x175   : > { %3818 = vmatmul.mubr.msk.bf16.gmra.mrb[120].mxu0 %vm297_vm1, %v295_v53  ;;  %3851 = vmatmul.mubr.msk.bf16.gmra.mrb[120].mxu1 %vm297_vm1, %v295_v53 }
 0x176   : > { %v1145_v2 = vmax.f32 %v1144_v1, %v4835_v58  ;;  %v1149_v4 = vmax.f32 %v1148_v0, %v4841_v61  ;;  %749 = vmatprep.mubr.bf16.mxu0 %v4486_v3  ;;  %1102 = vmatprep.mubr.bf16.mxu1 %v4486_v3 }
 0x178   : > { %v4856_v6 = vpop.f32.mrb[16].mxu0  ;;  %1146 = vmax.xlane.f32.xlu0 %v1145_v2  ;;  %v4858_v7 = vpop.f32.mrb[16].mxu1  ;;  %v1150_v12 = vmax.f32 %v1149_v4, %v4845_v63 }
 0x179   : > { %v4861_v17 = vpop.f32.mrb[17].mxu0  ;;  %v4863_v18 = vpop.f32.mrb[17].mxu1 }
 0x17a   : > { %v1153_v21 = vmax.f32 %v4856_v6, %v4861_v17  ;;  %v4869_v24 = vpop.f32.mrb[18].mxu0  ;;  %1151 = vmax.xlane.f32.xlu1 %v1150_v12  ;;  %v4871_v3 = vpop.f32.mrb[18].mxu1 }
 0x17b   : > { %v4873_v27 = vpop.f32.mrb[19].mxu0  ;;  %v4875_v32 = vpop.f32.mrb[19].mxu1 }
 0x17c   : > { %v1158_v33 = vmax.f32 %v4869_v24, %v4873_v27  ;;  %v1154_v34 = vmax.f32 %v1153_v21, %v4858_v7 }
 0x17d   : > { %3819 = vmatmul.mubr.msk.bf16.gmra.mrb[124].mxu0 %vm297_vm1, %v296_v5  ;;  %3852 = vmatmul.mubr.msk.bf16.gmra.mrb[124].mxu1 %vm297_vm1, %v296_v5 }
 0x17e   : > { %v1155_v35 = vmax.f32 %v1154_v34, %v4863_v18  ;;  %v1159_v36 = vmax.f32 %v1158_v33, %v4871_v3 }
 0x180   : > { %v4884_v37 = vpop.f32.mrb[20].mxu0  ;;  %1156 = vmax.xlane.f32.xlu0 %v1155_v35  ;;  %v4886_v38 = vpop.f32.mrb[20].mxu1  ;;  %v1160_v41 = vmax.f32 %v1159_v36, %v4875_v32 }
 0x181   : > { %v4889_v44 = vpop.f32.mrb[21].mxu0  ;;  %v4891_v49 = vpop.f32.mrb[21].mxu1 }
 0x182   : > { %6480 = vst [vmem:[#allocation5_spill] sm:$0xff] %v4891_v49  ;;  %v1163_v50 = vmax.f32 %v4884_v37, %v4889_v44  ;;  %v4895_v51 = vpop.f32.mrb[22].mxu0  ;;  %1161 = vmax.xlane.f32.xlu1 %v1160_v41  ;;  %v4897_v52 = vpop.f32.mrb[22].mxu1 }
 0x183   : > { %6481 = vst [vmem:[#allocation6_spill] sm:$0xff] %v4897_v52  ;;  %v4899_v53 = vpop.f32.mrb[23].mxu0  ;;  %v4901_v56 = vpop.f32.mrb[23].mxu1 }
 0x184   : > { %6482 = vst [vmem:[#allocation7_spill] sm:$0xff] %v4901_v56  ;;  %v1168_v59 = vmax.f32 %v4895_v51, %v4899_v53  ;;  %v1164_v0 = vmax.f32 %v1163_v50, %v4886_v38 }
 0x186   : > { %v1165_v1 = vmax.f32 %v1164_v0, %v4891_v49  ;;  %v1169_v2 = vmax.f32 %v1168_v59, %v4897_v52 }
 0x188   : > { %v4908_v4 = vpop.f32.mrb[24].mxu0  ;;  %1166 = vmax.xlane.f32.xlu0 %v1165_v1  ;;  %v4910_v5 = vpop.f32.mrb[24].mxu1  ;;  %v1170_v12 = vmax.f32 %v1169_v2, %v4901_v56 }
 0x189   : > { %6483 = vst [vmem:[#allocation8_spill] sm:$0xff] %v4908_v4  ;;  %6484 = vst [vmem:[#allocation9_spill] sm:$0xff] %v4910_v5  ;;  %v4913_v19 = vpop.f32.mrb[25].mxu0  ;;  %v4915_v20 = vpop.f32.mrb[25].mxu1 }
 0x18a   : > { %6485 = vst [vmem:[#allocation10_spill] sm:$0xff] %v4913_v19  ;;  %6486 = vst [vmem:[#allocation11_spill] sm:$0xff] %v4915_v20  ;;  %v1173_v21 = vmax.f32 %v4908_v4, %v4913_v19  ;;  %v4919_v33 = vpop.f32.mrb[26].mxu0  ;;  %1171 = vmax.xlane.f32.xlu1 %v1170_v12  ;;  %v4921_v34 = vpop.f32.mrb[26].mxu1 }
 0x18b   : > { %6487 = vst [vmem:[#allocation12_spill] sm:$0xff] %v4919_v33  ;;  %6488 = vst [vmem:[#allocation13_spill] sm:$0xff] %v4921_v34  ;;  %v4923_v35 = vpop.f32.mrb[27].mxu0  ;;  %v4925_v36 = vpop.f32.mrb[27].mxu1 }
 0x18c   : > { %6489 = vst [vmem:[#allocation14_spill] sm:$0xff] %v4923_v35  ;;  %6490 = vst [vmem:[#allocation15_spill] sm:$0xff] %v4925_v36  ;;  %v1178_v41 = vmax.f32 %v4919_v33, %v4923_v35  ;;  %v1174_v50 = vmax.f32 %v1173_v21, %v4910_v5 }
 0x18e   : > { %v1175_v59 = vmax.f32 %v1174_v50, %v4915_v20  ;;  %v1179_v0 = vmax.f32 %v1178_v41, %v4921_v34 }
 0x190   : > { %v4932_v1 = vpop.f32.mrb[28].mxu0  ;;  %1176 = vmax.xlane.f32.xlu0 %v1175_v59  ;;  %v4934_v2 = vpop.f32.mrb[28].mxu1  ;;  %v1180_v12 = vmax.f32 %v1179_v0, %v4925_v36 }
 0x191   : > { %6491 = vst [vmem:[#allocation16_spill] sm:$0xff] %v4932_v1  ;;  %6492 = vst [vmem:[#allocation17_spill] sm:$0xff] %v4934_v2  ;;  %v4937_v19 = vpop.f32.mrb[29].mxu0  ;;  %v4939_v4 = vpop.f32.mrb[29].mxu1 }
 0x192   : > { %6493 = vst [vmem:[#allocation18_spill] sm:$0xff] %v4937_v19  ;;  %6494 = vst [vmem:[#allocation19_spill] sm:$0xff] %v4939_v4  ;;  %v1183_v35 = vmax.f32 %v4932_v1, %v4937_v19  ;;  %v4943_v33 = vpop.f32.mrb[30].mxu0  ;;  %1181 = vmax.xlane.f32.xlu1 %v1180_v12  ;;  %v4945_v21 = vpop.f32.mrb[30].mxu1 }
 0x193   : > { %6495 = vst [vmem:[#allocation20_spill] sm:$0xff] %v4943_v33  ;;  %6496 = vst [vmem:[#allocation21_spill] sm:$0xff] %v4945_v21  ;;  %v4947_v41 = vpop.f32.mrb[31].mxu0  ;;  %v4949_v50 = vpop.f32.mrb[31].mxu1 }
 0x194   : > { %6497 = vst [vmem:[#allocation22_spill] sm:$0xff] %v4947_v41  ;;  %6498 = vst [vmem:[#allocation23_spill] sm:$0xff] %v4949_v50  ;;  %v1188_v59 = vmax.f32 %v4943_v33, %v4947_v41  ;;  %v1184_v0 = vmax.f32 %v1183_v35, %v4934_v2 }
 0x196   : > { %v1185_v36 = vmax.f32 %v1184_v0, %v4939_v4  ;;  %v1189_v20 = vmax.f32 %v1188_v59, %v4945_v21 }
 0x198   : > { %v4956_v34 = vpop.f32.mrb[32].mxu0  ;;  %1186 = vmax.xlane.f32.xlu0 %v1185_v36  ;;  %v4958_v19 = vpop.f32.mrb[32].mxu1  ;;  %v1190_v12 = vmax.f32 %v1189_v20, %v4949_v50 }
 0x199   : > { %6499 = vst [vmem:[#allocation24_spill] sm:$0xff] %v4956_v34  ;;  %6500 = vst [vmem:[#allocation25_spill] sm:$0xff] %v4958_v19  ;;  %v4961_v1 = vpop.f32.mrb[33].mxu0  ;;  %v4963_v5 = vpop.f32.mrb[33].mxu1 }
 0x19a   : > { %6501 = vst [vmem:[#allocation26_spill] sm:$0xff] %v4961_v1  ;;  %6502 = vst [vmem:[#allocation27_spill] sm:$0xff] %v4963_v5  ;;  %v1193_v41 = vmax.f32 %v4956_v34, %v4961_v1  ;;  %v4967_v33 = vpop.f32.mrb[34].mxu0  ;;  %1191 = vmax.xlane.f32.xlu1 %v1190_v12  ;;  %v4969_v35 = vpop.f32.mrb[34].mxu1 }
 0x19b   : > { %6503 = vst [vmem:[#allocation28_spill] sm:$0xff] %v4967_v33  ;;  %6504 = vst [vmem:[#allocation29_spill] sm:$0xff] %v4969_v35  ;;  %v4971_v59 = vpop.f32.mrb[35].mxu0  ;;  %v4973_v0 = vpop.f32.mrb[35].mxu1 }
 0x19c   : > { %6505 = vst [vmem:[#allocation30_spill] sm:$0xff] %v4971_v59  ;;  %6506 = vst [vmem:[#allocation31_spill] sm:$0xff] %v4973_v0  ;;  %v1198_v36 = vmax.f32 %v4967_v33, %v4971_v59  ;;  %v1194_v20 = vmax.f32 %v1193_v41, %v4958_v19 }
 0x19e   : > { %v1195_v50 = vmax.f32 %v1194_v20, %v4963_v5  ;;  %v1199_v4 = vmax.f32 %v1198_v36, %v4969_v35 }
 0x1a0   : > { %v4980_v21 = vpop.f32.mrb[36].mxu0  ;;  %1196 = vmax.xlane.f32.xlu0 %v1195_v50  ;;  %v4982_v1 = vpop.f32.mrb[36].mxu1  ;;  %v1200_v12 = vmax.f32 %v1199_v4, %v4973_v0 }
 0x1a1   : > { %6507 = vst [vmem:[#allocation32_spill] sm:$0xff] %v4980_v21  ;;  %6508 = vst [vmem:[#allocation33_spill] sm:$0xff] %v4982_v1  ;;  %v4985_v34 = vpop.f32.mrb[37].mxu0  ;;  %v4987_v2 = vpop.f32.mrb[37].mxu1 }
 0x1a2   : > { %6509 = vst [vmem:[#allocation34_spill] sm:$0xff] %v4985_v34  ;;  %6510 = vst [vmem:[#allocation35_spill] sm:$0xff] %v4987_v2  ;;  %v1203_v59 = vmax.f32 %v4980_v21, %v4985_v34  ;;  %v4991_v33 = vpop.f32.mrb[38].mxu0  ;;  %1201 = vmax.xlane.f32.xlu1 %v1200_v12  ;;  %v4993_v41 = vpop.f32.mrb[38].mxu1 }
 0x1a3   : > { %6511 = vst [vmem:[#allocation36_spill] sm:$0xff] %v4991_v33  ;;  %6512 = vst [vmem:[#allocation37_spill] sm:$0xff] %v4993_v41  ;;  %v4995_v36 = vpop.f32.mrb[39].mxu0  ;;  %v4997_v20 = vpop.f32.mrb[39].mxu1 }
 0x1a4   : > { %6513 = vst [vmem:[#allocation38_spill] sm:$0xff] %v4995_v36  ;;  %6514 = vst [vmem:[#allocation39_spill] sm:$0xff] %v4997_v20  ;;  %v1208_v50 = vmax.f32 %v4991_v33, %v4995_v36  ;;  %v1204_v4 = vmax.f32 %v1203_v59, %v4982_v1 }
 0x1a6   : > { %v1205_v0 = vmax.f32 %v1204_v4, %v4987_v2  ;;  %v1209_v5 = vmax.f32 %v1208_v50, %v4993_v41 }
 0x1a8   : > { %v5004_v35 = vpop.f32.mrb[40].mxu0  ;;  %1206 = vmax.xlane.f32.xlu0 %v1205_v0  ;;  %v5006_v34 = vpop.f32.mrb[40].mxu1  ;;  %v1210_v12 = vmax.f32 %v1209_v5, %v4997_v20 }
 0x1a9   : > { %6515 = vst [vmem:[#allocation40_spill] sm:$0xff] %v5004_v35  ;;  %6516 = vst [vmem:[#allocation41_spill] sm:$0xff] %v5006_v34  ;;  %v5009_v21 = vpop.f32.mrb[41].mxu0  ;;  %v5011_v19 = vpop.f32.mrb[41].mxu1 }
 0x1aa   : > { %6517 = vst [vmem:[#allocation42_spill] sm:$0xff] %v5009_v21  ;;  %6518 = vst [vmem:[#allocation43_spill] sm:$0xff] %v5011_v19  ;;  %v1213_v36 = vmax.f32 %v5004_v35, %v5009_v21  ;;  %v5015_v33 = vpop.f32.mrb[42].mxu0  ;;  %1211 = vmax.xlane.f32.xlu1 %v1210_v12  ;;  %v5017_v59 = vpop.f32.mrb[42].mxu1 }
 0x1ab   : > { %6519 = vst [vmem:[#allocation44_spill] sm:$0xff] %v5015_v33  ;;  %6520 = vst [vmem:[#allocation45_spill] sm:$0xff] %v5017_v59  ;;  %v5019_v50 = vpop.f32.mrb[43].mxu0  ;;  %v5021_v4 = vpop.f32.mrb[43].mxu1 }
 0x1ac   : > { %6521 = vst [vmem:[#allocation46_spill] sm:$0xff] %v5019_v50  ;;  %6522 = vst [vmem:[#allocation47_spill] sm:$0xff] %v5021_v4  ;;  %v1218_v0 = vmax.f32 %v5015_v33, %v5019_v50  ;;  %v1214_v5 = vmax.f32 %v1213_v36, %v5006_v34 }
 0x1ae   : > { %v1215_v20 = vmax.f32 %v1214_v5, %v5011_v19  ;;  %v1219_v2 = vmax.f32 %v1218_v0, %v5017_v59 }
 0x1b0   : > { %v5028_v41 = vpop.f32.mrb[44].mxu0  ;;  %1216 = vmax.xlane.f32.xlu0 %v1215_v20  ;;  %v5030_v21 = vpop.f32.mrb[44].mxu1  ;;  %v1220_v12 = vmax.f32 %v1219_v2, %v5021_v4 }
 0x1b1   : > { %6523 = vst [vmem:[#allocation48_spill] sm:$0xff] %v5028_v41  ;;  %6524 = vst [vmem:[#allocation49_spill] sm:$0xff] %v5030_v21  ;;  %v5033_v35 = vpop.f32.mrb[45].mxu0  ;;  %v5035_v1 = vpop.f32.mrb[45].mxu1 }
 0x1b2   : > { %6525 = vst [vmem:[#allocation50_spill] sm:$0xff] %v5033_v35  ;;  %6526 = vst [vmem:[#allocation51_spill] sm:$0xff] %v5035_v1  ;;  %v1223_v50 = vmax.f32 %v5028_v41, %v5033_v35  ;;  %v5039_v33 = vpop.f32.mrb[46].mxu0  ;;  %1221 = vmax.xlane.f32.xlu1 %v1220_v12  ;;  %v5041_v36 = vpop.f32.mrb[46].mxu1 }
 0x1b3   : > { %6527 = vst [vmem:[#allocation52_spill] sm:$0xff] %v5039_v33  ;;  %6528 = vst [vmem:[#allocation53_spill] sm:$0xff] %v5041_v36  ;;  %v5043_v0 = vpop.f32.mrb[47].mxu0  ;;  %v5045_v5 = vpop.f32.mrb[47].mxu1 }
 0x1b4   : > { %6529 = vst [vmem:[#allocation54_spill] sm:$0xff] %v5043_v0  ;;  %6530 = vst [vmem:[#allocation55_spill] sm:$0xff] %v5045_v5  ;;  %v1228_v20 = vmax.f32 %v5039_v33, %v5043_v0  ;;  %v1224_v2 = vmax.f32 %v1223_v50, %v5030_v21 }
 0x1b6   : > { %v1225_v4 = vmax.f32 %v1224_v2, %v5035_v1  ;;  %v1229_v19 = vmax.f32 %v1228_v20, %v5041_v36 }
 0x1b8   : > { %v5052_v59 = vpop.f32.mrb[48].mxu0  ;;  %1226 = vmax.xlane.f32.xlu0 %v1225_v4  ;;  %v5054_v35 = vpop.f32.mrb[48].mxu1  ;;  %v1230_v12 = vmax.f32 %v1229_v19, %v5045_v5 }
 0x1b9   : > { %6531 = vst [vmem:[#allocation56_spill] sm:$0xff] %v5052_v59  ;;  %6532 = vst [vmem:[#allocation57_spill] sm:$0xff] %v5054_v35  ;;  %v5057_v41 = vpop.f32.mrb[49].mxu0  ;;  %v5059_v34 = vpop.f32.mrb[49].mxu1 }
 0x1ba   : > { %6533 = vst [vmem:[#allocation58_spill] sm:$0xff] %v5057_v41  ;;  %6534 = vst [vmem:[#allocation59_spill] sm:$0xff] %v5059_v34  ;;  %v1233_v0 = vmax.f32 %v5052_v59, %v5057_v41  ;;  %v5063_v33 = vpop.f32.mrb[50].mxu0  ;;  %1231 = vmax.xlane.f32.xlu1 %v1230_v12  ;;  %v5065_v50 = vpop.f32.mrb[50].mxu1 }
 0x1bb   : > { %6535 = vst [vmem:[#allocation60_spill] sm:$0xff] %v5063_v33  ;;  %6536 = vst [vmem:[#allocation61_spill] sm:$0xff] %v5065_v50  ;;  %v5067_v20 = vpop.f32.mrb[51].mxu0  ;;  %v5069_v2 = vpop.f32.mrb[51].mxu1 }
 0x1bc   : > { %6537 = vst [vmem:[#allocation62_spill] sm:$0xff] %v5067_v20  ;;  %6538 = vst [vmem:[#allocation63_spill] sm:$0xff] %v5069_v2  ;;  %v1238_v4 = vmax.f32 %v5063_v33, %v5067_v20  ;;  %v1234_v19 = vmax.f32 %v1233_v0, %v5054_v35 }
 0x1be   : > { %v1235_v5 = vmax.f32 %v1234_v19, %v5059_v34  ;;  %v1239_v1 = vmax.f32 %v1238_v4, %v5065_v50 }
 0x1c0   : > { %v5076_v36 = vpop.f32.mrb[52].mxu0  ;;  %1236 = vmax.xlane.f32.xlu0 %v1235_v5  ;;  %v5078_v41 = vpop.f32.mrb[52].mxu1  ;;  %v1240_v12 = vmax.f32 %v1239_v1, %v5069_v2 }
 0x1c1   : > { %6539 = vst [vmem:[#allocation64_spill] sm:$0xff] %v5076_v36  ;;  %6540 = vst [vmem:[#allocation65_spill] sm:$0xff] %v5078_v41  ;;  %v5081_v59 = vpop.f32.mrb[53].mxu0  ;;  %v5083_v21 = vpop.f32.mrb[53].mxu1 }
 0x1c2   : > { %6541 = vst [vmem:[#allocation66_spill] sm:$0xff] %v5081_v59  ;;  %6542 = vst [vmem:[#allocation67_spill] sm:$0xff] %v5083_v21  ;;  %v1243_v20 = vmax.f32 %v5076_v36, %v5081_v59  ;;  %v5087_v33 = vpop.f32.mrb[54].mxu0  ;;  %1241 = vmax.xlane.f32.xlu1 %v1240_v12  ;;  %v5089_v0 = vpop.f32.mrb[54].mxu1 }
 0x1c3   : > { %6543 = vst [vmem:[#allocation68_spill] sm:$0xff] %v5087_v33  ;;  %6544 = vst [vmem:[#allocation69_spill] sm:$0xff] %v5089_v0  ;;  %v5091_v4 = vpop.f32.mrb[55].mxu0  ;;  %v5093_v19 = vpop.f32.mrb[55].mxu1 }
 0x1c4   : > { %6545 = vst [vmem:[#allocation70_spill] sm:$0xff] %v5091_v4  ;;  %6546 = vst [vmem:[#allocation71_spill] sm:$0xff] %v5093_v19  ;;  %v1248_v5 = vmax.f32 %v5087_v33, %v5091_v4  ;;  %v1244_v1 = vmax.f32 %v1243_v20, %v5078_v41 }
 0x1c6   : > { %v1245_v2 = vmax.f32 %v1244_v1, %v5083_v21  ;;  %v1249_v34 = vmax.f32 %v1248_v5, %v5089_v0 }
 0x1c8   : > { %v5100_v50 = vpop.f32.mrb[56].mxu0  ;;  %1246 = vmax.xlane.f32.xlu0 %v1245_v2  ;;  %v5102_v59 = vpop.f32.mrb[56].mxu1  ;;  %v1250_v12 = vmax.f32 %v1249_v34, %v5093_v19 }
 0x1c9   : > { %6547 = vst [vmem:[#allocation72_spill] sm:$0xff] %v5100_v50  ;;  %6548 = vst [vmem:[#allocation73_spill] sm:$0xff] %v5102_v59  ;;  %v5105_v36 = vpop.f32.mrb[57].mxu0  ;;  %v5107_v35 = vpop.f32.mrb[57].mxu1 }
 0x1ca   : > { %6549 = vst [vmem:[#allocation74_spill] sm:$0xff] %v5105_v36  ;;  %6550 = vst [vmem:[#allocation75_spill] sm:$0xff] %v5107_v35  ;;  %v1253_v4 = vmax.f32 %v5100_v50, %v5105_v36  ;;  %v5111_v33 = vpop.f32.mrb[58].mxu0  ;;  %1251 = vmax.xlane.f32.xlu1 %v1250_v12  ;;  %v5113_v20 = vpop.f32.mrb[58].mxu1 }
 0x1cb   : > { %6551 = vst [vmem:[#allocation76_spill] sm:$0xff] %v5111_v33  ;;  %6552 = vst [vmem:[#allocation77_spill] sm:$0xff] %v5113_v20  ;;  %v5115_v5 = vpop.f32.mrb[59].mxu0  ;;  %v5117_v1 = vpop.f32.mrb[59].mxu1 }
 0x1cc   : > { %6553 = vst [vmem:[#allocation78_spill] sm:$0xff] %v5115_v5  ;;  %6554 = vst [vmem:[#allocation79_spill] sm:$0xff] %v5117_v1  ;;  %v1258_v2 = vmax.f32 %v5111_v33, %v5115_v5  ;;  %v1254_v34 = vmax.f32 %v1253_v4, %v5102_v59 }
 0x1ce   : > { %v1255_v19 = vmax.f32 %v1254_v34, %v5107_v35  ;;  %v1259_v21 = vmax.f32 %v1258_v2, %v5113_v20 }
 0x1d0   : > { %v5124_v0 = vpop.f32.mrb[60].mxu0  ;;  %1256 = vmax.xlane.f32.xlu0 %v1255_v19  ;;  %v5126_v36 = vpop.f32.mrb[60].mxu1  ;;  %v1260_v12 = vmax.f32 %v1259_v21, %v5117_v1 }
 0x1d1   : > { %6555 = vst [vmem:[#allocation80_spill] sm:$0xff] %v5124_v0  ;;  %6556 = vst [vmem:[#allocation81_spill] sm:$0xff] %v5126_v36  ;;  %v5129_v50 = vpop.f32.mrb[61].mxu0  ;;  %v5131_v41 = vpop.f32.mrb[61].mxu1 }
 0x1d2   : > { %6557 = vst [vmem:[#allocation82_spill] sm:$0xff] %v5129_v50  ;;  %6558 = vst [vmem:[#allocation83_spill] sm:$0xff] %v5131_v41  ;;  %v1263_v5 = vmax.f32 %v5124_v0, %v5129_v50  ;;  %v5135_v33 = vpop.f32.mrb[62].mxu0  ;;  %1261 = vmax.xlane.f32.xlu1 %v1260_v12  ;;  %v5137_v4 = vpop.f32.mrb[62].mxu1 }
 0x1d3   : > { %6559 = vst [vmem:[#allocation84_spill] sm:$0xff] %v5135_v33  ;;  %6560 = vst [vmem:[#allocation85_spill] sm:$0xff] %v5137_v4  ;;  %v5139_v2 = vpop.f32.mrb[63].mxu0  ;;  %v5141_v34 = vpop.f32.mrb[63].mxu1 }
 0x1d4   : > { %6561 = vst [vmem:[#allocation86_spill] sm:$0xff] %v5139_v2  ;;  %6562 = vst [vmem:[#allocation87_spill] sm:$0xff] %v5141_v34  ;;  %v1268_v19 = vmax.f32 %v5135_v33, %v5139_v2  ;;  %v1264_v21 = vmax.f32 %v1263_v5, %v5126_v36 }
 0x1d6   : > { %v1265_v1 = vmax.f32 %v1264_v21, %v5131_v41  ;;  %v1269_v35 = vmax.f32 %v1268_v19, %v5137_v4 }
 0x1d8   : > { %v5148_v20 = vpop.f32.mrb[64].mxu0  ;;  %1266 = vmax.xlane.f32.xlu0 %v1265_v1  ;;  %v5150_v50 = vpop.f32.mrb[64].mxu1  ;;  %v1270_v12 = vmax.f32 %v1269_v35, %v5141_v34 }
 0x1d9   : > { %6563 = vst [vmem:[#allocation88_spill] sm:$0xff] %v5148_v20  ;;  %6564 = vst [vmem:[#allocation89_spill] sm:$0xff] %v5150_v50  ;;  %v5153_v0 = vpop.f32.mrb[65].mxu0  ;;  %v5155_v59 = vpop.f32.mrb[65].mxu1 }
 0x1da   : > { %6565 = vst [vmem:[#allocation90_spill] sm:$0xff] %v5153_v0  ;;  %6566 = vst [vmem:[#allocation91_spill] sm:$0xff] %v5155_v59  ;;  %v1273_v2 = vmax.f32 %v5148_v20, %v5153_v0  ;;  %v5159_v33 = vpop.f32.mrb[66].mxu0  ;;  %1271 = vmax.xlane.f32.xlu1 %v1270_v12  ;;  %v5161_v5 = vpop.f32.mrb[66].mxu1 }
 0x1db   : > { %6567 = vst [vmem:[#allocation92_spill] sm:$0xff] %v5159_v33  ;;  %6568 = vst [vmem:[#allocation93_spill] sm:$0xff] %v5161_v5  ;;  %v5163_v19 = vpop.f32.mrb[67].mxu0  ;;  %v5165_v21 = vpop.f32.mrb[67].mxu1 }
 0x1dc   : > { %6569 = vst [vmem:[#allocation94_spill] sm:$0xff] %v5163_v19  ;;  %6570 = vst [vmem:[#allocation95_spill] sm:$0xff] %v5165_v21  ;;  %v1278_v1 = vmax.f32 %v5159_v33, %v5163_v19  ;;  %v1274_v35 = vmax.f32 %v1273_v2, %v5150_v50 }
 0x1de   : > { %v1275_v34 = vmax.f32 %v1274_v35, %v5155_v59  ;;  %v1279_v41 = vmax.f32 %v1278_v1, %v5161_v5 }
 0x1e0   : > { %v5172_v4 = vpop.f32.mrb[68].mxu0  ;;  %1276 = vmax.xlane.f32.xlu0 %v1275_v34  ;;  %v5174_v0 = vpop.f32.mrb[68].mxu1  ;;  %v1280_v12 = vmax.f32 %v1279_v41, %v5165_v21 }
 0x1e1   : > { %6571 = vst [vmem:[#allocation96_spill] sm:$0xff] %v5172_v4  ;;  %6572 = vst [vmem:[#allocation97_spill] sm:$0xff] %v5174_v0  ;;  %v5177_v20 = vpop.f32.mrb[69].mxu0  ;;  %v5179_v36 = vpop.f32.mrb[69].mxu1 }
 0x1e2   : > { %6573 = vst [vmem:[#allocation98_spill] sm:$0xff] %v5177_v20  ;;  %6574 = vst [vmem:[#allocation99_spill] sm:$0xff] %v5179_v36  ;;  %v1283_v19 = vmax.f32 %v5172_v4, %v5177_v20  ;;  %v5183_v33 = vpop.f32.mrb[70].mxu0  ;;  %1281 = vmax.xlane.f32.xlu1 %v1280_v12  ;;  %v5185_v2 = vpop.f32.mrb[70].mxu1 }
 0x1e3   : > { %6575 = vst [vmem:[#allocation100_spill] sm:$0xff] %v5183_v33  ;;  %6576 = vst [vmem:[#allocation101_spill] sm:$0xff] %v5185_v2  ;;  %v5187_v1 = vpop.f32.mrb[71].mxu0  ;;  %v5189_v35 = vpop.f32.mrb[71].mxu1 }
 0x1e4   : > { %6577 = vst [vmem:[#allocation102_spill] sm:$0xff] %v5187_v1  ;;  %6578 = vst [vmem:[#allocation103_spill] sm:$0xff] %v5189_v35  ;;  %v1288_v34 = vmax.f32 %v5183_v33, %v5187_v1  ;;  %v1284_v41 = vmax.f32 %v1283_v19, %v5174_v0 }
 0x1e6   : > { %v1285_v21 = vmax.f32 %v1284_v41, %v5179_v36  ;;  %v1289_v59 = vmax.f32 %v1288_v34, %v5185_v2 }
 0x1e8   : > { %v5196_v5 = vpop.f32.mrb[72].mxu0  ;;  %1286 = vmax.xlane.f32.xlu0 %v1285_v21  ;;  %v5198_v20 = vpop.f32.mrb[72].mxu1  ;;  %v1290_v12 = vmax.f32 %v1289_v59, %v5189_v35 }
 0x1e9   : > { %6579 = vst [vmem:[#allocation104_spill] sm:$0xff] %v5196_v5  ;;  %6580 = vst [vmem:[#allocation105_spill] sm:$0xff] %v5198_v20  ;;  %v5201_v4 = vpop.f32.mrb[73].mxu0  ;;  %v5203_v50 = vpop.f32.mrb[73].mxu1 }
 0x1ea   : > { %6581 = vst [vmem:[#allocation106_spill] sm:$0xff] %v5201_v4  ;;  %6582 = vst [vmem:[#allocation107_spill] sm:$0xff] %v5203_v50  ;;  %v1293_v1 = vmax.f32 %v5196_v5, %v5201_v4  ;;  %v5207_v33 = vpop.f32.mrb[74].mxu0  ;;  %1291 = vmax.xlane.f32.xlu1 %v1290_v12  ;;  %v5209_v19 = vpop.f32.mrb[74].mxu1 }
 0x1eb   : > { %6583 = vst [vmem:[#allocation108_spill] sm:$0xff] %v5207_v33  ;;  %6584 = vst [vmem:[#allocation109_spill] sm:$0xff] %v5209_v19  ;;  %v5211_v34 = vpop.f32.mrb[75].mxu0  ;;  %v5213_v41 = vpop.f32.mrb[75].mxu1 }
 0x1ec   : > { %6585 = vst [vmem:[#allocation110_spill] sm:$0xff] %v5211_v34  ;;  %v1298_v21 = vmax.f32 %v5207_v33, %v5211_v34  ;;  %v1294_v59 = vmax.f32 %v1293_v1, %v5198_v20 }
 0x1ed   : > { %v1117_v35 = vpop.xlane.xlu0 %1116 }
 0x1ee   : > { %v1433_v36 = vsub.f32 %v4739_v8, %v1117_v35  ;;  %v1434_v2 = vsub.f32 %v4745_v10, %v1117_v35  ;;  %v1435_v4 = vsub.f32 %v4741_v9, %v1117_v35  ;;  %v1436_v12 = vsub.f32 %v4747_v11, %v1117_v35 }
 0x1ef   : > { %v1122_v5 = vpop.xlane.xlu1 %1121  ;;  %v1295_v0 = vmax.f32 %v1294_v59, %v5203_v50  ;;  %v1299_v56 = vmax.f32 %v1298_v21, %v5209_v19 }
 0x1f0   : > { %v1437_v49 = vsub.f32 %v4751_v13, %v1122_v5  ;;  %v1438_v34 = vsub.f32 %v4755_v15, %v1122_v5  ;;  %v1439_v1 = vsub.f32 %v4753_v14, %v1122_v5  ;;  %v1440_v33 = vsub.f32 %v4757_v16, %v1122_v5  ;;  %v5228_v8 = vpop.f32.mrb[76].mxu0  ;;  %v5230_v10 = vpop.f32.mrb[76].mxu1 }
 0x1f1   : > { %1296 = vmax.xlane.f32.xlu0 %v1295_v0  ;;  %v5232_v9 = vpop.f32.mrb[77].mxu0  ;;  %v5234_v11 = vpop.f32.mrb[77].mxu1  ;;  %v1300_v35 = vmax.f32 %v1299_v56, %v5213_v41 }
 0x1f2   : > { %v1689_v21 = vpack.c.bf16 %v1437_v49, %v1433_v36  ;;  %v1690_v59 = vpack.c.bf16 %v1438_v34, %v1434_v2  ;;  %v1691_v13 = vpack.c.bf16 %v1439_v1, %v1435_v4  ;;  %v1692_v50 = vpack.c.bf16 %v1440_v33, %v1436_v12  ;;  %v5237_v15 = vpop.f32.mrb[78].mxu0  ;;  %v5239_v14 = vpop.f32.mrb[78].mxu1 }
 0x1f3   : > { %v1303_v16 = vmax.f32 %v5228_v8, %v5232_v9  ;;  %1301 = vmax.xlane.f32.xlu1 %v1300_v35  ;;  %v5243_v5 = vpop.f32.mrb[79].mxu0  ;;  %v5245_v0 = vpop.f32.mrb[79].mxu1 }
 0x1f4   : > { %v1818_v19 = vmul.bf16 1069105081, %v1689_v21  ;;  %v1821_v20 = vmul.bf16 1069105081, %v1690_v59  ;;  %v1824_v52 = vmul.bf16 1069105081, %v1691_v13  ;;  %v1308_v49 = vmax.f32 %v5237_v15, %v5243_v5 }
 0x1f5   : > { %v1827_v56 = vmul.bf16 1069105081, %v1692_v50  ;;  %v1127_v33 = vpop.xlane.xlu0 %1126  ;;  %v1304_v36 = vmax.f32 %v1303_v16, %v5230_v10 }
 0x1f6   : > { %4037 = vpow.bf16 %v1818_v19  ;;  %v1441_v4 = vsub.f32 %v4768_v22, %v1127_v33  ;;  %v1442_v2 = vsub.f32 %v4773_v25, %v1127_v33  ;;  %v1443_v34 = vsub.f32 %v4770_v23, %v1127_v33 }
 0x1f7   : > { %4039 = vpow.bf16 %v1821_v20  ;;  %v1132_v12 = vpop.xlane.xlu1 %1131  ;;  %v1305_v1 = vmax.f32 %v1304_v36, %v5234_v11  ;;  %v1309_v35 = vmax.f32 %v1308_v49, %v5239_v14  ;;  %v1444_v25 = vsub.f32 %v4775_v26, %v1127_v33 }
 0x1f8   : > { %4041 = vpow.bf16 %v1824_v52  ;;  %v1445_v21 = vsub.f32 %v4779_v28, %v1132_v12  ;;  %v1446_v50 = vsub.f32 %v4783_v30, %v1132_v12  ;;  %v1447_v59 = vsub.f32 %v4781_v29, %v1132_v12  ;;  %v5258_v19 = vpop.f32.mrb[80].mxu0  ;;  %v5260_v22 = vpop.f32.mrb[80].mxu1 }
 0x1f9   : > { %4043 = vpow.bf16 %v1827_v56  ;;  %v1448_v23 = vsub.f32 %v4785_v31, %v1132_v12  ;;  %1306 = vmax.xlane.f32.xlu0 %v1305_v1  ;;  %v5264_v20 = vpop.f32.mrb[81].mxu0  ;;  %v5266_v13 = vpop.f32.mrb[81].mxu1  ;;  %v1310_v28 = vmax.f32 %v1309_v35, %v5245_v0 }
 0x1fa   : > { %6586 = vst [vmem:[#allocation111_spill] sm:$0xff] %v5266_v13  ;;  %v1693_v52 = vpack.c.bf16 %v1445_v21, %v1441_v4  ;;  %v1694_v30 = vpack.c.bf16 %v1446_v50, %v1442_v2  ;;  %v1695_v16 = vpack.c.bf16 %v1447_v59, %v1443_v34  ;;  %v1313_v29 = vmax.f32 %v5258_v19, %v5264_v20  ;;  %v5271_v49 = vpop.f32.mrb[82].mxu0  ;;  %v5273_v56 = vpop.f32.mrb[82].mxu1 }
 0x1fb   : > { %v1696_v26 = vpack.c.bf16 %v1448_v23, %v1444_v25  ;;  %1311 = vmax.xlane.f32.xlu1 %v1310_v28  ;;  %v5275_v31 = vpop.f32.mrb[83].mxu0  ;;  %v5277_v33 = vpop.f32.mrb[83].mxu1 }
 0x1fc   : > { %v1830_v36 = vmul.bf16 1069105081, %v1693_v52  ;;  %v1833_v12 = vmul.bf16 1069105081, %v1694_v30  ;;  %v1836_v1 = vmul.bf16 1069105081, %v1695_v16  ;;  %v1318_v4 = vmax.f32 %v5271_v49, %v5275_v31 }
 0x1fd   : > { %v1839_v2 = vmul.bf16 1069105081, %v1696_v26  ;;  %v1137_v34 = vpop.xlane.xlu0 %1136  ;;  %v1314_v35 = vmax.f32 %v1313_v29, %v5260_v22 }
 0x1fe   : > { %4045 = vpow.bf16 %v1830_v36  ;;  %v1449_v21 = vsub.f32 %v4798_v39, %v1137_v34  ;;  %v1450_v50 = vsub.f32 %v4804_v42, %v1137_v34  ;;  %v1451_v59 = vsub.f32 %v4800_v40, %v1137_v34 }
 0x1ff   : > { %4047 = vpow.bf16 %v1833_v12  ;;  %v1142_v25 = vpop.xlane.xlu1 %1141  ;;  %v1315_v23 = vmax.f32 %v1314_v35, %v5266_v13  ;;  %v1319_v28 = vmax.f32 %v1318_v4, %v5273_v56  ;;  %v1452_v40 = vsub.f32 %v4806_v43, %v1137_v34 }
 0x200   : > { %4049 = vpow.bf16 %v1836_v1  ;;  %v1453_v52 = vsub.f32 %v4811_v45, %v1142_v25  ;;  %v1454_v30 = vsub.f32 %v4815_v47, %v1142_v25  ;;  %v1455_v16 = vsub.f32 %v4813_v46, %v1142_v25  ;;  %v5290_v29 = vpop.f32.mrb[84].mxu0  ;;  %v5292_v39 = vpop.f32.mrb[84].mxu1 }
 0x201   : > { %v4038_v42 = vpop.eup %4037  ;;  %4051 = vpow.bf16 %v1839_v2  ;;  %v1456_v26 = vsub.f32 %v4817_v48, %v1142_v25  ;;  %1316 = vmax.xlane.f32.xlu0 %v1315_v23  ;;  %v5296_v36 = vpop.f32.mrb[85].mxu0  ;;  %v1320_v45 = vmax.f32 %v1319_v28, %v5277_v33 }
 0x202   : > { %v5298_v12 = vpop.f32.mrb[85].mxu1  ;;  %v4040_v47 = vpop.eup %4039  ;;  %v1697_v1 = vpack.c.bf16 %v1453_v52, %v1449_v21  ;;  %v1698_v46 = vpack.c.bf16 %v1454_v30, %v1450_v50  ;;  %v1699_v4 = vpack.c.bf16 %v1455_v16, %v1451_v59  ;;  %v1323_v35 = vmax.f32 %v5290_v29, %v5296_v36 }
 0x203   : > { %v5303_v13 = vpop.f32.mrb[86].mxu0  ;;  %v5305_v2 = vpop.f32.mrb[86].mxu1  ;;  %v1700_v48 = vpack.c.bf16 %v1456_v26, %v1452_v40  ;;  %2489 = vmatprep.mubr.bf16.mxu1 %v4040_v47  ;;  %1321 = vmax.xlane.f32.xlu1 %v1320_v45 }
 0x204   : > { %v4042_v43 = vpop.eup %4041  ;;  %v5307_v34 = vpop.f32.mrb[87].mxu0  ;;  %v1842_v28 = vmul.bf16 1069105081, %v1697_v1  ;;  %v1845_v21 = vmul.bf16 1069105081, %v1698_v46  ;;  %2490 = vmatmul.mubr.bf16.vlgmr.msra.gmra.mrb[128].mxu1 %v4038_v42  ;;  %v1324_v16 = vmax.f32 %v1323_v35, %v5292_v39 }
 0x205   : > { %v5309_v25 = vpop.f32.mrb[87].mxu1  ;;  %v4044_v23 = vpop.eup %4043  ;;  %v1848_v50 = vmul.bf16 1069105081, %v1699_v4  ;;  %v1328_v59 = vmax.f32 %v5303_v13, %v5307_v34  ;;  %v1851_v52 = vmul.bf16 1069105081, %v1700_v48 }
 0x206   : > { %2778 = vmatprep.mubr.bf16.mxu0 %v4044_v23  ;;  %v1147_v30 = vpop.xlane.xlu0 %1146  ;;  %4053 = vpow.bf16 %v1842_v28  ;;  %v1325_v1 = vmax.f32 %v1324_v16, %v5298_v12 }
 0x207   : > { %2779 = vmatmul.mubr.bf16.vlgmr.msra.gmra.mrb[128].mxu0 %v4042_v43  ;;  %v1457_v40 = vsub.f32 %v4828_v54, %v1147_v30  ;;  %v1458_v26 = vsub.f32 %v4833_v57, %v1147_v30  ;;  %4055 = vpow.bf16 %v1845_v21  ;;  %v1459_v45 = vsub.f32 %v4830_v55, %v1147_v30  ;;  %v1152_v47 = vpop.xlane.xlu1 %1151 }
 0x208   : > { %v1329_v46 = vmax.f32 %v1328_v59, %v5305_v2  ;;  %4057 = vpow.bf16 %v1848_v50  ;;  %v1461_v42 = vsub.f32 %v4839_v60, %v1152_v47  ;;  %v1462_v4 = vsub.f32 %v4843_v62, %v1152_v47  ;;  %v5322_v43 = vpop.f32.mrb[88].mxu0  ;;  %v5324_v54 = vpop.f32.mrb[88].mxu1  ;;  %1326 = vmax.xlane.f32.xlu0 %v1325_v1 }
 0x209   : > { %v1463_v35 = vsub.f32 %v4841_v61, %v1152_v47  ;;  %v4046_v57 = vpop.eup %4045  ;;  %4059 = vpow.bf16 %v1851_v52  ;;  %v1460_v55 = vsub.f32 %v4835_v58, %v1147_v30  ;;  %v1464_v48 = vsub.f32 %v4845_v63, %v1152_v47  ;;  %v5328_v23 = vpop.f32.mrb[89].mxu0 }
 0x20a   : > { %v5330_v28 = vpop.f32.mrb[89].mxu1  ;;  %v1330_v60 = vmax.f32 %v1329_v46, %v5309_v25  ;;  %v4048_v62 = vpop.eup %4047  ;;  %v1701_v21 = vpack.c.bf16 %v1461_v42, %v1457_v40  ;;  %v1702_v61 = vpack.c.bf16 %v1462_v4, %v1458_v26  ;;  %v1333_v59 = vmax.f32 %v5322_v43, %v5328_v23 }
 0x20b   : > { %v1703_v50 = vpack.c.bf16 %v1463_v35, %v1459_v45  ;;  %v5335_v16 = vpop.f32.mrb[90].mxu0  ;;  %v5337_v52 = vpop.f32.mrb[90].mxu1  ;;  %v1704_v63 = vpack.c.bf16 %v1464_v48, %v1460_v55  ;;  %2497 = vmatprep.mubr.bf16.mxu1 %v4048_v62 }
 0x20c   : > { %v4050_v58 = vpop.eup %4049  ;;  %1331 = vmax.xlane.f32.xlu1 %v1330_v60  ;;  %v5339_v30 = vpop.f32.mrb[91].mxu0  ;;  %v1854_v46 = vmul.bf16 1069105081, %v1701_v21  ;;  %v1857_v40 = vmul.bf16 1069105081, %v1702_v61  ;;  %2498 = vmatmul.mubr.bf16.gmra.mrb[132].mxu1 %v4046_v57  ;;  %v1334_v35 = vmax.f32 %v1333_v59, %v5324_v54 }
 0x20d   : > { %v5341_v47 = vpop.f32.mrb[91].mxu1  ;;  %v4052_v1 = vpop.eup %4051  ;;  %v1860_v26 = vmul.bf16 1069105081, %v1703_v50  ;;  %v1338_v45 = vmax.f32 %v5335_v16, %v5339_v30  ;;  %v1863_v42 = vmul.bf16 1069105081, %v1704_v63 }
 0x20e   : > { %2786 = vmatprep.mubr.bf16.mxu0 %v4052_v1  ;;  %v1157_v4 = vpop.xlane.xlu0 %1156  ;;  %4061 = vpow.bf16 %v1854_v46  ;;  %v1335_v21 = vmax.f32 %v1334_v35, %v5330_v28 }
 0x20f   : > { %2787 = vmatmul.mubr.bf16.gmra.mrb[132].mxu0 %v4050_v58  ;;  %v1465_v55 = vsub.f32 %v4856_v6, %v1157_v4  ;;  %v1466_v48 = vsub.f32 %v4861_v17, %v1157_v4  ;;  %4063 = vpow.bf16 %v1857_v40  ;;  %v1467_v60 = vsub.f32 %v4858_v7, %v1157_v4  ;;  %v1162_v62 = vpop.xlane.xlu1 %1161 }
 0x210   : > { %v1339_v61 = vmax.f32 %v1338_v45, %v5337_v52  ;;  %4065 = vpow.bf16 %v1860_v26  ;;  %v1469_v57 = vsub.f32 %v4869_v24, %v1162_v62  ;;  %v1470_v50 = vsub.f32 %v4873_v27, %v1162_v62  ;;  %v5354_v58 = vpop.f32.mrb[92].mxu0  ;;  %v5356_v6 = vpop.f32.mrb[92].mxu1  ;;  %1336 = vmax.xlane.f32.xlu0 %v1335_v21 }
 0x211   : > { %v1471_v59 = vsub.f32 %v4871_v3, %v1162_v62  ;;  %v4054_v17 = vpop.eup %4053  ;;  %4067 = vpow.bf16 %v1863_v42  ;;  %v1468_v7 = vsub.f32 %v4863_v18, %v1157_v4  ;;  %v1472_v63 = vsub.f32 %v4875_v32, %v1162_v62  ;;  %v5360_v1 = vpop.f32.mrb[93].mxu0 }
 0x212   : > { %v5362_v46 = vpop.f32.mrb[93].mxu1  ;;  %v1340_v24 = vmax.f32 %v1339_v61, %v5341_v47  ;;  %v4056_v27 = vpop.eup %4055  ;;  %v1705_v40 = vpack.c.bf16 %v1469_v57, %v1465_v55  ;;  %v1706_v3 = vpack.c.bf16 %v1470_v50, %v1466_v48  ;;  %v1343_v45 = vmax.f32 %v5354_v58, %v5360_v1 }
 0x213   : > { %6587 = vst [vmem:[#allocation112_spill] sm:$0xff] %v5362_v46  ;;  %v1707_v26 = vpack.c.bf16 %v1471_v59, %v1467_v60  ;;  %v5367_v35 = vpop.f32.mrb[94].mxu0  ;;  %v5369_v42 = vpop.f32.mrb[94].mxu1  ;;  %v1708_v32 = vpack.c.bf16 %v1472_v63, %v1468_v7  ;;  %2505 = vmatprep.mubr.bf16.mxu1 %v4056_v27 }
 0x214   : > { %6588 = vst [vmem:[#allocation113_spill] sm:$0xff] %v5369_v42  ;;  %v4058_v18 = vpop.eup %4057  ;;  %1341 = vmax.xlane.f32.xlu1 %v1340_v24  ;;  %v5371_v4 = vpop.f32.mrb[95].mxu0  ;;  %v1866_v61 = vmul.bf16 1069105081, %v1705_v40  ;;  %v1869_v55 = vmul.bf16 1069105081, %v1706_v3  ;;  %2506 = vmatmul.mubr.bf16.gmra.mrb[136].mxu1 %v4054_v17  ;;  %v1344_v59 = vmax.f32 %v1343_v45, %v5356_v6 }
 0x215   : > { %6589 = vst [vmem:[#allocation114_spill] sm:$0xff] %v5371_v4  ;;  %v5373_v62 = vpop.f32.mrb[95].mxu1  ;;  %v4060_v21 = vpop.eup %4059  ;;  %v1872_v48 = vmul.bf16 1069105081, %v1707_v26  ;;  %v1348_v60 = vmax.f32 %v5367_v35, %v5371_v4  ;;  %v1875_v57 = vmul.bf16 1069105081, %v1708_v32 }
 0x216   : > { %6590 = vst [vmem:[#allocation115_spill] sm:$0xff] %v5373_v62  ;;  %2794 = vmatprep.mubr.bf16.mxu0 %v4060_v21  ;;  %v1167_v50 = vpop.xlane.xlu0 %1166  ;;  %4069 = vpow.bf16 %v1866_v61  ;;  %v1345_v40 = vmax.f32 %v1344_v59, %v5362_v46  ;;  %v6591_v45 = vld [vmem:[#allocation6_spill] sm:$0xff]  ;;  %v6594_v21 = vld [vmem:[#allocation5_spill] sm:$0xff]  ;;  %v6595_v61 = vld [vmem:[#allocation7_spill] sm:$0xff] }
 0x217   : > { %2795 = vmatmul.mubr.bf16.gmra.mrb[136].mxu0 %v4058_v18  ;;  %v1473_v7 = vsub.f32 %v4884_v37, %v1167_v50  ;;  %v1474_v63 = vsub.f32 %v4889_v44, %v1167_v50  ;;  %4071 = vpow.bf16 %v1869_v55  ;;  %v1475_v24 = vsub.f32 %v4886_v38, %v1167_v50  ;;  %v1172_v27 = vpop.xlane.xlu1 %1171 }
 0x218   : > { %v1349_v3 = vmax.f32 %v1348_v60, %v5369_v42  ;;  %4073 = vpow.bf16 %v1872_v48  ;;  %v1477_v17 = vsub.f32 %v4895_v51, %v1172_v27  ;;  %v1478_v26 = vsub.f32 %v4899_v53, %v1172_v27  ;;  %v5386_v18 = vpop.f32.mrb[96].mxu0  ;;  %v5388_v37 = vpop.f32.mrb[96].mxu1  ;;  %1346 = vmax.xlane.f32.xlu0 %v1345_v40 }
 0x219   : > { %v1479_v32 = vsub.f32 %v6591_v45, %v1172_v27  ;;  %6592 = vst [vmem:[#allocation6_spill] sm:$0xff] %v5386_v18  ;;  %6593 = vst [vmem:[#allocation116_spill] sm:$0xff] %v5388_v37  ;;  %v4062_v44 = vpop.eup %4061  ;;  %4075 = vpow.bf16 %v1875_v57  ;;  %v1476_v38 = vsub.f32 %v6594_v21, %v1167_v50  ;;  %v1480_v55 = vsub.f32 %v6595_v61, %v1172_v27  ;;  %v5392_v59 = vpop.f32.mrb[97].mxu0 }
 0x21a   : > { %6596 = vst [vmem:[#allocation5_spill] sm:$0xff] %v5392_v59  ;;  %v5394_v48 = vpop.f32.mrb[97].mxu1  ;;  %v1350_v51 = vmax.f32 %v1349_v3, %v5373_v62  ;;  %v4064_v53 = vpop.eup %4063  ;;  %v1709_v60 = vpack.c.bf16 %v1477_v17, %v1473_v7  ;;  %v1710_v45 = vpack.c.bf16 %v1478_v26, %v1474_v63  ;;  %v1353_v42 = vmax.f32 %v5386_v18, %v5392_v59  ;;  %v6604_v59 = vld [vmem:[#allocation9_spill] sm:$0xff] }
 0x21b   : > { %6597 = vst [vmem:[#allocation7_spill] sm:$0xff] %v5394_v48  ;;  %v1711_v46 = vpack.c.bf16 %v1479_v32, %v1475_v24  ;;  %v5399_v4 = vpop.f32.mrb[98].mxu0  ;;  %v5401_v57 = vpop.f32.mrb[98].mxu1  ;;  %v1712_v27 = vpack.c.bf16 %v1480_v55, %v1476_v38  ;;  %2513 = vmatprep.mubr.bf16.mxu1 %v4064_v53  ;;  %v6602_v38 = vld [vmem:[#allocation8_spill] sm:$0xff] }
 0x21c   : > { %6598 = vst [vmem:[#allocation117_spill] sm:$0xff] %v5399_v4  ;;  %6599 = vst [vmem:[#allocation118_spill] sm:$0xff] %v5401_v57  ;;  %v4066_v50 = vpop.eup %4065  ;;  %1351 = vmax.xlane.f32.xlu1 %v1350_v51  ;;  %v5403_v40 = vpop.f32.mrb[99].mxu0  ;;  %v1878_v61 = vmul.bf16 1069105081, %v1709_v60  ;;  %2514 = vmatmul.mubr.bf16.gmra.mrb[140].mxu1 %v4062_v44  ;;  %v1354_v32 = vmax.f32 %v1353_v42, %v5388_v37  ;;  %v6603_v51 = vld [vmem:[#allocation10_spill] sm:$0xff] }
 0x21d   : > { %6600 = vst [vmem:[#allocation119_spill] sm:$0xff] %v5403_v40  ;;  %v5405_v21 = vpop.f32.mrb[99].mxu1  ;;  %v4068_v3 = vpop.eup %4067  ;;  %v1881_v7 = vmul.bf16 1069105081, %v1710_v45  ;;  %v1884_v63 = vmul.bf16 1069105081, %v1711_v46  ;;  %v1358_v24 = vmax.f32 %v5399_v4, %v5403_v40 }
 0x21e   : > { %6601 = vst [vmem:[#allocation120_spill] sm:$0xff] %v5405_v21  ;;  %v1887_v17 = vmul.bf16 1069105081, %v1712_v27  ;;  %2802 = vmatprep.mubr.bf16.mxu0 %v4068_v3  ;;  %v1177_v26 = vpop.xlane.xlu0 %1176  ;;  %4077 = vpow.bf16 %v1878_v61  ;;  %v1355_v46 = vmax.f32 %v1354_v32, %v5394_v48  ;;  %v6605_v44 = vld [vmem:[#allocation12_spill] sm:$0xff]  ;;  %v6606_v3 = vld [vmem:[#allocation14_spill] sm:$0xff]  ;;  %v6607_v42 = vld [vmem:[#allocation13_spill] sm:$0xff] }
 0x21f   : > { %2803 = vmatmul.mubr.bf16.gmra.mrb[140].mxu0 %v4066_v50  ;;  %v1481_v55 = vsub.f32 %v6602_v38, %v1177_v26  ;;  %v1482_v53 = vsub.f32 %v6603_v51, %v1177_v26  ;;  %4079 = vpow.bf16 %v1881_v7  ;;  %v1483_v60 = vsub.f32 %v6604_v59, %v1177_v26  ;;  %v1182_v45 = vpop.xlane.xlu1 %1181  ;;  %v6610_v7 = vld [vmem:[#allocation11_spill] sm:$0xff] }
 0x220   : > { %v1359_v40 = vmax.f32 %v1358_v24, %v5401_v57  ;;  %4081 = vpow.bf16 %v1884_v63  ;;  %v1485_v27 = vsub.f32 %v6605_v44, %v1182_v45  ;;  %v1486_v4 = vsub.f32 %v6606_v3, %v1182_v45  ;;  %v5418_v50 = vpop.f32.mrb[100].mxu0  ;;  %v5420_v38 = vpop.f32.mrb[100].mxu1  ;;  %v6611_v37 = vld [vmem:[#allocation15_spill] sm:$0xff]  ;;  %1356 = vmax.xlane.f32.xlu0 %v1355_v46 }
 0x221   : > { %v1487_v61 = vsub.f32 %v6607_v42, %v1182_v45  ;;  %6608 = vst [vmem:[#allocation8_spill] sm:$0xff] %v5418_v50  ;;  %6609 = vst [vmem:[#allocation10_spill] sm:$0xff] %v5420_v38  ;;  %v4070_v51 = vpop.eup %4069  ;;  %4083 = vpow.bf16 %v1887_v17  ;;  %v1484_v59 = vsub.f32 %v6610_v7, %v1177_v26  ;;  %v1488_v18 = vsub.f32 %v6611_v37, %v1182_v45  ;;  %v5424_v32 = vpop.f32.mrb[101].mxu0 }
 0x222   : > { %6612 = vst [vmem:[#allocation9_spill] sm:$0xff] %v5424_v32  ;;  %v5426_v63 = vpop.f32.mrb[101].mxu1  ;;  %v1360_v24 = vmax.f32 %v1359_v40, %v5405_v21  ;;  %v4072_v44 = vpop.eup %4071  ;;  %v1713_v3 = vpack.c.bf16 %v1485_v27, %v1481_v55  ;;  %v1714_v42 = vpack.c.bf16 %v1486_v4, %v1482_v53  ;;  %v1363_v57 = vmax.f32 %v5418_v50, %v5424_v32  ;;  %v6620_v32 = vld [vmem:[#allocation17_spill] sm:$0xff] }
 0x223   : > { %6613 = vst [vmem:[#allocation12_spill] sm:$0xff] %v5426_v63  ;;  %v1715_v48 = vpack.c.bf16 %v1487_v61, %v1483_v60  ;;  %v5431_v62 = vpop.f32.mrb[102].mxu0  ;;  %v5433_v17 = vpop.f32.mrb[102].mxu1  ;;  %v1716_v37 = vpack.c.bf16 %v1488_v18, %v1484_v59  ;;  %2521 = vmatprep.mubr.bf16.mxu1 %v4072_v44  ;;  %v6618_v18 = vld [vmem:[#allocation16_spill] sm:$0xff] }
 0x224   : > { %6614 = vst [vmem:[#allocation14_spill] sm:$0xff] %v5431_v62  ;;  %6615 = vst [vmem:[#allocation13_spill] sm:$0xff] %v5433_v17  ;;  %v4074_v26 = vpop.eup %4073  ;;  %1361 = vmax.xlane.f32.xlu1 %v1360_v24  ;;  %v5435_v45 = vpop.f32.mrb[103].mxu0  ;;  %v1890_v7 = vmul.bf16 1069105081, %v1713_v3  ;;  %2522 = vmatmul.mubr.bf16.gmra.mrb[144].mxu1 %v4070_v51  ;;  %v1364_v61 = vmax.f32 %v1363_v57, %v5420_v38  ;;  %v6619_v24 = vld [vmem:[#allocation18_spill] sm:$0xff] }
 0x225   : > { %6616 = vst [vmem:[#allocation11_spill] sm:$0xff] %v5435_v45  ;;  %v5437_v46 = vpop.f32.mrb[103].mxu1  ;;  %v4076_v40 = vpop.eup %4075  ;;  %v1893_v55 = vmul.bf16 1069105081, %v1714_v42  ;;  %v1896_v4 = vmul.bf16 1069105081, %v1715_v48  ;;  %v1368_v53 = vmax.f32 %v5431_v62, %v5435_v45 }
 0x226   : > { %6617 = vst [vmem:[#allocation15_spill] sm:$0xff] %v5437_v46  ;;  %v1899_v60 = vmul.bf16 1069105081, %v1716_v37  ;;  %2810 = vmatprep.mubr.bf16.mxu0 %v4076_v40  ;;  %v1187_v27 = vpop.xlane.xlu0 %1186  ;;  %4085 = vpow.bf16 %v1890_v7  ;;  %v1365_v48 = vmax.f32 %v1364_v61, %v5426_v63  ;;  %v6621_v51 = vld [vmem:[#allocation20_spill] sm:$0xff]  ;;  %v6622_v40 = vld [vmem:[#allocation22_spill] sm:$0xff]  ;;  %v6623_v57 = vld [vmem:[#allocation21_spill] sm:$0xff] }
 0x227   : > { %2811 = vmatmul.mubr.bf16.gmra.mrb[144].mxu0 %v4074_v26  ;;  %v1489_v59 = vsub.f32 %v6618_v18, %v1187_v27  ;;  %v1490_v44 = vsub.f32 %v6619_v24, %v1187_v27  ;;  %4087 = vpow.bf16 %v1893_v55  ;;  %v1491_v3 = vsub.f32 %v6620_v32, %v1187_v27  ;;  %v1192_v42 = vpop.xlane.xlu1 %1191  ;;  %v6626_v55 = vld [vmem:[#allocation19_spill] sm:$0xff] }
 0x228   : > { %v1369_v45 = vmax.f32 %v1368_v53, %v5433_v17  ;;  %4089 = vpow.bf16 %v1896_v4  ;;  %v1493_v37 = vsub.f32 %v6621_v51, %v1192_v42  ;;  %v1494_v62 = vsub.f32 %v6622_v40, %v1192_v42  ;;  %v5450_v26 = vpop.f32.mrb[104].mxu0  ;;  %v5452_v18 = vpop.f32.mrb[104].mxu1  ;;  %v6627_v38 = vld [vmem:[#allocation23_spill] sm:$0xff]  ;;  %1366 = vmax.xlane.f32.xlu0 %v1365_v48 }
 0x229   : > { %v1495_v7 = vsub.f32 %v6623_v57, %v1192_v42  ;;  %6624 = vst [vmem:[#allocation16_spill] sm:$0xff] %v5450_v26  ;;  %6625 = vst [vmem:[#allocation18_spill] sm:$0xff] %v5452_v18  ;;  %v4078_v24 = vpop.eup %4077  ;;  %4091 = vpow.bf16 %v1899_v60  ;;  %v1492_v32 = vsub.f32 %v6626_v55, %v1187_v27  ;;  %v1496_v50 = vsub.f32 %v6627_v38, %v1192_v42  ;;  %v5456_v61 = vpop.f32.mrb[105].mxu0 }
 0x22a   : > { %6628 = vst [vmem:[#allocation17_spill] sm:$0xff] %v5456_v61  ;;  %v5458_v4 = vpop.f32.mrb[105].mxu1  ;;  %v1370_v53 = vmax.f32 %v1369_v45, %v5437_v46  ;;  %v4080_v51 = vpop.eup %4079  ;;  %v1717_v40 = vpack.c.bf16 %v1493_v37, %v1489_v59  ;;  %v1718_v57 = vpack.c.bf16 %v1494_v62, %v1490_v44  ;;  %v1373_v17 = vmax.f32 %v5450_v26, %v5456_v61  ;;  %v6636_v61 = vld [vmem:[#allocation25_spill] sm:$0xff] }
 0x22b   : > { %6629 = vst [vmem:[#allocation20_spill] sm:$0xff] %v5458_v4  ;;  %v1719_v63 = vpack.c.bf16 %v1495_v7, %v1491_v3  ;;  %v5463_v21 = vpop.f32.mrb[106].mxu0  ;;  %v5465_v60 = vpop.f32.mrb[106].mxu1  ;;  %v1720_v38 = vpack.c.bf16 %v1496_v50, %v1492_v32  ;;  %2529 = vmatprep.mubr.bf16.mxu1 %v4080_v51  ;;  %v6634_v50 = vld [vmem:[#allocation24_spill] sm:$0xff] }
 0x22c   : > { %6630 = vst [vmem:[#allocation22_spill] sm:$0xff] %v5463_v21  ;;  %6631 = vst [vmem:[#allocation21_spill] sm:$0xff] %v5465_v60  ;;  %v4082_v27 = vpop.eup %4081  ;;  %1371 = vmax.xlane.f32.xlu1 %v1370_v53  ;;  %v5467_v42 = vpop.f32.mrb[107].mxu0  ;;  %v1902_v55 = vmul.bf16 1069105081, %v1717_v40  ;;  %2530 = vmatmul.mubr.bf16.gmra.mrb[148].mxu1 %v4078_v24  ;;  %v1374_v7 = vmax.f32 %v1373_v17, %v5452_v18  ;;  %v6635_v53 = vld [vmem:[#allocation26_spill] sm:$0xff] }
 0x22d   : > { %6632 = vst [vmem:[#allocation19_spill] sm:$0xff] %v5467_v42  ;;  %v5469_v48 = vpop.f32.mrb[107].mxu1  ;;  %v4084_v45 = vpop.eup %4083  ;;  %v1905_v59 = vmul.bf16 1069105081, %v1718_v57  ;;  %v1908_v62 = vmul.bf16 1069105081, %v1719_v63  ;;  %v1378_v44 = vmax.f32 %v5463_v21, %v5467_v42 }
 0x22e   : > { %6633 = vst [vmem:[#allocation23_spill] sm:$0xff] %v5469_v48  ;;  %v1911_v3 = vmul.bf16 1069105081, %v1720_v38  ;;  %2818 = vmatprep.mubr.bf16.mxu0 %v4084_v45  ;;  %v1197_v37 = vpop.xlane.xlu0 %1196  ;;  %4093 = vpow.bf16 %v1902_v55  ;;  %v1375_v63 = vmax.f32 %v1374_v7, %v5458_v4  ;;  %v6637_v24 = vld [vmem:[#allocation28_spill] sm:$0xff]  ;;  %v6638_v45 = vld [vmem:[#allocation30_spill] sm:$0xff]  ;;  %v6639_v17 = vld [vmem:[#allocation29_spill] sm:$0xff] }
 0x22f   : > { %2819 = vmatmul.mubr.bf16.gmra.mrb[148].mxu0 %v4082_v27  ;;  %v1497_v32 = vsub.f32 %v6634_v50, %v1197_v37  ;;  %v1498_v51 = vsub.f32 %v6635_v53, %v1197_v37  ;;  %4095 = vpow.bf16 %v1905_v59  ;;  %v1499_v40 = vsub.f32 %v6636_v61, %v1197_v37  ;;  %v1202_v57 = vpop.xlane.xlu1 %1201  ;;  %v6642_v59 = vld [vmem:[#allocation27_spill] sm:$0xff] }
 0x230   : > { %v1379_v42 = vmax.f32 %v1378_v44, %v5465_v60  ;;  %4097 = vpow.bf16 %v1908_v62  ;;  %v1501_v38 = vsub.f32 %v6637_v24, %v1202_v57  ;;  %v1502_v21 = vsub.f32 %v6638_v45, %v1202_v57  ;;  %v5482_v27 = vpop.f32.mrb[108].mxu0  ;;  %v5484_v50 = vpop.f32.mrb[108].mxu1  ;;  %v6643_v18 = vld [vmem:[#allocation31_spill] sm:$0xff]  ;;  %1376 = vmax.xlane.f32.xlu0 %v1375_v63 }
 0x231   : > { %v1503_v55 = vsub.f32 %v6639_v17, %v1202_v57  ;;  %6640 = vst [vmem:[#allocation24_spill] sm:$0xff] %v5482_v27  ;;  %6641 = vst [vmem:[#allocation26_spill] sm:$0xff] %v5484_v50  ;;  %v4086_v53 = vpop.eup %4085  ;;  %4099 = vpow.bf16 %v1911_v3  ;;  %v1500_v61 = vsub.f32 %v6642_v59, %v1197_v37  ;;  %v1504_v26 = vsub.f32 %v6643_v18, %v1202_v57  ;;  %v5488_v7 = vpop.f32.mrb[109].mxu0 }
 0x232   : > { %6644 = vst [vmem:[#allocation25_spill] sm:$0xff] %v5488_v7  ;;  %v5490_v62 = vpop.f32.mrb[109].mxu1  ;;  %v1380_v44 = vmax.f32 %v1379_v42, %v5469_v48  ;;  %v4088_v24 = vpop.eup %4087  ;;  %v1721_v45 = vpack.c.bf16 %v1501_v38, %v1497_v32  ;;  %v1722_v17 = vpack.c.bf16 %v1502_v21, %v1498_v51  ;;  %v1383_v60 = vmax.f32 %v5482_v27, %v5488_v7  ;;  %v6652_v7 = vld [vmem:[#allocation33_spill] sm:$0xff] }
 0x233   : > { %6645 = vst [vmem:[#allocation28_spill] sm:$0xff] %v5490_v62  ;;  %v1723_v4 = vpack.c.bf16 %v1503_v55, %v1499_v40  ;;  %v5495_v46 = vpop.f32.mrb[110].mxu0  ;;  %v5497_v3 = vpop.f32.mrb[110].mxu1  ;;  %v1724_v18 = vpack.c.bf16 %v1504_v26, %v1500_v61  ;;  %2537 = vmatprep.mubr.bf16.mxu1 %v4088_v24  ;;  %v6650_v26 = vld [vmem:[#allocation32_spill] sm:$0xff] }
 0x234   : > { %6646 = vst [vmem:[#allocation30_spill] sm:$0xff] %v5495_v46  ;;  %6647 = vst [vmem:[#allocation29_spill] sm:$0xff] %v5497_v3  ;;  %v4090_v37 = vpop.eup %4089  ;;  %1381 = vmax.xlane.f32.xlu1 %v1380_v44  ;;  %v5499_v57 = vpop.f32.mrb[111].mxu0  ;;  %v1914_v59 = vmul.bf16 1069105081, %v1721_v45  ;;  %2538 = vmatmul.mubr.bf16.gmra.mrb[152].mxu1 %v4086_v53  ;;  %v1384_v55 = vmax.f32 %v1383_v60, %v5484_v50  ;;  %v6651_v44 = vld [vmem:[#allocation34_spill] sm:$0xff] }
 0x235   : > { %6648 = vst [vmem:[#allocation27_spill] sm:$0xff] %v5499_v57  ;;  %v5501_v63 = vpop.f32.mrb[111].mxu1  ;;  %v4092_v42 = vpop.eup %4091  ;;  %v1917_v32 = vmul.bf16 1069105081, %v1722_v17  ;;  %v1920_v21 = vmul.bf16 1069105081, %v1723_v4  ;;  %v1388_v51 = vmax.f32 %v5495_v46, %v5499_v57 }
 0x236   : > { %6649 = vst [vmem:[#allocation31_spill] sm:$0xff] %v5501_v63  ;;  %v1923_v40 = vmul.bf16 1069105081, %v1724_v18  ;;  %2826 = vmatprep.mubr.bf16.mxu0 %v4092_v42  ;;  %v1207_v38 = vpop.xlane.xlu0 %1206  ;;  %4101 = vpow.bf16 %v1914_v59  ;;  %v1385_v4 = vmax.f32 %v1384_v55, %v5490_v62  ;;  %v6653_v53 = vld [vmem:[#allocation36_spill] sm:$0xff]  ;;  %v6654_v42 = vld [vmem:[#allocation38_spill] sm:$0xff]  ;;  %v6655_v60 = vld [vmem:[#allocation37_spill] sm:$0xff] }
 0x237   : > { %2827 = vmatmul.mubr.bf16.gmra.mrb[152].mxu0 %v4090_v37  ;;  %v1505_v61 = vsub.f32 %v6650_v26, %v1207_v38  ;;  %v1506_v24 = vsub.f32 %v6651_v44, %v1207_v38  ;;  %4103 = vpow.bf16 %v1917_v32  ;;  %v1507_v45 = vsub.f32 %v6652_v7, %v1207_v38  ;;  %v1212_v17 = vpop.xlane.xlu1 %1211  ;;  %v6658_v32 = vld [vmem:[#allocation35_spill] sm:$0xff] }
 0x238   : > { %v1389_v57 = vmax.f32 %v1388_v51, %v5497_v3  ;;  %4105 = vpow.bf16 %v1920_v21  ;;  %v1509_v18 = vsub.f32 %v6653_v53, %v1212_v17  ;;  %v1510_v46 = vsub.f32 %v6654_v42, %v1212_v17  ;;  %v5514_v37 = vpop.f32.mrb[112].mxu0  ;;  %v5516_v26 = vpop.f32.mrb[112].mxu1  ;;  %v6659_v50 = vld [vmem:[#allocation39_spill] sm:$0xff]  ;;  %1386 = vmax.xlane.f32.xlu0 %v1385_v4 }
 0x239   : > { %v1511_v59 = vsub.f32 %v6655_v60, %v1212_v17  ;;  %6656 = vst [vmem:[#allocation32_spill] sm:$0xff] %v5514_v37  ;;  %6657 = vst [vmem:[#allocation34_spill] sm:$0xff] %v5516_v26  ;;  %v4094_v44 = vpop.eup %4093  ;;  %4107 = vpow.bf16 %v1923_v40  ;;  %v1508_v7 = vsub.f32 %v6658_v32, %v1207_v38  ;;  %v1512_v27 = vsub.f32 %v6659_v50, %v1212_v17  ;;  %v5520_v55 = vpop.f32.mrb[113].mxu0 }
 0x23a   : > { %6660 = vst [vmem:[#allocation33_spill] sm:$0xff] %v5520_v55  ;;  %v5522_v21 = vpop.f32.mrb[113].mxu1  ;;  %v1390_v51 = vmax.f32 %v1389_v57, %v5501_v63  ;;  %v4096_v53 = vpop.eup %4095  ;;  %v1725_v42 = vpack.c.bf16 %v1509_v18, %v1505_v61  ;;  %v1726_v60 = vpack.c.bf16 %v1510_v46, %v1506_v24  ;;  %v1393_v3 = vmax.f32 %v5514_v37, %v5520_v55  ;;  %v6668_v55 = vld [vmem:[#allocation41_spill] sm:$0xff] }
 0x23b   : > { %6661 = vst [vmem:[#allocation36_spill] sm:$0xff] %v5522_v21  ;;  %v1727_v62 = vpack.c.bf16 %v1511_v59, %v1507_v45  ;;  %v5527_v48 = vpop.f32.mrb[114].mxu0  ;;  %v5529_v40 = vpop.f32.mrb[114].mxu1  ;;  %v1728_v50 = vpack.c.bf16 %v1512_v27, %v1508_v7  ;;  %2545 = vmatprep.mubr.bf16.mxu1 %v4096_v53  ;;  %v6666_v27 = vld [vmem:[#allocation40_spill] sm:$0xff] }
 0x23c   : > { %6662 = vst [vmem:[#allocation38_spill] sm:$0xff] %v5527_v48  ;;  %6663 = vst [vmem:[#allocation37_spill] sm:$0xff] %v5529_v40  ;;  %v4098_v38 = vpop.eup %4097  ;;  %1391 = vmax.xlane.f32.xlu1 %v1390_v51  ;;  %v5531_v17 = vpop.f32.mrb[115].mxu0  ;;  %v1926_v32 = vmul.bf16 1069105081, %v1725_v42  ;;  %2546 = vmatmul.mubr.bf16.gmra.mrb[156].mxu1 %v4094_v44  ;;  %v1394_v59 = vmax.f32 %v1393_v3, %v5516_v26  ;;  %v6667_v51 = vld [vmem:[#allocation42_spill] sm:$0xff] }
 0x23d   : > { %6664 = vst [vmem:[#allocation35_spill] sm:$0xff] %v5531_v17  ;;  %v5533_v4 = vpop.f32.mrb[115].mxu1  ;;  %v4100_v57 = vpop.eup %4099  ;;  %v1929_v61 = vmul.bf16 1069105081, %v1726_v60  ;;  %v1932_v46 = vmul.bf16 1069105081, %v1727_v62  ;;  %v1398_v24 = vmax.f32 %v5527_v48, %v5531_v17 }
 0x23e   : > { %6665 = vst [vmem:[#allocation39_spill] sm:$0xff] %v5533_v4  ;;  %v1935_v45 = vmul.bf16 1069105081, %v1728_v50  ;;  %2834 = vmatprep.mubr.bf16.mxu0 %v4100_v57  ;;  %v1217_v18 = vpop.xlane.xlu0 %1216  ;;  %4109 = vpow.bf16 %v1926_v32  ;;  %v1395_v62 = vmax.f32 %v1394_v59, %v5522_v21  ;;  %v6669_v44 = vld [vmem:[#allocation44_spill] sm:$0xff]  ;;  %v6670_v57 = vld [vmem:[#allocation46_spill] sm:$0xff]  ;;  %v6671_v3 = vld [vmem:[#allocation45_spill] sm:$0xff] }
 0x23f   : > { %2835 = vmatmul.mubr.bf16.gmra.mrb[156].mxu0 %v4098_v38  ;;  %v1513_v7 = vsub.f32 %v6666_v27, %v1217_v18  ;;  %v1514_v53 = vsub.f32 %v6667_v51, %v1217_v18  ;;  %4111 = vpow.bf16 %v1929_v61  ;;  %v1515_v42 = vsub.f32 %v6668_v55, %v1217_v18  ;;  %v1222_v60 = vpop.xlane.xlu1 %1221  ;;  %v6674_v61 = vld [vmem:[#allocation43_spill] sm:$0xff] }
 0x240   : > { %v1399_v17 = vmax.f32 %v1398_v24, %v5529_v40  ;;  %4113 = vpow.bf16 %v1932_v46  ;;  %v1517_v50 = vsub.f32 %v6669_v44, %v1222_v60  ;;  %v1518_v48 = vsub.f32 %v6670_v57, %v1222_v60  ;;  %v5546_v38 = vpop.f32.mrb[116].mxu0  ;;  %v5548_v27 = vpop.f32.mrb[116].mxu1  ;;  %v6675_v26 = vld [vmem:[#allocation47_spill] sm:$0xff]  ;;  %1396 = vmax.xlane.f32.xlu0 %v1395_v62 }
 0x241   : > { %v1519_v32 = vsub.f32 %v6671_v3, %v1222_v60  ;;  %6672 = vst [vmem:[#allocation40_spill] sm:$0xff] %v5546_v38  ;;  %6673 = vst [vmem:[#allocation42_spill] sm:$0xff] %v5548_v27  ;;  %v4102_v51 = vpop.eup %4101  ;;  %4115 = vpow.bf16 %v1935_v45  ;;  %v1516_v55 = vsub.f32 %v6674_v61, %v1217_v18  ;;  %v1520_v37 = vsub.f32 %v6675_v26, %v1222_v60  ;;  %v5552_v59 = vpop.f32.mrb[117].mxu0 }
 0x242   : > { %6676 = vst [vmem:[#allocation41_spill] sm:$0xff] %v5552_v59  ;;  %v5554_v46 = vpop.f32.mrb[117].mxu1  ;;  %v1400_v24 = vmax.f32 %v1399_v17, %v5533_v4  ;;  %v4104_v44 = vpop.eup %4103  ;;  %v1729_v57 = vpack.c.bf16 %v1517_v50, %v1513_v7  ;;  %v1730_v3 = vpack.c.bf16 %v1518_v48, %v1514_v53  ;;  %v1403_v40 = vmax.f32 %v5546_v38, %v5552_v59  ;;  %v6684_v59 = vld [vmem:[#allocation49_spill] sm:$0xff] }
 0x243   : > { %6677 = vst [vmem:[#allocation44_spill] sm:$0xff] %v5554_v46  ;;  %v1731_v21 = vpack.c.bf16 %v1519_v32, %v1515_v42  ;;  %v5559_v63 = vpop.f32.mrb[118].mxu0  ;;  %v5561_v45 = vpop.f32.mrb[118].mxu1  ;;  %v1732_v26 = vpack.c.bf16 %v1520_v37, %v1516_v55  ;;  %2553 = vmatprep.mubr.bf16.mxu1 %v4104_v44  ;;  %v6682_v37 = vld [vmem:[#allocation48_spill] sm:$0xff] }
 0x244   : > { %6678 = vst [vmem:[#allocation46_spill] sm:$0xff] %v5559_v63  ;;  %6679 = vst [vmem:[#allocation45_spill] sm:$0xff] %v5561_v45  ;;  %v4106_v18 = vpop.eup %4105  ;;  %1401 = vmax.xlane.f32.xlu1 %v1400_v24  ;;  %v5563_v60 = vpop.f32.mrb[119].mxu0  ;;  %v1938_v61 = vmul.bf16 1069105081, %v1729_v57  ;;  %2554 = vmatmul.mubr.bf16.gmra.mrb[160].mxu1 %v4102_v51  ;;  %v1404_v32 = vmax.f32 %v1403_v40, %v5548_v27  ;;  %v6683_v24 = vld [vmem:[#allocation50_spill] sm:$0xff] }
 0x245   : > { %6680 = vst [vmem:[#allocation43_spill] sm:$0xff] %v5563_v60  ;;  %v5565_v62 = vpop.f32.mrb[119].mxu1  ;;  %v4108_v17 = vpop.eup %4107  ;;  %v1941_v7 = vmul.bf16 1069105081, %v1730_v3  ;;  %v1944_v48 = vmul.bf16 1069105081, %v1731_v21  ;;  %v1408_v53 = vmax.f32 %v5559_v63, %v5563_v60 }
 0x246   : > { %6681 = vst [vmem:[#allocation47_spill] sm:$0xff] %v5565_v62  ;;  %v1947_v42 = vmul.bf16 1069105081, %v1732_v26  ;;  %2842 = vmatprep.mubr.bf16.mxu0 %v4108_v17  ;;  %v1227_v50 = vpop.xlane.xlu0 %1226  ;;  %4117 = vpow.bf16 %v1938_v61  ;;  %v1405_v21 = vmax.f32 %v1404_v32, %v5554_v46  ;;  %v6685_v51 = vld [vmem:[#allocation52_spill] sm:$0xff]  ;;  %v6686_v17 = vld [vmem:[#allocation54_spill] sm:$0xff]  ;;  %v6687_v40 = vld [vmem:[#allocation53_spill] sm:$0xff] }
 0x247   : > { %2843 = vmatmul.mubr.bf16.gmra.mrb[160].mxu0 %v4106_v18  ;;  %v1521_v55 = vsub.f32 %v6682_v37, %v1227_v50  ;;  %v1522_v44 = vsub.f32 %v6683_v24, %v1227_v50  ;;  %4119 = vpow.bf16 %v1941_v7  ;;  %v1523_v57 = vsub.f32 %v6684_v59, %v1227_v50  ;;  %v1232_v3 = vpop.xlane.xlu1 %1231  ;;  %v6690_v7 = vld [vmem:[#allocation51_spill] sm:$0xff] }
 0x248   : > { %v1409_v60 = vmax.f32 %v1408_v53, %v5561_v45  ;;  %4121 = vpow.bf16 %v1944_v48  ;;  %v1525_v26 = vsub.f32 %v6685_v51, %v1232_v3  ;;  %v1526_v63 = vsub.f32 %v6686_v17, %v1232_v3  ;;  %v5578_v18 = vpop.f32.mrb[120].mxu0  ;;  %v5580_v37 = vpop.f32.mrb[120].mxu1  ;;  %v6691_v27 = vld [vmem:[#allocation55_spill] sm:$0xff]  ;;  %1406 = vmax.xlane.f32.xlu0 %v1405_v21 }
 0x249   : > { %v1527_v61 = vsub.f32 %v6687_v40, %v1232_v3  ;;  %6688 = vst [vmem:[#allocation48_spill] sm:$0xff] %v5578_v18  ;;  %6689 = vst [vmem:[#allocation50_spill] sm:$0xff] %v5580_v37  ;;  %v4110_v24 = vpop.eup %4109  ;;  %4123 = vpow.bf16 %v1947_v42  ;;  %v1524_v59 = vsub.f32 %v6690_v7, %v1227_v50  ;;  %v1528_v38 = vsub.f32 %v6691_v27, %v1232_v3  ;;  %v5584_v32 = vpop.f32.mrb[121].mxu0 }
 0x24a   : > { %6692 = vst [vmem:[#allocation49_spill] sm:$0xff] %v5584_v32  ;;  %v5586_v48 = vpop.f32.mrb[121].mxu1  ;;  %v1410_v53 = vmax.f32 %v1409_v60, %v5565_v62  ;;  %v4112_v51 = vpop.eup %4111  ;;  %v1733_v17 = vpack.c.bf16 %v1525_v26, %v1521_v55  ;;  %v1734_v40 = vpack.c.bf16 %v1526_v63, %v1522_v44  ;;  %v1413_v45 = vmax.f32 %v5578_v18, %v5584_v32  ;;  %v6700_v32 = vld [vmem:[#allocation57_spill] sm:$0xff] }
 0x24b   : > { %6693 = vst [vmem:[#allocation52_spill] sm:$0xff] %v5586_v48  ;;  %v1735_v46 = vpack.c.bf16 %v1527_v61, %v1523_v57  ;;  %v5591_v4 = vpop.f32.mrb[122].mxu0  ;;  %v5593_v42 = vpop.f32.mrb[122].mxu1  ;;  %v1736_v27 = vpack.c.bf16 %v1528_v38, %v1524_v59  ;;  %2561 = vmatprep.mubr.bf16.mxu1 %v4112_v51  ;;  %v6698_v38 = vld [vmem:[#allocation56_spill] sm:$0xff] }
 0x24c   : > { %6694 = vst [vmem:[#allocation54_spill] sm:$0xff] %v5591_v4  ;;  %6695 = vst [vmem:[#allocation53_spill] sm:$0xff] %v5593_v42  ;;  %v4114_v50 = vpop.eup %4113  ;;  %1411 = vmax.xlane.f32.xlu1 %v1410_v53  ;;  %v5595_v3 = vpop.f32.mrb[123].mxu0  ;;  %v1950_v7 = vmul.bf16 1069105081, %v1733_v17  ;;  %2562 = vmatmul.mubr.bf16.gmra.mrb[164].mxu1 %v4110_v24  ;;  %v1414_v61 = vmax.f32 %v1413_v45, %v5580_v37  ;;  %v6699_v53 = vld [vmem:[#allocation58_spill] sm:$0xff] }
 0x24d   : > { %6696 = vst [vmem:[#allocation51_spill] sm:$0xff] %v5595_v3  ;;  %v5597_v21 = vpop.f32.mrb[123].mxu1  ;;  %v4116_v60 = vpop.eup %4115  ;;  %v1953_v55 = vmul.bf16 1069105081, %v1734_v40  ;;  %v1956_v63 = vmul.bf16 1069105081, %v1735_v46  ;;  %v1418_v44 = vmax.f32 %v5591_v4, %v5595_v3 }
 0x24e   : > { %6697 = vst [vmem:[#allocation55_spill] sm:$0xff] %v5597_v21  ;;  %v1959_v57 = vmul.bf16 1069105081, %v1736_v27  ;;  %2850 = vmatprep.mubr.bf16.mxu0 %v4116_v60  ;;  %v1237_v26 = vpop.xlane.xlu0 %1236  ;;  %4125 = vpow.bf16 %v1950_v7  ;;  %v1415_v46 = vmax.f32 %v1414_v61, %v5586_v48  ;;  %v6701_v24 = vld [vmem:[#allocation60_spill] sm:$0xff]  ;;  %v6702_v60 = vld [vmem:[#allocation62_spill] sm:$0xff]  ;;  %v6703_v45 = vld [vmem:[#allocation61_spill] sm:$0xff] }
 0x24f   : > { %2851 = vmatmul.mubr.bf16.gmra.mrb[164].mxu0 %v4114_v50  ;;  %v1529_v59 = vsub.f32 %v6698_v38, %v1237_v26  ;;  %v1530_v51 = vsub.f32 %v6699_v53, %v1237_v26  ;;  %4127 = vpow.bf16 %v1953_v55  ;;  %v1531_v17 = vsub.f32 %v6700_v32, %v1237_v26  ;;  %v1242_v40 = vpop.xlane.xlu1 %1241  ;;  %v6706_v55 = vld [vmem:[#allocation59_spill] sm:$0xff] }
 0x250   : > { %v1419_v3 = vmax.f32 %v1418_v44, %v5593_v42  ;;  %4129 = vpow.bf16 %v1956_v63  ;;  %v1533_v27 = vsub.f32 %v6701_v24, %v1242_v40  ;;  %v1534_v4 = vsub.f32 %v6702_v60, %v1242_v40  ;;  %v5610_v50 = vpop.f32.mrb[124].mxu0  ;;  %v5612_v38 = vpop.f32.mrb[124].mxu1  ;;  %v6707_v37 = vld [vmem:[#allocation63_spill] sm:$0xff]  ;;  %1416 = vmax.xlane.f32.xlu0 %v1415_v46 }
 0x251   : > { %v1535_v7 = vsub.f32 %v6703_v45, %v1242_v40  ;;  %6704 = vst [vmem:[#allocation56_spill] sm:$0xff] %v5610_v50  ;;  %6705 = vst [vmem:[#allocation58_spill] sm:$0xff] %v5612_v38  ;;  %v4118_v53 = vpop.eup %4117  ;;  %4131 = vpow.bf16 %v1959_v57  ;;  %v1532_v32 = vsub.f32 %v6706_v55, %v1237_v26  ;;  %v1536_v18 = vsub.f32 %v6707_v37, %v1242_v40  ;;  %v5616_v61 = vpop.f32.mrb[125].mxu0 }
 0x252   : > { %6708 = vst [vmem:[#allocation57_spill] sm:$0xff] %v5616_v61  ;;  %v5618_v63 = vpop.f32.mrb[125].mxu1  ;;  %v1420_v44 = vmax.f32 %v1419_v3, %v5597_v21  ;;  %v4120_v24 = vpop.eup %4119  ;;  %v1737_v60 = vpack.c.bf16 %v1533_v27, %v1529_v59  ;;  %v1738_v45 = vpack.c.bf16 %v1534_v4, %v1530_v51  ;;  %v1423_v42 = vmax.f32 %v5610_v50, %v5616_v61  ;;  %v6715_v61 = vld [vmem:[#allocation65_spill] sm:$0xff] }
 0x253   : > { %6709 = vst [vmem:[#allocation60_spill] sm:$0xff] %v5618_v63  ;;  %v1739_v48 = vpack.c.bf16 %v1535_v7, %v1531_v17  ;;  %v5623_v62 = vpop.f32.mrb[126].mxu0  ;;  %v5625_v57 = vpop.f32.mrb[126].mxu1  ;;  %v1740_v37 = vpack.c.bf16 %v1536_v18, %v1532_v32  ;;  %2569 = vmatprep.mubr.bf16.mxu1 %v4120_v24  ;;  %v6713_v18 = vld [vmem:[#allocation64_spill] sm:$0xff] }
 0x254   : > { %6710 = vst [vmem:[#allocation62_spill] sm:$0xff] %v5623_v62  ;;  %6711 = vst [vmem:[#allocation61_spill] sm:$0xff] %v5625_v57  ;;  %v4122_v26 = vpop.eup %4121  ;;  %1421 = vmax.xlane.f32.xlu1 %v1420_v44  ;;  %v5627_v40 = vpop.f32.mrb[127].mxu0  ;;  %v1962_v55 = vmul.bf16 1069105081, %v1737_v60  ;;  %2570 = vmatmul.mubr.bf16.gmra.mrb[168].mxu1 %v4118_v53  ;;  %v1424_v7 = vmax.f32 %v1423_v42, %v5612_v38  ;;  %v6714_v44 = vld [vmem:[#allocation66_spill] sm:$0xff] }
 0x255   : > { %6712 = vst [vmem:[#allocation59_spill] sm:$0xff] %v5627_v40  ;;  %v5629_v46 = vpop.f32.mrb[127].mxu1  ;;  %v4124_v3 = vpop.eup %4123  ;;  %v1965_v59 = vmul.bf16 1069105081, %v1738_v45  ;;  %v1968_v4 = vmul.bf16 1069105081, %v1739_v48  ;;  %v1428_v51 = vmax.f32 %v5623_v62, %v5627_v40 }
 0x256   : > { %v1971_v17 = vmul.bf16 1069105081, %v1740_v37  ;;  %2858 = vmatprep.mubr.bf16.mxu0 %v4124_v3  ;;  %v1247_v27 = vpop.xlane.xlu0 %1246  ;;  %4133 = vpow.bf16 %v1962_v55  ;;  %v1425_v48 = vmax.f32 %v1424_v7, %v5618_v63  ;;  %v6716_v53 = vld [vmem:[#allocation68_spill] sm:$0xff]  ;;  %v6717_v3 = vld [vmem:[#allocation70_spill] sm:$0xff]  ;;  %v6718_v42 = vld [vmem:[#allocation69_spill] sm:$0xff] }
 0x257   : > { %2859 = vmatmul.mubr.bf16.gmra.mrb[168].mxu0 %v4122_v26  ;;  %v1537_v32 = vsub.f32 %v6713_v18, %v1247_v27  ;;  %v1538_v24 = vsub.f32 %v6714_v44, %v1247_v27  ;;  %4135 = vpow.bf16 %v1965_v59  ;;  %v1539_v60 = vsub.f32 %v6715_v61, %v1247_v27  ;;  %v1252_v45 = vpop.xlane.xlu1 %1251  ;;  %v6719_v18 = vld [vmem:[#allocation67_spill] sm:$0xff] }
 0x258   : > { %v1429_v40 = vmax.f32 %v1428_v51, %v5625_v57  ;;  %4137 = vpow.bf16 %v1968_v4  ;;  %v1541_v37 = vsub.f32 %v6716_v53, %v1252_v45  ;;  %v1542_v62 = vsub.f32 %v6717_v3, %v1252_v45  ;;  %v6720_v44 = vld [vmem:[#allocation71_spill] sm:$0xff]  ;;  %1426 = vmax.xlane.f32.xlu0 %v1425_v48 }
 0x259   : > { %v1543_v55 = vsub.f32 %v6718_v42, %v1252_v45  ;;  %v4126_v26 = vpop.eup %4125  ;;  %4139 = vpow.bf16 %v1971_v17  ;;  %v1540_v38 = vsub.f32 %v6719_v18, %v1247_v27  ;;  %v1544_v59 = vsub.f32 %v6720_v44, %v1252_v45  ;;  %v6727_v18 = vld [vmem:[#allocation75_spill] sm:$0xff] }
 0x25a   : > { %v1430_v61 = vmax.f32 %v1429_v40, %v5629_v46  ;;  %v4128_v50 = vpop.eup %4127  ;;  %v1741_v7 = vpack.c.bf16 %v1541_v37, %v1537_v32  ;;  %v1742_v63 = vpack.c.bf16 %v1542_v62, %v1538_v24  ;;  %v6721_v40 = vld [vmem:[#allocation72_spill] sm:$0xff]  ;;  %v6722_v32 = vld [vmem:[#allocation74_spill] sm:$0xff]  ;;  %v6723_v24 = vld [vmem:[#allocation73_spill] sm:$0xff] }
 0x25b   : > { %v1743_v51 = vpack.c.bf16 %v1543_v55, %v1539_v60  ;;  %v4130_v4 = vpop.eup %4129  ;;  %v1744_v57 = vpack.c.bf16 %v1544_v59, %v1540_v38  ;;  %2577 = vmatprep.mubr.bf16.mxu1 %v4128_v50  ;;  %v6724_v50 = vld [vmem:[#allocation76_spill] sm:$0xff]  ;;  %v6725_v37 = vld [vmem:[#allocation78_spill] sm:$0xff]  ;;  %v6726_v55 = vld [vmem:[#allocation77_spill] sm:$0xff] }
 0x25c   : > { %1431 = vmax.xlane.f32.xlu1 %v1430_v61  ;;  %v4132_v53 = vpop.eup %4131  ;;  %v1974_v3 = vmul.bf16 1069105081, %v1741_v7  ;;  %v1977_v42 = vmul.bf16 1069105081, %v1742_v63  ;;  %2578 = vmatmul.mubr.bf16.gmra.mrb[172].mxu1 %v4126_v26  ;;  %v6728_v59 = vld [vmem:[#allocation79_spill] sm:$0xff] }
 0x25d   : > { %v1980_v21 = vmul.bf16 1069105081, %v1743_v51  ;;  %v1983_v17 = vmul.bf16 1069105081, %v1744_v57  ;;  %2866 = vmatprep.mubr.bf16.mxu0 %v4132_v53  ;;  %v1257_v27 = vpop.xlane.xlu0 %1256 }
 0x25e   : > { %4141 = vpow.bf16 %v1974_v3  ;;  %v1545_v45 = vsub.f32 %v6721_v40, %v1257_v27  ;;  %v1546_v62 = vsub.f32 %v6722_v32, %v1257_v27  ;;  %v1547_v60 = vsub.f32 %v6723_v24, %v1257_v27 }
 0x25f   : > { %2867 = vmatmul.mubr.bf16.gmra.mrb[172].mxu0 %v4130_v4  ;;  %4143 = vpow.bf16 %v1977_v42  ;;  %v1262_v38 = vpop.xlane.xlu1 %1261  ;;  %v1548_v44 = vsub.f32 %v6727_v18, %v1257_v27 }
 0x260   : > { %4145 = vpow.bf16 %v1980_v21  ;;  %v1549_v48 = vsub.f32 %v6724_v50, %v1262_v38  ;;  %v1550_v63 = vsub.f32 %v6725_v37, %v1262_v38  ;;  %v1551_v26 = vsub.f32 %v6726_v55, %v1262_v38 }
 0x261   : > { %v4134_v57 = vpop.eup %4133  ;;  %4147 = vpow.bf16 %v1983_v17  ;;  %v1552_v61 = vsub.f32 %v6728_v59, %v1262_v38  ;;  %v6729_v17 = vld [vmem:[#allocation80_spill] sm:$0xff]  ;;  %v6730_v38 = vld [vmem:[#allocation82_spill] sm:$0xff]  ;;  %v4487_v59 = vmov 8  }
 0x262   : > { %v4136_v7 = vpop.eup %4135  ;;  %v1745_v51 = vpack.c.bf16 %v1549_v48, %v1545_v45  ;;  %v1746_v4 = vpack.c.bf16 %v1550_v63, %v1546_v62  ;;  %v1747_v53 = vpack.c.bf16 %v1551_v26, %v1547_v60  ;;  %v6731_v62 = vld [vmem:[#allocation81_spill] sm:$0xff]  ;;  %v6732_v63 = vld [vmem:[#allocation84_spill] sm:$0xff]  ;;  %v6733_v26 = vld [vmem:[#allocation86_spill] sm:$0xff]  ;;  %4002 = vset.pattern.permute.xlu0 %v4487_v59  ;;  %4003 = vset.pattern.permute.xlu1 %v4487_v59 }
 0x263   : > { %v4138_v3 = vpop.eup %4137  ;;  %v1748_v42 = vpack.c.bf16 %v1552_v61, %v1548_v44  ;;  %2585 = vmatprep.mubr.bf16.mxu1 %v4136_v7  ;;  %v6734_v44 = vld [vmem:[#allocation85_spill] sm:$0xff]  ;;  %v6735_v7 = vld [vmem:[#allocation83_spill] sm:$0xff]  ;;  %v6741_v59 = vld [vmem:[#allocation94_spill] sm:$0xff] }
 0x264   : > { %v4140_v21 = vpop.eup %4139  ;;  %v1986_v40 = vmul.bf16 1069105081, %v1745_v51  ;;  %v1989_v32 = vmul.bf16 1069105081, %v1746_v4  ;;  %v1992_v24 = vmul.bf16 1069105081, %v1747_v53  ;;  %2586 = vmatmul.mubr.bf16.gmra.mrb[176].mxu1 %v4134_v57 }
 0x265   : > { %v1995_v50 = vmul.bf16 1069105081, %v1748_v42  ;;  %2874 = vmatprep.mubr.bf16.mxu0 %v4140_v21  ;;  %v1267_v37 = vpop.xlane.xlu0 %1266  ;;  %v6736_v4 = vld [vmem:[#allocation87_spill] sm:$0xff] }
 0x266   : > { %4149 = vpow.bf16 %v1986_v40  ;;  %v1553_v27 = vsub.f32 %v6729_v17, %v1267_v37  ;;  %v1554_v45 = vsub.f32 %v6730_v38, %v1267_v37  ;;  %v1555_v60 = vsub.f32 %v6731_v62, %v1267_v37 }
 0x267   : > { %2875 = vmatmul.mubr.bf16.gmra.mrb[176].mxu0 %v4138_v3  ;;  %4151 = vpow.bf16 %v1989_v32  ;;  %v1272_v48 = vpop.xlane.xlu1 %1271  ;;  %v1556_v51 = vsub.f32 %v6735_v7, %v1267_v37 }
 0x268   : > { %4153 = vpow.bf16 %v1992_v24  ;;  %v1557_v55 = vsub.f32 %v6732_v63, %v1272_v48  ;;  %v1558_v18 = vsub.f32 %v6733_v26, %v1272_v48  ;;  %v1559_v57 = vsub.f32 %v6734_v44, %v1272_v48 }
 0x269   : > { %v4142_v61 = vpop.eup %4141  ;;  %4155 = vpow.bf16 %v1995_v50  ;;  %v1560_v53 = vsub.f32 %v6736_v4, %v1272_v48  ;;  %v6737_v50 = vld [vmem:[#allocation88_spill] sm:$0xff]  ;;  %v6738_v48 = vld [vmem:[#allocation90_spill] sm:$0xff] }
 0x26a   : > { %v4144_v3 = vpop.eup %4143  ;;  %v1749_v42 = vpack.c.bf16 %v1557_v55, %v1553_v27  ;;  %v1750_v21 = vpack.c.bf16 %v1558_v18, %v1554_v45  ;;  %v1751_v40 = vpack.c.bf16 %v1559_v57, %v1555_v60  ;;  %v6739_v45 = vld [vmem:[#allocation89_spill] sm:$0xff]  ;;  %v6740_v18 = vld [vmem:[#allocation92_spill] sm:$0xff] }
 0x26b   : > { %v4146_v32 = vpop.eup %4145  ;;  %v1752_v24 = vpack.c.bf16 %v1560_v53, %v1556_v51  ;;  %2593 = vmatprep.mubr.bf16.mxu1 %v4144_v3  ;;  %v6742_v51 = vld [vmem:[#allocation93_spill] sm:$0xff]  ;;  %v6743_v53 = vld [vmem:[#allocation91_spill] sm:$0xff] }
 0x26c   : > { %v4148_v17 = vpop.eup %4147  ;;  %v1998_v38 = vmul.bf16 1069105081, %v1749_v42  ;;  %v2001_v62 = vmul.bf16 1069105081, %v1750_v21  ;;  %v2004_v63 = vmul.bf16 1069105081, %v1751_v40  ;;  %2594 = vmatmul.mubr.bf16.gmra.mrb[180].mxu1 %v4142_v61 }
 0x26d   : > { %v2007_v26 = vmul.bf16 1069105081, %v1752_v24  ;;  %2882 = vmatprep.mubr.bf16.mxu0 %v4148_v17  ;;  %v1277_v44 = vpop.xlane.xlu0 %1276  ;;  %v6744_v42 = vld [vmem:[#allocation95_spill] sm:$0xff] }
 0x26e   : > { %4157 = vpow.bf16 %v1998_v38  ;;  %v1561_v37 = vsub.f32 %v6737_v50, %v1277_v44  ;;  %v1562_v27 = vsub.f32 %v6738_v48, %v1277_v44  ;;  %v1563_v60 = vsub.f32 %v6739_v45, %v1277_v44 }
 0x26f   : > { %2883 = vmatmul.mubr.bf16.gmra.mrb[180].mxu0 %v4146_v32  ;;  %4159 = vpow.bf16 %v2001_v62  ;;  %v1282_v55 = vpop.xlane.xlu1 %1281  ;;  %v1564_v3 = vsub.f32 %v6743_v53, %v1277_v44 }
 0x270   : > { %4161 = vpow.bf16 %v2004_v63  ;;  %v1565_v57 = vsub.f32 %v6740_v18, %v1282_v55  ;;  %v1566_v7 = vsub.f32 %v6741_v59, %v1282_v55  ;;  %v1567_v61 = vsub.f32 %v6742_v51, %v1282_v55 }
 0x271   : > { %v4150_v4 = vpop.eup %4149  ;;  %4163 = vpow.bf16 %v2007_v26  ;;  %v1568_v21 = vsub.f32 %v6744_v42, %v1282_v55  ;;  %v6745_v26 = vld [vmem:[#allocation96_spill] sm:$0xff]  ;;  %v6746_v55 = vld [vmem:[#allocation98_spill] sm:$0xff] }
 0x272   : > { %v4152_v40 = vpop.eup %4151  ;;  %v1753_v32 = vpack.c.bf16 %v1565_v57, %v1561_v37  ;;  %v1754_v24 = vpack.c.bf16 %v1566_v7, %v1562_v27  ;;  %v1755_v17 = vpack.c.bf16 %v1567_v61, %v1563_v60  ;;  %v6747_v27 = vld [vmem:[#allocation97_spill] sm:$0xff]  ;;  %v6748_v7 = vld [vmem:[#allocation100_spill] sm:$0xff]  ;;  %v6749_v61 = vld [vmem:[#allocation102_spill] sm:$0xff] }
 0x273   : > { %v4154_v38 = vpop.eup %4153  ;;  %v1756_v62 = vpack.c.bf16 %v1568_v21, %v1564_v3  ;;  %2601 = vmatprep.mubr.bf16.mxu1 %v4152_v40  ;;  %v6750_v3 = vld [vmem:[#allocation101_spill] sm:$0xff]  ;;  %v6751_v21 = vld [vmem:[#allocation99_spill] sm:$0xff] }
 0x274   : > { %v4156_v63 = vpop.eup %4155  ;;  %v2010_v50 = vmul.bf16 1069105081, %v1753_v32  ;;  %v2013_v48 = vmul.bf16 1069105081, %v1754_v24  ;;  %v2016_v45 = vmul.bf16 1069105081, %v1755_v17  ;;  %2602 = vmatmul.mubr.bf16.gmra.mrb[184].mxu1 %v4150_v4 }
 0x275   : > { %v2019_v18 = vmul.bf16 1069105081, %v1756_v62  ;;  %2890 = vmatprep.mubr.bf16.mxu0 %v4156_v63  ;;  %v1287_v59 = vpop.xlane.xlu0 %1286  ;;  %v6752_v32 = vld [vmem:[#allocation103_spill] sm:$0xff] }
 0x276   : > { %4165 = vpow.bf16 %v2010_v50  ;;  %v1569_v44 = vsub.f32 %v6745_v26, %v1287_v59  ;;  %v1570_v37 = vsub.f32 %v6746_v55, %v1287_v59  ;;  %v1571_v60 = vsub.f32 %v6747_v27, %v1287_v59 }
 0x277   : > { %2891 = vmatmul.mubr.bf16.gmra.mrb[184].mxu0 %v4154_v38  ;;  %4167 = vpow.bf16 %v2013_v48  ;;  %v1292_v57 = vpop.xlane.xlu1 %1291  ;;  %v1572_v40 = vsub.f32 %v6751_v21, %v1287_v59  ;;  %v6753_v59 = vld [vmem:[#allocation104_spill] sm:$0xff]  ;;  %v6757_v21 = vld [vmem:[#allocation110_spill] sm:$0xff] }
 0x278   : > { %4169 = vpow.bf16 %v2016_v45  ;;  %v1573_v51 = vsub.f32 %v6748_v7, %v1292_v57  ;;  %v1574_v53 = vsub.f32 %v6749_v61, %v1292_v57  ;;  %v1575_v4 = vsub.f32 %v6750_v3, %v1292_v57  ;;  %v6756_v3 = vld [vmem:[#allocation108_spill] sm:$0xff] }
 0x279   : > { %v4158_v42 = vpop.eup %4157  ;;  %4171 = vpow.bf16 %v2019_v18  ;;  %v1576_v24 = vsub.f32 %v6752_v32, %v1292_v57 }
 0x27a   : > { %v4160_v17 = vpop.eup %4159  ;;  %v1757_v38 = vpack.c.bf16 %v1573_v51, %v1569_v44  ;;  %v1758_v62 = vpack.c.bf16 %v1574_v53, %v1570_v37  ;;  %v1759_v63 = vpack.c.bf16 %v1575_v4, %v1571_v60  ;;  %v6754_v44 = vld [vmem:[#allocation106_spill] sm:$0xff]  ;;  %v6755_v60 = vld [vmem:[#allocation105_spill] sm:$0xff] }
 0x27b   : > { %v4162_v50 = vpop.eup %4161  ;;  %v1760_v48 = vpack.c.bf16 %v1576_v24, %v1572_v40  ;;  %2609 = vmatprep.mubr.bf16.mxu1 %v4160_v17  ;;  %v6758_v40 = vld [vmem:[#allocation109_spill] sm:$0xff]  ;;  %v6759_v17 = vld [vmem:[#allocation107_spill] sm:$0xff] }
 0x27c   : > { %v4164_v45 = vpop.eup %4163  ;;  %v2022_v26 = vmul.bf16 1069105081, %v1757_v38  ;;  %v2025_v55 = vmul.bf16 1069105081, %v1758_v62  ;;  %v2028_v27 = vmul.bf16 1069105081, %v1759_v63  ;;  %2610 = vmatmul.mubr.bf16.gmra.mrb[188].mxu1 %v4158_v42 }
 0x27d   : > { %v2031_v7 = vmul.bf16 1069105081, %v1760_v48  ;;  %2898 = vmatprep.mubr.bf16.mxu0 %v4164_v45 }
 0x27e   : > { %4173 = vpow.bf16 %v2022_v26  ;;  %v1297_v18 = vpop.xlane.xlu0 %1296 }
 0x27f   : > { %2899 = vmatmul.mubr.bf16.gmra.mrb[188].mxu0 %v4162_v50  ;;  %4175 = vpow.bf16 %v2025_v55  ;;  %v1577_v57 = vsub.f32 %v6753_v59, %v1297_v18  ;;  %v1578_v37 = vsub.f32 %v6754_v44, %v1297_v18  ;;  %v1579_v51 = vsub.f32 %v6755_v60, %v1297_v18 }
 0x280   : > { %4177 = vpow.bf16 %v2028_v27  ;;  %v1302_v61 = vpop.xlane.xlu1 %1301  ;;  %v1580_v38 = vsub.f32 %v6759_v17, %v1297_v18 }
 0x281   : > { %v4166_v53 = vpop.eup %4165  ;;  %4179 = vpow.bf16 %v2031_v7  ;;  %v1581_v4 = vsub.f32 %v6756_v3, %v1302_v61  ;;  %v1582_v42 = vsub.f32 %v6757_v21, %v1302_v61  ;;  %v1583_v32 = vsub.f32 %v6758_v40, %v1302_v61 }
 0x282   : > { %v4168_v24 = vpop.eup %4167  ;;  %v1584_v62 = vsub.f32 %v5213_v41, %v1302_v61 }
 0x283   : > { %v4170_v63 = vpop.eup %4169  ;;  %v1761_v50 = vpack.c.bf16 %v1581_v4, %v1577_v57  ;;  %v1762_v48 = vpack.c.bf16 %v1582_v42, %v1578_v37  ;;  %v1763_v45 = vpack.c.bf16 %v1583_v32, %v1579_v51  ;;  %2617 = vmatprep.mubr.bf16.mxu1 %v4168_v24 }
 0x284   : > { %v4172_v26 = vpop.eup %4171  ;;  %v1764_v55 = vpack.c.bf16 %v1584_v62, %v1580_v38  ;;  %2618 = vmatmul.mubr.bf16.gmra.mrb[192].mxu1 %v4166_v53 }
 0x285   : > { %v2034_v27 = vmul.bf16 1069105081, %v1761_v50  ;;  %v2037_v7 = vmul.bf16 1069105081, %v1762_v48  ;;  %v2040_v59 = vmul.bf16 1069105081, %v1763_v45  ;;  %2906 = vmatprep.mubr.bf16.mxu0 %v4172_v26 }
 0x286   : > { %v2043_v44 = vmul.bf16 1069105081, %v1764_v55  ;;  %v1307_v60 = vpop.xlane.xlu0 %1306  ;;  %v6760_v55 = vld [vmem:[#allocation111_spill] sm:$0xff] }
 0x287   : > { %2907 = vmatmul.mubr.bf16.gmra.mrb[192].mxu0 %v4170_v63  ;;  %4181 = vpow.bf16 %v2034_v27  ;;  %v1585_v18 = vsub.f32 %v5228_v8, %v1307_v60  ;;  %v1586_v41 = vsub.f32 %v5232_v9, %v1307_v60  ;;  %v1587_v57 = vsub.f32 %v5230_v10, %v1307_v60 }
 0x288   : > { %4183 = vpow.bf16 %v2037_v7  ;;  %v1312_v37 = vpop.xlane.xlu1 %1311  ;;  %v1588_v21 = vsub.f32 %v5234_v11, %v1307_v60 }
 0x289   : > { %v4174_v51 = vpop.eup %4173  ;;  %4185 = vpow.bf16 %v2040_v59  ;;  %v1589_v61 = vsub.f32 %v5237_v15, %v1312_v37  ;;  %v1590_v53 = vsub.f32 %v5243_v5, %v1312_v37  ;;  %v1591_v3 = vsub.f32 %v5239_v14, %v1312_v37 }
 0x28a   : > { %v4176_v4 = vpop.eup %4175  ;;  %4187 = vpow.bf16 %v2043_v44  ;;  %v1592_v42 = vsub.f32 %v5245_v0, %v1312_v37 }
 0x28b   : > { %v4178_v8 = vpop.eup %4177  ;;  %v1765_v40 = vpack.c.bf16 %v1589_v61, %v1585_v18  ;;  %v1766_v9 = vpack.c.bf16 %v1590_v53, %v1586_v41  ;;  %v1767_v32 = vpack.c.bf16 %v1591_v3, %v1587_v57  ;;  %2625 = vmatprep.mubr.bf16.mxu1 %v4176_v4 }
 0x28c   : > { %v4180_v10 = vpop.eup %4179  ;;  %v1768_v24 = vpack.c.bf16 %v1592_v42, %v1588_v21  ;;  %2626 = vmatmul.mubr.bf16.gmra.mrb[196].mxu1 %v4174_v51 }
 0x28d   : > { %v2046_v17 = vmul.bf16 1069105081, %v1765_v40  ;;  %v2049_v15 = vmul.bf16 1069105081, %v1766_v9  ;;  %v2052_v38 = vmul.bf16 1069105081, %v1767_v32  ;;  %2914 = vmatprep.mubr.bf16.mxu0 %v4180_v10 }
 0x28e   : > { %v2055_v5 = vmul.bf16 1069105081, %v1768_v24  ;;  %v1317_v14 = vpop.xlane.xlu0 %1316 }
 0x28f   : > { %2915 = vmatmul.mubr.bf16.gmra.mrb[196].mxu0 %v4178_v8  ;;  %4189 = vpow.bf16 %v2046_v17  ;;  %v1593_v11 = vsub.f32 %v5258_v19, %v1317_v14  ;;  %v1594_v0 = vsub.f32 %v5264_v20, %v1317_v14  ;;  %v1595_v62 = vsub.f32 %v5260_v22, %v1317_v14 }
 0x290   : > { %4191 = vpow.bf16 %v2049_v15  ;;  %v1322_v63 = vpop.xlane.xlu1 %1321  ;;  %v1596_v27 = vsub.f32 %v6760_v55, %v1317_v14 }
 0x291   : > { %4193 = vpow.bf16 %v2052_v38  ;;  %v1597_v50 = vsub.f32 %v5271_v49, %v1322_v63  ;;  %v1598_v48 = vsub.f32 %v5275_v31, %v1322_v63  ;;  %v1599_v45 = vsub.f32 %v5273_v56, %v1322_v63 }
 0x292   : > { %v4182_v26 = vpop.eup %4181  ;;  %4195 = vpow.bf16 %v2055_v5  ;;  %v1600_v7 = vsub.f32 %v5277_v33, %v1322_v63 }
 0x293   : > { %v4184_v59 = vpop.eup %4183  ;;  %v1769_v19 = vpack.c.bf16 %v1597_v50, %v1593_v11  ;;  %v1770_v44 = vpack.c.bf16 %v1598_v48, %v1594_v0  ;;  %v1771_v20 = vpack.c.bf16 %v1599_v45, %v1595_v62 }
 0x294   : > { %v4186_v60 = vpop.eup %4185  ;;  %v1772_v22 = vpack.c.bf16 %v1600_v7, %v1596_v27  ;;  %2633 = vmatprep.mubr.bf16.mxu1 %v4184_v59 }
 0x295   : > { %v4188_v18 = vpop.eup %4187  ;;  %v2058_v41 = vmul.bf16 1069105081, %v1769_v19  ;;  %v2061_v49 = vmul.bf16 1069105081, %v1770_v44  ;;  %v2064_v57 = vmul.bf16 1069105081, %v1771_v20  ;;  %2634 = vmatmul.mubr.bf16.gmra.mrb[200].mxu1 %v4182_v26  ;;  %v1327_v56 = vpop.xlane.xlu0 %1326 }
 0x296   : > { %v2067_v31 = vmul.bf16 1069105081, %v1772_v22  ;;  %2922 = vmatprep.mubr.bf16.mxu0 %v4188_v18  ;;  %v1601_v33 = vsub.f32 %v5290_v29, %v1327_v56  ;;  %v1602_v37 = vsub.f32 %v5296_v36, %v1327_v56  ;;  %v1603_v51 = vsub.f32 %v5292_v39, %v1327_v56  ;;  %v6761_v44 = vld [vmem:[#allocation114_spill] sm:$0xff] }
 0x297   : > { %4197 = vpow.bf16 %v2058_v41  ;;  %2923 = vmatmul.mubr.bf16.gmra.mrb[200].mxu0 %v4186_v60  ;;  %v1604_v42 = vsub.f32 %v5298_v12, %v1327_v56  ;;  %v6762_v60 = vld [vmem:[#allocation113_spill] sm:$0xff]  ;;  %v6763_v41 = vld [vmem:[#allocation112_spill] sm:$0xff] }
 0x298   : > { %4199 = vpow.bf16 %v2061_v49 }
 0x299   : > { %v1332_v61 = vpop.xlane.xlu1 %1331  ;;  %4201 = vpow.bf16 %v2064_v57  ;;  %v6764_v57 = vld [vmem:[#allocation115_spill] sm:$0xff] }
 0x29a   : > { %v1605_v53 = vsub.f32 %v5303_v13, %v1332_v61  ;;  %v1606_v3 = vsub.f32 %v5307_v34, %v1332_v61  ;;  %v1607_v4 = vsub.f32 %v5305_v2, %v1332_v61  ;;  %v4190_v21 = vpop.eup %4189  ;;  %4203 = vpow.bf16 %v2067_v31 }
 0x29b   : > { %v1608_v8 = vsub.f32 %v5309_v25, %v1332_v61  ;;  %v4192_v40 = vpop.eup %4191 }
 0x29c   : > { %v1773_v29 = vpack.c.bf16 %v1605_v53, %v1601_v33  ;;  %v1774_v9 = vpack.c.bf16 %v1606_v3, %v1602_v37  ;;  %v1775_v36 = vpack.c.bf16 %v1607_v4, %v1603_v51  ;;  %v4194_v32 = vpop.eup %4193  ;;  %2641 = vmatprep.mubr.bf16.mxu1 %v4192_v40 }
 0x29d   : > { %v1776_v39 = vpack.c.bf16 %v1608_v8, %v1604_v42  ;;  %v4196_v10 = vpop.eup %4195  ;;  %2642 = vmatmul.mubr.bf16.gmra.mrb[204].mxu1 %v4190_v21  ;;  %v1337_v2 = vpop.xlane.xlu0 %1336  ;;  %v6765_v21 = vld [vmem:[#allocation6_spill] sm:$0xff]  ;;  %v6766_v8 = vld [vmem:[#allocation5_spill] sm:$0xff] }
 0x29e   : > { %v2070_v24 = vmul.bf16 1069105081, %v1773_v29  ;;  %v2073_v13 = vmul.bf16 1069105081, %v1774_v9  ;;  %v2076_v17 = vmul.bf16 1069105081, %v1775_v36  ;;  %2930 = vmatprep.mubr.bf16.mxu0 %v4196_v10  ;;  %v1609_v12 = vsub.f32 %v5322_v43, %v1337_v2 }
 0x29f   : > { %v2079_v34 = vmul.bf16 1069105081, %v1776_v39  ;;  %2931 = vmatmul.mubr.bf16.gmra.mrb[204].mxu0 %v4194_v32  ;;  %v1610_v25 = vsub.f32 %v5328_v23, %v1337_v2  ;;  %v1611_v15 = vsub.f32 %v5324_v54, %v1337_v2  ;;  %v1612_v62 = vsub.f32 %v5330_v28, %v1337_v2  ;;  %v6767_v29 = vld [vmem:[#allocation116_spill] sm:$0xff]  ;;  %v6768_v32 = vld [vmem:[#allocation117_spill] sm:$0xff]  ;;  %v6769_v10 = vld [vmem:[#allocation119_spill] sm:$0xff] }
 0x2a0   : > { %4205 = vpow.bf16 %v2070_v24  ;;  %v6771_v2 = vld [vmem:[#allocation7_spill] sm:$0xff] }
 0x2a1   : > { %4207 = vpow.bf16 %v2073_v13  ;;  %v1342_v38 = vpop.xlane.xlu1 %1341  ;;  %v6770_v13 = vld [vmem:[#allocation118_spill] sm:$0xff] }
 0x2a2   : > { %4209 = vpow.bf16 %v2076_v17  ;;  %v1613_v5 = vsub.f32 %v5335_v16, %v1342_v38  ;;  %v1614_v14 = vsub.f32 %v5339_v30, %v1342_v38  ;;  %v1615_v11 = vsub.f32 %v5337_v52, %v1342_v38  ;;  %v4198_v0 = vpop.eup %4197 }
 0x2a3   : > { %4211 = vpow.bf16 %v2079_v34  ;;  %v1616_v63 = vsub.f32 %v5341_v47, %v1342_v38  ;;  %v4200_v50 = vpop.eup %4199 }
 0x2a4   : > { %v1777_v43 = vpack.c.bf16 %v1613_v5, %v1609_v12  ;;  %v1778_v48 = vpack.c.bf16 %v1614_v14, %v1610_v25  ;;  %v1779_v23 = vpack.c.bf16 %v1615_v11, %v1611_v15  ;;  %v4202_v45 = vpop.eup %4201  ;;  %2649 = vmatprep.mubr.bf16.mxu1 %v4200_v50  ;;  %v6772_v25 = vld [vmem:[#allocation120_spill] sm:$0xff] }
 0x2a5   : > { %v1780_v54 = vpack.c.bf16 %v1616_v63, %v1612_v62  ;;  %v4204_v26 = vpop.eup %4203  ;;  %2650 = vmatmul.mubr.bf16.gmra.mrb[208].mxu1 %v4198_v0  ;;  %v1347_v52 = vpop.xlane.xlu0 %1346 }
 0x2a6   : > { %v2082_v55 = vmul.bf16 1069105081, %v1777_v43  ;;  %v2085_v16 = vmul.bf16 1069105081, %v1778_v48  ;;  %v2088_v27 = vmul.bf16 1069105081, %v1779_v23  ;;  %2938 = vmatprep.mubr.bf16.mxu0 %v4204_v26  ;;  %v1617_v28 = vsub.f32 %v5354_v58, %v1347_v52 }
 0x2a7   : > { %v2091_v30 = vmul.bf16 1069105081, %v1780_v54  ;;  %2939 = vmatmul.mubr.bf16.gmra.mrb[208].mxu0 %v4202_v45  ;;  %v1618_v47 = vsub.f32 %v5360_v1, %v1347_v52  ;;  %v1619_v7 = vsub.f32 %v5356_v6, %v1347_v52  ;;  %v1620_v49 = vsub.f32 %v6763_v41, %v1347_v52  ;;  %v6773_v54 = vld [vmem:[#allocation8_spill] sm:$0xff] }
 0x2a8   : > { %4213 = vpow.bf16 %v2082_v55  ;;  %v6774_v55 = vld [vmem:[#allocation9_spill] sm:$0xff] }
 0x2a9   : > { %4215 = vpow.bf16 %v2085_v16  ;;  %v1352_v59 = vpop.xlane.xlu1 %1351 }
 0x2aa   : > { %4217 = vpow.bf16 %v2088_v27  ;;  %v1621_v19 = vsub.f32 %v5367_v35, %v1352_v59  ;;  %v1622_v20 = vsub.f32 %v6761_v44, %v1352_v59  ;;  %v1623_v22 = vsub.f32 %v6762_v60, %v1352_v59  ;;  %v6775_v27 = vld [vmem:[#allocation10_spill] sm:$0xff]  ;;  %v6779_v60 = vld [vmem:[#allocation12_spill] sm:$0xff] }
 0x2ab   : > { %v4206_v18 = vpop.eup %4205  ;;  %4219 = vpow.bf16 %v2091_v30  ;;  %v1624_v31 = vsub.f32 %v6764_v57, %v1352_v59 }
 0x2ac   : > { %v4208_v56 = vpop.eup %4207  ;;  %v1781_v58 = vpack.c.bf16 %v1621_v19, %v1617_v28  ;;  %v1782_v33 = vpack.c.bf16 %v1622_v20, %v1618_v47  ;;  %v1783_v1 = vpack.c.bf16 %v1623_v22, %v1619_v7  ;;  %v6776_v28 = vld [vmem:[#allocation14_spill] sm:$0xff]  ;;  %v6777_v7 = vld [vmem:[#allocation11_spill] sm:$0xff]  ;;  %v6778_v19 = vld [vmem:[#allocation13_spill] sm:$0xff] }
 0x2ad   : > { %v4210_v37 = vpop.eup %4209  ;;  %v1784_v6 = vpack.c.bf16 %v1624_v31, %v1620_v49  ;;  %2657 = vmatprep.mubr.bf16.mxu1 %v4208_v56  ;;  %v1357_v4 = vpop.xlane.xlu0 %1356 }
 0x2ae   : > { %v4212_v51 = vpop.eup %4211  ;;  %v2094_v61 = vmul.bf16 1069105081, %v1781_v58  ;;  %v2097_v35 = vmul.bf16 1069105081, %v1782_v33  ;;  %v2100_v53 = vmul.bf16 1069105081, %v1783_v1  ;;  %2658 = vmatmul.mubr.bf16.gmra.mrb[212].mxu1 %v4206_v18  ;;  %v1625_v42 = vsub.f32 %v6765_v21, %v1357_v4 }
 0x2af   : > { %v2103_v3 = vmul.bf16 1069105081, %v1784_v6  ;;  %2946 = vmatprep.mubr.bf16.mxu0 %v4212_v51  ;;  %v1626_v40 = vsub.f32 %v6766_v8, %v1357_v4  ;;  %v1627_v9 = vsub.f32 %v6767_v29, %v1357_v4  ;;  %v1628_v12 = vsub.f32 %v6771_v2, %v1357_v4  ;;  %v6780_v18 = vld [vmem:[#allocation15_spill] sm:$0xff]  ;;  %v6782_v4 = vld [vmem:[#allocation17_spill] sm:$0xff]  ;;  %v6784_v29 = vld [vmem:[#allocation22_spill] sm:$0xff] }
 0x2b0   : > { %4221 = vpow.bf16 %v2094_v61  ;;  %2947 = vmatmul.mubr.bf16.gmra.mrb[212].mxu0 %v4210_v37 }
 0x2b1   : > { %4223 = vpow.bf16 %v2097_v35  ;;  %v1362_v36 = vpop.xlane.xlu1 %1361 }
 0x2b2   : > { %4225 = vpow.bf16 %v2100_v53  ;;  %v1629_v39 = vsub.f32 %v6768_v32, %v1362_v36  ;;  %v1630_v24 = vsub.f32 %v6769_v10, %v1362_v36  ;;  %v1631_v17 = vsub.f32 %v6770_v13, %v1362_v36  ;;  %v6781_v53 = vld [vmem:[#allocation16_spill] sm:$0xff] }
 0x2b3   : > { %v4214_v34 = vpop.eup %4213  ;;  %4227 = vpow.bf16 %v2103_v3  ;;  %v1632_v15 = vsub.f32 %v6772_v25, %v1362_v36  ;;  %v6785_v36 = vld [vmem:[#allocation19_spill] sm:$0xff]  ;;  %v6787_v13 = vld [vmem:[#allocation20_spill] sm:$0xff] }
 0x2b4   : > { %v4216_v38 = vpop.eup %4215  ;;  %v1785_v5 = vpack.c.bf16 %v1629_v39, %v1625_v42  ;;  %v1786_v14 = vpack.c.bf16 %v1630_v24, %v1626_v40  ;;  %v1787_v11 = vpack.c.bf16 %v1631_v17, %v1627_v9  ;;  %v6783_v42 = vld [vmem:[#allocation18_spill] sm:$0xff]  ;;  %v6786_v39 = vld [vmem:[#allocation21_spill] sm:$0xff] }
 0x2b5   : > { %v4218_v0 = vpop.eup %4217  ;;  %v1788_v62 = vpack.c.bf16 %v1632_v15, %v1628_v12  ;;  %2665 = vmatprep.mubr.bf16.mxu1 %v4216_v38  ;;  %v1367_v45 = vpop.xlane.xlu0 %1366 }
 0x2b6   : > { %v4220_v63 = vpop.eup %4219  ;;  %v2106_v50 = vmul.bf16 1069105081, %v1785_v5  ;;  %v2109_v43 = vmul.bf16 1069105081, %v1786_v14  ;;  %v2112_v48 = vmul.bf16 1069105081, %v1787_v11  ;;  %2666 = vmatmul.mubr.bf16.gmra.mrb[216].mxu1 %v4214_v34  ;;  %v1633_v26 = vsub.f32 %v6773_v54, %v1367_v45 }
 0x2b7   : > { %v2115_v23 = vmul.bf16 1069105081, %v1788_v62  ;;  %2954 = vmatprep.mubr.bf16.mxu0 %v4220_v63  ;;  %v1634_v16 = vsub.f32 %v6774_v55, %v1367_v45  ;;  %v1635_v30 = vsub.f32 %v6775_v27, %v1367_v45  ;;  %v1636_v22 = vsub.f32 %v6779_v60, %v1367_v45  ;;  %v6788_v34 = vld [vmem:[#allocation23_spill] sm:$0xff]  ;;  %v6790_v45 = vld [vmem:[#allocation25_spill] sm:$0xff]  ;;  %v6792_v27 = vld [vmem:[#allocation30_spill] sm:$0xff] }
 0x2b8   : > { %4229 = vpow.bf16 %v2106_v50  ;;  %2955 = vmatmul.mubr.bf16.gmra.mrb[216].mxu0 %v4218_v0 }
 0x2b9   : > { %4231 = vpow.bf16 %v2109_v43  ;;  %v1372_v52 = vpop.xlane.xlu1 %1371 }
 0x2ba   : > { %4233 = vpow.bf16 %v2112_v48  ;;  %v1637_v47 = vsub.f32 %v6776_v28, %v1372_v52  ;;  %v1638_v59 = vsub.f32 %v6777_v7, %v1372_v52  ;;  %v1639_v44 = vsub.f32 %v6778_v19, %v1372_v52  ;;  %v6789_v48 = vld [vmem:[#allocation24_spill] sm:$0xff] }
 0x2bb   : > { %v4222_v20 = vpop.eup %4221  ;;  %4235 = vpow.bf16 %v2115_v23  ;;  %v1640_v41 = vsub.f32 %v6780_v18, %v1372_v52  ;;  %v6793_v52 = vld [vmem:[#allocation27_spill] sm:$0xff]  ;;  %v6795_v19 = vld [vmem:[#allocation28_spill] sm:$0xff] }
 0x2bc   : > { %v4224_v49 = vpop.eup %4223  ;;  %v1789_v57 = vpack.c.bf16 %v1637_v47, %v1633_v26  ;;  %v1790_v31 = vpack.c.bf16 %v1638_v59, %v1634_v16  ;;  %v1791_v56 = vpack.c.bf16 %v1639_v44, %v1635_v30  ;;  %v6791_v26 = vld [vmem:[#allocation26_spill] sm:$0xff]  ;;  %v6794_v47 = vld [vmem:[#allocation29_spill] sm:$0xff] }
 0x2bd   : > { %v4226_v58 = vpop.eup %4225  ;;  %v1792_v33 = vpack.c.bf16 %v1640_v41, %v1636_v22  ;;  %2673 = vmatprep.mubr.bf16.mxu1 %v4224_v49  ;;  %v1377_v35 = vpop.xlane.xlu0 %1376 }
 0x2be   : > { %v4228_v1 = vpop.eup %4227  ;;  %v2118_v37 = vmul.bf16 1069105081, %v1789_v57  ;;  %v2121_v6 = vmul.bf16 1069105081, %v1790_v31  ;;  %v2124_v51 = vmul.bf16 1069105081, %v1791_v56  ;;  %2674 = vmatmul.mubr.bf16.gmra.mrb[220].mxu1 %v4222_v20  ;;  %v1641_v3 = vsub.f32 %v6781_v53, %v1377_v35 }
 0x2bf   : > { %v2127_v61 = vmul.bf16 1069105081, %v1792_v33  ;;  %2962 = vmatprep.mubr.bf16.mxu0 %v4228_v1  ;;  %v1642_v21 = vsub.f32 %v6782_v4, %v1377_v35  ;;  %v1643_v8 = vsub.f32 %v6783_v42, %v1377_v35  ;;  %v1644_v17 = vsub.f32 %v6787_v13, %v1377_v35  ;;  %v6796_v20 = vld [vmem:[#allocation31_spill] sm:$0xff]  ;;  %v6798_v35 = vld [vmem:[#allocation33_spill] sm:$0xff]  ;;  %v6800_v42 = vld [vmem:[#allocation38_spill] sm:$0xff] }
 0x2c0   : > { %4237 = vpow.bf16 %v2118_v37  ;;  %2963 = vmatmul.mubr.bf16.gmra.mrb[220].mxu0 %v4226_v58 }
 0x2c1   : > { %4239 = vpow.bf16 %v2121_v6  ;;  %v1382_v40 = vpop.xlane.xlu1 %1381 }
 0x2c2   : > { %4241 = vpow.bf16 %v2124_v51  ;;  %v1645_v9 = vsub.f32 %v6784_v29, %v1382_v40  ;;  %v1646_v32 = vsub.f32 %v6785_v36, %v1382_v40  ;;  %v1647_v10 = vsub.f32 %v6786_v39, %v1382_v40  ;;  %v6797_v51 = vld [vmem:[#allocation32_spill] sm:$0xff] }
 0x2c3   : > { %v4230_v24 = vpop.eup %4229  ;;  %4243 = vpow.bf16 %v2127_v61  ;;  %v1648_v2 = vsub.f32 %v6788_v34, %v1382_v40  ;;  %v6801_v40 = vld [vmem:[#allocation35_spill] sm:$0xff]  ;;  %v6803_v39 = vld [vmem:[#allocation36_spill] sm:$0xff] }
 0x2c4   : > { %v4232_v12 = vpop.eup %4231  ;;  %v1793_v25 = vpack.c.bf16 %v1645_v9, %v1641_v3  ;;  %v1794_v15 = vpack.c.bf16 %v1646_v32, %v1642_v21  ;;  %v1795_v38 = vpack.c.bf16 %v1647_v10, %v1643_v8  ;;  %v6799_v3 = vld [vmem:[#allocation34_spill] sm:$0xff]  ;;  %v6802_v9 = vld [vmem:[#allocation37_spill] sm:$0xff] }
 0x2c5   : > { %v4234_v5 = vpop.eup %4233  ;;  %v1796_v14 = vpack.c.bf16 %v1648_v2, %v1644_v17  ;;  %2681 = vmatprep.mubr.bf16.mxu1 %v4232_v12  ;;  %v1387_v43 = vpop.xlane.xlu0 %1386 }
 0x2c6   : > { %v4236_v11 = vpop.eup %4235  ;;  %v2130_v0 = vmul.bf16 1069105081, %v1793_v25  ;;  %v2133_v62 = vmul.bf16 1069105081, %v1794_v15  ;;  %v2136_v63 = vmul.bf16 1069105081, %v1795_v38  ;;  %2682 = vmatmul.mubr.bf16.gmra.mrb[224].mxu1 %v4230_v24  ;;  %v1649_v23 = vsub.f32 %v6789_v48, %v1387_v43 }
 0x2c7   : > { %v2139_v50 = vmul.bf16 1069105081, %v1796_v14  ;;  %2970 = vmatprep.mubr.bf16.mxu0 %v4236_v11  ;;  %v1650_v54 = vsub.f32 %v6790_v45, %v1387_v43  ;;  %v1651_v55 = vsub.f32 %v6791_v26, %v1387_v43  ;;  %v1652_v44 = vsub.f32 %v6795_v19, %v1387_v43  ;;  %v6804_v24 = vld [vmem:[#allocation39_spill] sm:$0xff]  ;;  %v6806_v48 = vld [vmem:[#allocation41_spill] sm:$0xff]  ;;  %v6807_v45 = vld [vmem:[#allocation42_spill] sm:$0xff] }
 0x2c8   : > { %4245 = vpow.bf16 %v2130_v0  ;;  %2971 = vmatmul.mubr.bf16.gmra.mrb[224].mxu0 %v4234_v5 }
 0x2c9   : > { %4247 = vpow.bf16 %v2133_v62  ;;  %v1392_v16 = vpop.xlane.xlu1 %1391 }
 0x2ca   : > { %4249 = vpow.bf16 %v2136_v63  ;;  %v1653_v30 = vsub.f32 %v6792_v27, %v1392_v16  ;;  %v1654_v28 = vsub.f32 %v6793_v52, %v1392_v16  ;;  %v1655_v7 = vsub.f32 %v6794_v47, %v1392_v16  ;;  %v6808_v27 = vld [vmem:[#allocation46_spill] sm:$0xff]  ;;  %v6809_v52 = vld [vmem:[#allocation43_spill] sm:$0xff]  ;;  %v6810_v47 = vld [vmem:[#allocation45_spill] sm:$0xff] }
 0x2cb   : > { %v4238_v59 = vpop.eup %4237  ;;  %4251 = vpow.bf16 %v2139_v50  ;;  %v1656_v60 = vsub.f32 %v6796_v20, %v1392_v16  ;;  %v6805_v50 = vld [vmem:[#allocation40_spill] sm:$0xff] }
 0x2cc   : > { %v4240_v22 = vpop.eup %4239  ;;  %v1797_v18 = vpack.c.bf16 %v1653_v30, %v1649_v23  ;;  %v1798_v41 = vpack.c.bf16 %v1654_v28, %v1650_v54  ;;  %v1799_v49 = vpack.c.bf16 %v1655_v7, %v1651_v55 }
 0x2cd   : > { %v4242_v57 = vpop.eup %4241  ;;  %v1800_v31 = vpack.c.bf16 %v1656_v60, %v1652_v44  ;;  %2689 = vmatprep.mubr.bf16.mxu1 %v4240_v22  ;;  %v1397_v6 = vpop.xlane.xlu0 %1396  ;;  %v6811_v44 = vld [vmem:[#allocation44_spill] sm:$0xff] }
 0x2ce   : > { %v4244_v56 = vpop.eup %4243  ;;  %v2142_v58 = vmul.bf16 1069105081, %v1797_v18  ;;  %v2145_v33 = vmul.bf16 1069105081, %v1798_v41  ;;  %v2148_v1 = vmul.bf16 1069105081, %v1799_v49  ;;  %2690 = vmatmul.mubr.bf16.gmra.mrb[228].mxu1 %v4238_v59  ;;  %v1657_v61 = vsub.f32 %v6797_v51, %v1397_v6 }
 0x2cf   : > { %v2151_v37 = vmul.bf16 1069105081, %v1800_v31  ;;  %2978 = vmatprep.mubr.bf16.mxu0 %v4244_v56  ;;  %v1658_v53 = vsub.f32 %v6798_v35, %v1397_v6  ;;  %v1659_v4 = vsub.f32 %v6799_v3, %v1397_v6  ;;  %v1660_v10 = vsub.f32 %v6803_v39, %v1397_v6  ;;  %v6812_v18 = vld [vmem:[#allocation47_spill] sm:$0xff] }
 0x2d0   : > { %4253 = vpow.bf16 %v2142_v58  ;;  %2979 = vmatmul.mubr.bf16.gmra.mrb[228].mxu0 %v4242_v57 }
 0x2d1   : > { %4255 = vpow.bf16 %v2145_v33  ;;  %v1402_v21 = vpop.xlane.xlu1 %1401 }
 0x2d2   : > { %4257 = vpow.bf16 %v2148_v1  ;;  %v1661_v8 = vsub.f32 %v6800_v42, %v1402_v21  ;;  %v1662_v29 = vsub.f32 %v6801_v40, %v1402_v21  ;;  %v1663_v36 = vsub.f32 %v6802_v9, %v1402_v21 }
 0x2d3   : > { %v4246_v32 = vpop.eup %4245  ;;  %4259 = vpow.bf16 %v2151_v37  ;;  %v1664_v13 = vsub.f32 %v6804_v24, %v1402_v21 }
 0x2d4   : > { %v4248_v17 = vpop.eup %4247  ;;  %v1801_v34 = vpack.c.bf16 %v1661_v8, %v1657_v61  ;;  %v1802_v2 = vpack.c.bf16 %v1662_v29, %v1658_v53  ;;  %v1803_v12 = vpack.c.bf16 %v1663_v36, %v1659_v4  ;;  %v6813_v8 = vld [vmem:[#allocation48_spill] sm:$0xff]  ;;  %v6814_v29 = vld [vmem:[#allocation49_spill] sm:$0xff]  ;;  %v6815_v36 = vld [vmem:[#allocation50_spill] sm:$0xff] }
 0x2d5   : > { %v4250_v25 = vpop.eup %4249  ;;  %v1804_v15 = vpack.c.bf16 %v1664_v13, %v1660_v10  ;;  %2697 = vmatprep.mubr.bf16.mxu1 %v4248_v17  ;;  %v1407_v62 = vpop.xlane.xlu0 %1406  ;;  %v6816_v13 = vld [vmem:[#allocation54_spill] sm:$0xff] }
 0x2d6   : > { %v4252_v38 = vpop.eup %4251  ;;  %v2154_v5 = vmul.bf16 1069105081, %v1801_v34  ;;  %v2157_v14 = vmul.bf16 1069105081, %v1802_v2  ;;  %v2160_v11 = vmul.bf16 1069105081, %v1803_v12  ;;  %2698 = vmatmul.mubr.bf16.gmra.mrb[232].mxu1 %v4246_v32  ;;  %v1665_v43 = vsub.f32 %v6805_v50, %v1407_v62 }
 0x2d7   : > { %v2163_v0 = vmul.bf16 1069105081, %v1804_v15  ;;  %2986 = vmatprep.mubr.bf16.mxu0 %v4252_v38  ;;  %v2491_v63 = vpop.f32.mrb[128].mxu1  ;;  %v1666_v23 = vsub.f32 %v6806_v48, %v1407_v62  ;;  %v1667_v54 = vsub.f32 %v6807_v45, %v1407_v62  ;;  %v1668_v20 = vsub.f32 %v6811_v44, %v1407_v62  ;;  %v6817_v34 = vld [vmem:[#allocation51_spill] sm:$0xff]  ;;  %v6818_v12 = vld [vmem:[#allocation53_spill] sm:$0xff] }
 0x2d8   : > { %4261 = vpow.bf16 %v2154_v5  ;;  %2987 = vmatmul.mubr.bf16.gmra.mrb[232].mxu0 %v4250_v25  ;;  %v2493_v55 = vpop.f32.mrb[129].mxu1  ;;  %v6819_v5 = vld [vmem:[#allocation52_spill] sm:$0xff]  ;;  %v6820_v62 = vld [vmem:[#allocation55_spill] sm:$0xff] }
 0x2d9   : > { %4263 = vpow.bf16 %v2157_v14  ;;  %v1412_v26 = vpop.xlane.xlu1 %1411  ;;  %v2494_v59 = vpop.f32.mrb[130].mxu1 }
 0x2da   : > { %4265 = vpow.bf16 %v2160_v11  ;;  %v2780_v16 = vpop.f32.mrb[128].mxu0  ;;  %v1669_v30 = vsub.f32 %v6808_v27, %v1412_v26  ;;  %v1670_v28 = vsub.f32 %v6809_v52, %v1412_v26  ;;  %v1671_v7 = vsub.f32 %v6810_v47, %v1412_v26  ;;  %v2496_v49 = vpop.f32.mrb[131].mxu1 }
 0x2db   : > { %v4254_v19 = vpop.eup %4253  ;;  %4267 = vpow.bf16 %v2163_v0  ;;  %v5772_v60 = vadd.f32 %v2780_v16, %v2491_v63  ;;  %v2782_v22 = vpop.f32.mrb[129].mxu0  ;;  %v1672_v41 = vsub.f32 %v6812_v18, %v1412_v26 }
 0x2dc   : > { %v4256_v57 = vpop.eup %4255  ;;  %v1805_v31 = vpack.c.bf16 %v1669_v30, %v1665_v43  ;;  %v1806_v56 = vpack.c.bf16 %v1670_v28, %v1666_v23  ;;  %v1807_v58 = vpack.c.bf16 %v1671_v7, %v1667_v54  ;;  %v2783_v33 = vpop.f32.mrb[130].mxu0  ;;  %v6821_v22 = vld [vmem:[#allocation56_spill] sm:$0xff] }
 0x2dd   : > { %v4258_v1 = vpop.eup %4257  ;;  %4269 = vrcp.f32 %v5772_v60  ;;  %v1808_v37 = vpack.c.bf16 %v1672_v41, %v1668_v20  ;;  %v5776_v6 = vadd.f32 %v2783_v33, %v2494_v59  ;;  %v2785_v51 = vpop.f32.mrb[131].mxu0  ;;  %2705 = vmatprep.mubr.bf16.mxu1 %v4256_v57  ;;  %v6822_v41 = vld [vmem:[#allocation57_spill] sm:$0xff]  ;;  %v6823_v57 = vld [vmem:[#allocation58_spill] sm:$0xff] }
 0x2de   : > { %v4260_v61 = vpop.eup %4259  ;;  %v2166_v35 = vmul.bf16 1069105081, %v1805_v31  ;;  %v2169_v53 = vmul.bf16 1069105081, %v1806_v56  ;;  %v2172_v3 = vmul.bf16 1069105081, %v1807_v58  ;;  %2706 = vmatmul.mubr.bf16.gmra.mrb[236].mxu1 %v4254_v19  ;;  %v1417_v21 = vpop.xlane.xlu0 %1416 }
 0x2df   : > { %v2175_v4 = vmul.bf16 1069105081, %v1808_v37  ;;  %4271 = vrcp.f32 %v5776_v6  ;;  %2994 = vmatprep.mubr.bf16.mxu0 %v4260_v61  ;;  %v2499_v42 = vpop.f32.mrb[132].mxu1  ;;  %v1673_v40 = vsub.f32 %v6813_v8, %v1417_v21  ;;  %v1674_v9 = vsub.f32 %v6814_v29, %v1417_v21  ;;  %v6825_v51 = vld [vmem:[#allocation59_spill] sm:$0xff] }
 0x2e0   : > { %4273 = vpow.bf16 %v2166_v35  ;;  %2995 = vmatmul.mubr.bf16.gmra.mrb[236].mxu0 %v4258_v1  ;;  %v1675_v32 = vsub.f32 %v6815_v36, %v1417_v21  ;;  %v2501_v10 = vpop.f32.mrb[133].mxu1  ;;  %v1676_v14 = vsub.f32 %v6819_v5, %v1417_v21  ;;  %v6824_v1 = vld [vmem:[#allocation62_spill] sm:$0xff]  ;;  %v6826_v35 = vld [vmem:[#allocation61_spill] sm:$0xff]  ;;  %v6827_v21 = vld [vmem:[#allocation60_spill] sm:$0xff] }
 0x2e1   : > { %4275 = vpow.bf16 %v2169_v53  ;;  %v1422_v39 = vpop.xlane.xlu1 %1421  ;;  %v2502_v15 = vpop.f32.mrb[134].mxu1 }
 0x2e2   : > { %4277 = vpow.bf16 %v2172_v3  ;;  %v2788_v24 = vpop.f32.mrb[132].mxu0  ;;  %v1677_v17 = vsub.f32 %v6816_v13, %v1422_v39  ;;  %v1678_v2 = vsub.f32 %v6817_v34, %v1422_v39  ;;  %v1679_v25 = vsub.f32 %v6818_v12, %v1422_v39  ;;  %v2504_v50 = vpop.f32.mrb[135].mxu1 }
 0x2e3   : > { %v4262_v38 = vpop.eup %4261  ;;  %4279 = vpow.bf16 %v2175_v4  ;;  %v5786_v11 = vadd.f32 %v2788_v24, %v2499_v42  ;;  %v2790_v0 = vpop.f32.mrb[133].mxu0  ;;  %v1680_v63 = vsub.f32 %v6820_v62, %v1422_v39 }
 0x2e4   : > { %v4264_v43 = vpop.eup %4263  ;;  %v1809_v48 = vpack.c.bf16 %v1677_v17, %v1673_v40  ;;  %v1810_v23 = vpack.c.bf16 %v1678_v2, %v1674_v9  ;;  %v1811_v45 = vpack.c.bf16 %v1679_v25, %v1675_v32  ;;  %v2791_v54 = vpop.f32.mrb[134].mxu0 }
 0x2e5   : > { %v4266_v26 = vpop.eup %4265  ;;  %4281 = vrcp.f32 %v5786_v11  ;;  %v1812_v55 = vpack.c.bf16 %v1680_v63, %v1676_v14  ;;  %v5790_v16 = vadd.f32 %v2791_v54, %v2502_v15  ;;  %v2793_v27 = vpop.f32.mrb[135].mxu0  ;;  %2713 = vmatprep.mubr.bf16.mxu1 %v4264_v43 }
 0x2e6   : > { %v4268_v30 = vpop.eup %4267  ;;  %v2178_v52 = vmul.bf16 1069105081, %v1809_v48  ;;  %v2181_v28 = vmul.bf16 1069105081, %v1810_v23  ;;  %v2184_v47 = vmul.bf16 1069105081, %v1811_v45  ;;  %2714 = vmatmul.mubr.bf16.gmra.mrb[240].mxu1 %v4262_v38  ;;  %v1427_v19 = vpop.xlane.xlu0 %1426 }
 0x2e7   : > { %v4270_v7 = vpop.eup %4269  ;;  %v2187_v59 = vmul.bf16 1069105081, %v1812_v55  ;;  %4283 = vrcp.f32 %v5790_v16  ;;  %3002 = vmatprep.mubr.bf16.mxu0 %v4268_v30  ;;  %v2507_v44 = vpop.f32.mrb[136].mxu1  ;;  %v1681_v18 = vsub.f32 %v6821_v22, %v1427_v19  ;;  %v1682_v49 = vsub.f32 %v6822_v41, %v1427_v19 }
 0x2e8   : > { %4285 = vpow.bf16 %v2178_v52  ;;  %3003 = vmatmul.mubr.bf16.gmra.mrb[240].mxu0 %v4266_v26  ;;  %3101 = vperm.xlu0 %4002, %v4270_v7   ;;  %v1683_v31 = vsub.f32 %v6823_v57, %v1427_v19  ;;  %v2509_v56 = vpop.f32.mrb[137].mxu1  ;;  %v1684_v42 = vsub.f32 %v6827_v21, %v1427_v19 }
 0x2e9   : > { %v4272_v20 = vpop.eup %4271  ;;  %4287 = vpow.bf16 %v2181_v28  ;;  %v1432_v58 = vpop.xlane.xlu1 %1431 }
 0x2ea   : > { %4289 = vpow.bf16 %v2184_v47  ;;  %v2796_v33 = vpop.f32.mrb[136].mxu0  ;;  %3106 = vperm.xlu1 %4003, %v4272_v20   ;;  %v1685_v37 = vsub.f32 %v6824_v1, %v1432_v58  ;;  %v1686_v61 = vsub.f32 %v6825_v51, %v1432_v58  ;;  %v1687_v53 = vsub.f32 %v6826_v35, %v1432_v58  ;;  %v2510_v3 = vpop.f32.mrb[138].mxu1 }
 0x2eb   : > { %v4274_v4 = vpop.eup %4273  ;;  %4291 = vpow.bf16 %v2187_v59  ;;  %v5800_v8 = vadd.f32 %v2796_v33, %v2507_v44  ;;  %v2798_v40 = vpop.f32.mrb[137].mxu0  ;;  %v1688_v29 = vsub.f32 %v5629_v46, %v1432_v58 }
 0x2ec   : > { %v2512_v9 = vpop.f32.mrb[139].mxu1  ;;  %v4276_v36 = vpop.eup %4275  ;;  %v1813_v32 = vpack.c.bf16 %v1685_v37, %v1681_v18  ;;  %v1814_v39 = vpack.c.bf16 %v1686_v61, %v1682_v49  ;;  %v1815_v10 = vpack.c.bf16 %v1687_v53, %v1683_v31 }
 0x2ed   : > { %v2799_v24 = vpop.f32.mrb[138].mxu0  ;;  %v4278_v13 = vpop.eup %4277  ;;  %4293 = vrcp.f32 %v5800_v8  ;;  %v1816_v17 = vpack.c.bf16 %v1688_v29, %v1684_v42  ;;  %2721 = vmatprep.mubr.bf16.mxu1 %v4276_v36 }
 0x2ee   : > { %v5804_v34 = vadd.f32 %v2799_v24, %v2510_v3  ;;  %v2801_v2 = vpop.f32.mrb[139].mxu0  ;;  %v4280_v12 = vpop.eup %4279  ;;  %v2190_v25 = vmul.bf16 1069105081, %v1813_v32  ;;  %v2193_v15 = vmul.bf16 1069105081, %v1814_v39  ;;  %2722 = vmatmul.mubr.bf16.gmra.mrb[244].mxu1 %v4274_v4 }
 0x2ef   : > { %v2196_v38 = vmul.bf16 1069105081, %v1815_v10  ;;  %v4282_v46 = vpop.eup %4281  ;;  %v2199_v5 = vmul.bf16 1069105081, %v1816_v17  ;;  %3010 = vmatprep.mubr.bf16.mxu0 %v4280_v12  ;;  %v2515_v14 = vpop.f32.mrb[140].mxu1 }
 0x2f0   : > { %4295 = vrcp.f32 %v5804_v34  ;;  %3011 = vmatmul.mubr.bf16.gmra.mrb[244].mxu0 %v4278_v13  ;;  %3111 = vperm.xlu1 %4003, %v4282_v46   ;;  %v2517_v62 = vpop.f32.mrb[141].mxu1 }
 0x2f1   : > { %4297 = vpow.bf16 %v2190_v25  ;;  %v4284_v0 = vpop.eup %4283  ;;  %v2518_v50 = vpop.f32.mrb[142].mxu1 }
 0x2f2   : > { %4299 = vpow.bf16 %v2193_v15  ;;  %v2804_v63 = vpop.f32.mrb[140].mxu0  ;;  %v2520_v45 = vpop.f32.mrb[143].mxu1 }
 0x2f3   : > { %4301 = vpow.bf16 %v2196_v38  ;;  %v4286_v43 = vpop.eup %4285  ;;  %v5807_v48 = vadd.f32 %v2804_v63, %v2515_v14  ;;  %v2806_v23 = vpop.f32.mrb[141].mxu0 }
 0x2f4   : > { %4303 = vpow.bf16 %v2199_v5  ;;  %v4288_v54 = vpop.eup %4287  ;;  %v2807_v26 = vpop.f32.mrb[142].mxu0  ;;  %3116 = vperm.xlu1 %4003, %v4284_v0  }
 0x2f5   : > { %v4290_v55 = vpop.eup %4289  ;;  %4305 = vrcp.f32 %v5807_v48  ;;  %v5810_v27 = vadd.f32 %v2807_v26, %v2518_v50  ;;  %v2809_v30 = vpop.f32.mrb[143].mxu0  ;;  %2729 = vmatprep.mubr.bf16.mxu1 %v4288_v54 }
 0x2f6   : > { %v4292_v52 = vpop.eup %4291  ;;  %2730 = vmatmul.mubr.bf16.gmra.mrb[248].mxu1 %v4286_v43 }
 0x2f7   : > { %v4294_v28 = vpop.eup %4293  ;;  %3018 = vmatprep.mubr.bf16.mxu0 %v4292_v52  ;;  %v2523_v47 = vpop.f32.mrb[144].mxu1  ;;  %4307 = vrcp.f32 %v5810_v27 }
 0x2f8   : > { %3019 = vmatmul.mubr.bf16.gmra.mrb[248].mxu0 %v4290_v55  ;;  %3121 = vperm.xlu1 %4003, %v4294_v28   ;;  %v2525_v59 = vpop.f32.mrb[145].mxu1 }
 0x2f9   : > { %v2526_v44 = vpop.f32.mrb[146].mxu1 }
 0x2fa   : > { %v4296_v7 = vpop.eup %4295  ;;  %v2812_v19 = vpop.f32.mrb[144].mxu0 }
 0x2fb   : > { %v5813_v22 = vadd.f32 %v2812_v19, %v2523_v47  ;;  %v2814_v18 = vpop.f32.mrb[145].mxu0  ;;  %v2528_v41 = vpop.f32.mrb[147].mxu1 }
 0x2fc   : > { %v4298_v20 = vpop.eup %4297  ;;  %v2815_v57 = vpop.f32.mrb[146].mxu0  ;;  %3126 = vperm.xlu1 %4003, %v4296_v7  }
 0x2fd   : > { %v4300_v49 = vpop.eup %4299  ;;  %4309 = vrcp.f32 %v5813_v22  ;;  %v5816_v56 = vadd.f32 %v2815_v57, %v2526_v44  ;;  %v2817_v58 = vpop.f32.mrb[147].mxu0 }
 0x2fe   : > { %v4302_v31 = vpop.eup %4301  ;;  %2737 = vmatprep.mubr.bf16.mxu1 %v4300_v49 }
 0x2ff   : > { %v4304_v33 = vpop.eup %4303  ;;  %2738 = vmatmul.mubr.bf16.gmra.mrb[252].mxu1 %v4298_v20  ;;  %4311 = vrcp.f32 %v5816_v56  ;;  %v2531_v37 = vpop.f32.mrb[148].mxu1 }
 0x300   : > { %v4306_v1 = vpop.eup %4305  ;;  %3026 = vmatprep.mubr.bf16.mxu0 %v4304_v33  ;;  %v2533_v51 = vpop.f32.mrb[149].mxu1 }
 0x301   : > { %3027 = vmatmul.mubr.bf16.gmra.mrb[252].mxu0 %v4302_v31  ;;  %3131 = vperm.xlu1 %4003, %v4306_v1   ;;  %v2534_v35 = vpop.f32.mrb[150].mxu1  ;;  %v4308_v53 = vpop.eup %4307 }
 0x302   : > { %v2820_v61 = vpop.f32.mrb[148].mxu0  ;;  %v2536_v21 = vpop.f32.mrb[151].mxu1 }
 0x303   : > { %v5819_v3 = vadd.f32 %v2820_v61, %v2531_v37  ;;  %v2822_v4 = vpop.f32.mrb[149].mxu0 }
 0x304   : > { %v2823_v42 = vpop.f32.mrb[150].mxu0 }
 0x305   : > { %3136 = vperm.xlu1 %4003, %v4308_v53   ;;  %4313 = vrcp.f32 %v5819_v3  ;;  %v5822_v40 = vadd.f32 %v2823_v42, %v2534_v35  ;;  %v2825_v29 = vpop.f32.mrb[151].mxu0 }
 0x307   : > { %v4310_v9 = vpop.eup %4309  ;;  %4315 = vrcp.f32 %v5822_v40  ;;  %v2539_v36 = vpop.f32.mrb[152].mxu1 }
 0x308   : > { %v2541_v39 = vpop.f32.mrb[153].mxu1 }
 0x309   : > { %3141 = vperm.xlu1 %4003, %v4310_v9   ;;  %v4312_v32 = vpop.eup %4311  ;;  %v2542_v24 = vpop.f32.mrb[154].mxu1 }
 0x30a   : > { %v2828_v10 = vpop.f32.mrb[152].mxu0  ;;  %3146 = vperm.xlu0 %4002, %v4312_v32   ;;  %v2544_v2 = vpop.f32.mrb[155].mxu1 }
 0x30b   : > { %v5825_v13 = vadd.f32 %v2828_v10, %v2539_v36  ;;  %v2830_v17 = vpop.f32.mrb[153].mxu0 }
 0x30c   : > { %v2831_v12 = vpop.f32.mrb[154].mxu0 }
 0x30d   : > { %4317 = vrcp.f32 %v5825_v13  ;;  %v5828_v25 = vadd.f32 %v2831_v12, %v2542_v24  ;;  %v2833_v15 = vpop.f32.mrb[155].mxu0 }
 0x30f   : > { %v4314_v38 = vpop.eup %4313  ;;  %4319 = vrcp.f32 %v5828_v25  ;;  %v2547_v46 = vpop.f32.mrb[156].mxu1 }
 0x310   : > { %3151 = vperm.xlu1 %4003, %v4314_v38   ;;  %v2549_v14 = vpop.f32.mrb[157].mxu1 }
 0x311   : > { %v4316_v5 = vpop.eup %4315  ;;  %v2550_v62 = vpop.f32.mrb[158].mxu1 }
 0x312   : > { %v2836_v0 = vpop.f32.mrb[156].mxu0  ;;  %3156 = vperm.xlu0 %4002, %v4316_v5   ;;  %v2552_v43 = vpop.f32.mrb[159].mxu1 }
 0x313   : > { %v5831_v63 = vadd.f32 %v2836_v0, %v2547_v46  ;;  %v2838_v50 = vpop.f32.mrb[157].mxu0 }
 0x314   : > { %v2839_v23 = vpop.f32.mrb[158].mxu0 }
 0x315   : > { %4321 = vrcp.f32 %v5831_v63  ;;  %v5834_v45 = vadd.f32 %v2839_v23, %v2550_v62  ;;  %v2841_v54 = vpop.f32.mrb[159].mxu0 }
 0x317   : > { %v4318_v26 = vpop.eup %4317  ;;  %4323 = vrcp.f32 %v5834_v45  ;;  %v2555_v55 = vpop.f32.mrb[160].mxu1 }
 0x318   : > { %3161 = vperm.xlu1 %4003, %v4318_v26   ;;  %v2557_v52 = vpop.f32.mrb[161].mxu1 }
 0x319   : > { %v4320_v30 = vpop.eup %4319  ;;  %v2558_v47 = vpop.f32.mrb[162].mxu1 }
 0x31a   : > { %v2844_v28 = vpop.f32.mrb[160].mxu0  ;;  %3166 = vperm.xlu0 %4002, %v4320_v30   ;;  %v2560_v19 = vpop.f32.mrb[163].mxu1 }
 0x31b   : > { %v5837_v7 = vadd.f32 %v2844_v28, %v2555_v55  ;;  %v2846_v59 = vpop.f32.mrb[161].mxu0 }
 0x31c   : > { %v2847_v44 = vpop.f32.mrb[162].mxu0 }
 0x31d   : > { %4325 = vrcp.f32 %v5837_v7  ;;  %v5840_v20 = vadd.f32 %v2847_v44, %v2558_v47  ;;  %v2849_v18 = vpop.f32.mrb[163].mxu0 }
 0x31f   : > { %v4322_v41 = vpop.eup %4321  ;;  %4327 = vrcp.f32 %v5840_v20  ;;  %v2563_v49 = vpop.f32.mrb[164].mxu1 }
 0x320   : > { %3171 = vperm.xlu1 %4003, %v4322_v41   ;;  %v2565_v31 = vpop.f32.mrb[165].mxu1 }
 0x321   : > { %v4324_v57 = vpop.eup %4323  ;;  %v2566_v33 = vpop.f32.mrb[166].mxu1 }
 0x322   : > { %v2852_v58 = vpop.f32.mrb[164].mxu0  ;;  %3176 = vperm.xlu0 %4002, %v4324_v57   ;;  %v2568_v51 = vpop.f32.mrb[167].mxu1 }
 0x323   : > { %v5843_v1 = vadd.f32 %v2852_v58, %v2563_v49  ;;  %v2854_v37 = vpop.f32.mrb[165].mxu0 }
 0x324   : > { %v2855_v61 = vpop.f32.mrb[166].mxu0 }
 0x325   : > { %4329 = vrcp.f32 %v5843_v1  ;;  %v5846_v35 = vadd.f32 %v2855_v61, %v2566_v33  ;;  %v2857_v53 = vpop.f32.mrb[167].mxu0 }
 0x327   : > { %v4326_v4 = vpop.eup %4325  ;;  %4331 = vrcp.f32 %v5846_v35  ;;  %v2571_v21 = vpop.f32.mrb[168].mxu1 }
 0x328   : > { %3181 = vperm.xlu1 %4003, %v4326_v4   ;;  %v2573_v29 = vpop.f32.mrb[169].mxu1 }
 0x329   : > { %v4328_v42 = vpop.eup %4327  ;;  %v2574_v36 = vpop.f32.mrb[170].mxu1 }
 0x32a   : > { %v2860_v9 = vpop.f32.mrb[168].mxu0  ;;  %3186 = vperm.xlu0 %4002, %v4328_v42   ;;  %v2576_v10 = vpop.f32.mrb[171].mxu1 }
 0x32b   : > { %v5849_v32 = vadd.f32 %v2860_v9, %v2571_v21  ;;  %v2862_v39 = vpop.f32.mrb[169].mxu0 }
 0x32c   : > { %v2863_v24 = vpop.f32.mrb[170].mxu0 }
 0x32d   : > { %4333 = vrcp.f32 %v5849_v32  ;;  %v5852_v17 = vadd.f32 %v2863_v24, %v2574_v36  ;;  %v2865_v2 = vpop.f32.mrb[171].mxu0 }
 0x32f   : > { %v4330_v12 = vpop.eup %4329  ;;  %4335 = vrcp.f32 %v5852_v17  ;;  %v2579_v15 = vpop.f32.mrb[172].mxu1 }
 0x330   : > { %3191 = vperm.xlu1 %4003, %v4330_v12   ;;  %v2581_v46 = vpop.f32.mrb[173].mxu1 }
 0x331   : > { %v4332_v38 = vpop.eup %4331  ;;  %v2582_v14 = vpop.f32.mrb[174].mxu1 }
 0x332   : > { %v2868_v5 = vpop.f32.mrb[172].mxu0  ;;  %3196 = vperm.xlu0 %4002, %v4332_v38   ;;  %v2584_v50 = vpop.f32.mrb[175].mxu1 }
 0x333   : > { %v5855_v0 = vadd.f32 %v2868_v5, %v2579_v15  ;;  %v2870_v62 = vpop.f32.mrb[173].mxu0 }
 0x334   : > { %v2871_v43 = vpop.f32.mrb[174].mxu0 }
 0x335   : > { %4337 = vrcp.f32 %v5855_v0  ;;  %v5858_v23 = vadd.f32 %v2871_v43, %v2582_v14  ;;  %v2873_v54 = vpop.f32.mrb[175].mxu0 }
 0x337   : > { %v4334_v26 = vpop.eup %4333  ;;  %4339 = vrcp.f32 %v5858_v23  ;;  %v2587_v55 = vpop.f32.mrb[176].mxu1 }
 0x338   : > { %3201 = vperm.xlu1 %4003, %v4334_v26   ;;  %v2589_v52 = vpop.f32.mrb[177].mxu1 }
 0x339   : > { %v4336_v30 = vpop.eup %4335  ;;  %v2590_v47 = vpop.f32.mrb[178].mxu1 }
 0x33a   : > { %v2876_v28 = vpop.f32.mrb[176].mxu0  ;;  %3206 = vperm.xlu0 %4002, %v4336_v30   ;;  %v2592_v44 = vpop.f32.mrb[179].mxu1 }
 0x33b   : > { %v5861_v59 = vadd.f32 %v2876_v28, %v2587_v55  ;;  %v2878_v19 = vpop.f32.mrb[177].mxu0 }
 0x33c   : > { %v2879_v18 = vpop.f32.mrb[178].mxu0 }
 0x33d   : > { %4341 = vrcp.f32 %v5861_v59  ;;  %v5864_v41 = vadd.f32 %v2879_v18, %v2590_v47  ;;  %v2881_v49 = vpop.f32.mrb[179].mxu0 }
 0x33f   : > { %v4338_v57 = vpop.eup %4337  ;;  %4343 = vrcp.f32 %v5864_v41  ;;  %v2595_v31 = vpop.f32.mrb[180].mxu1 }
 0x340   : > { %3211 = vperm.xlu1 %4003, %v4338_v57   ;;  %v2597_v33 = vpop.f32.mrb[181].mxu1 }
 0x341   : > { %v4340_v58 = vpop.eup %4339  ;;  %v2598_v51 = vpop.f32.mrb[182].mxu1 }
 0x342   : > { %v2884_v37 = vpop.f32.mrb[180].mxu0  ;;  %3216 = vperm.xlu0 %4002, %v4340_v58   ;;  %v2600_v4 = vpop.f32.mrb[183].mxu1 }
 0x343   : > { %v5867_v61 = vadd.f32 %v2884_v37, %v2595_v31  ;;  %v2886_v53 = vpop.f32.mrb[181].mxu0 }
 0x344   : > { %v2887_v21 = vpop.f32.mrb[182].mxu0 }
 0x345   : > { %4345 = vrcp.f32 %v5867_v61  ;;  %v5870_v42 = vadd.f32 %v2887_v21, %v2598_v51  ;;  %v2889_v29 = vpop.f32.mrb[183].mxu0 }
 0x347   : > { %v4342_v9 = vpop.eup %4341  ;;  %4347 = vrcp.f32 %v5870_v42  ;;  %v2603_v36 = vpop.f32.mrb[184].mxu1 }
 0x348   : > { %3221 = vperm.xlu1 %4003, %v4342_v9   ;;  %v2605_v10 = vpop.f32.mrb[185].mxu1 }
 0x349   : > { %v4344_v39 = vpop.eup %4343  ;;  %v2606_v2 = vpop.f32.mrb[186].mxu1 }
 0x34a   : > { %v2892_v24 = vpop.f32.mrb[184].mxu0  ;;  %3226 = vperm.xlu0 %4002, %v4344_v39   ;;  %v2608_v38 = vpop.f32.mrb[187].mxu1 }
 0x34b   : > { %v5873_v12 = vadd.f32 %v2892_v24, %v2603_v36  ;;  %v2894_v15 = vpop.f32.mrb[185].mxu0 }
 0x34c   : > { %v2895_v46 = vpop.f32.mrb[186].mxu0 }
 0x34d   : > { %4349 = vrcp.f32 %v5873_v12  ;;  %v5876_v5 = vadd.f32 %v2895_v46, %v2606_v2  ;;  %v2897_v14 = vpop.f32.mrb[187].mxu0 }
 0x34f   : > { %v4346_v62 = vpop.eup %4345  ;;  %4351 = vrcp.f32 %v5876_v5  ;;  %v2611_v50 = vpop.f32.mrb[188].mxu1 }
 0x350   : > { %3231 = vperm.xlu1 %4003, %v4346_v62   ;;  %v2613_v54 = vpop.f32.mrb[189].mxu1 }
 0x351   : > { %v4348_v43 = vpop.eup %4347  ;;  %v2614_v55 = vpop.f32.mrb[190].mxu1  ;;  %v3483_v54 = vld [vmem:[%s5898_s10] sm:$0xff] }
 0x352   : > { %v2900_v26 = vpop.f32.mrb[188].mxu0  ;;  %3236 = vperm.xlu0 %4002, %v4348_v43   ;;  %v2616_v28 = vpop.f32.mrb[191].mxu1 }
 0x353   : > { %v5879_v30 = vadd.f32 %v2900_v26, %v2611_v50  ;;  %v2902_v52 = vpop.f32.mrb[189].mxu0  ;;  %v3484_v28 = vld [vmem:[%s5898_s10 + $0x8] sm:$0xff] }
 0x354   : > { %v2903_v47 = vpop.f32.mrb[190].mxu0 }
 0x355   : > { %4353 = vrcp.f32 %v5879_v30  ;;  %v5882_v19 = vadd.f32 %v2903_v47, %v2614_v55  ;;  %v2905_v44 = vpop.f32.mrb[191].mxu0 }
 0x357   : > { %v4350_v18 = vpop.eup %4349  ;;  %4355 = vrcp.f32 %v5882_v19  ;;  %v2619_v49 = vpop.f32.mrb[192].mxu1 }
 0x358   : > { %3241 = vperm.xlu1 %4003, %v4350_v18   ;;  %v2621_v31 = vpop.f32.mrb[193].mxu1 }
 0x359   : > { %v4352_v57 = vpop.eup %4351  ;;  %v2622_v33 = vpop.f32.mrb[194].mxu1 }
 0x35a   : > { %v2908_v58 = vpop.f32.mrb[192].mxu0  ;;  %3246 = vperm.xlu0 %4002, %v4352_v57   ;;  %v2624_v53 = vpop.f32.mrb[195].mxu1 }
 0x35b   : > { %v5885_v37 = vadd.f32 %v2908_v58, %v2619_v49  ;;  %v2910_v51 = vpop.f32.mrb[193].mxu0 }
 0x35c   : > { %v2911_v4 = vpop.f32.mrb[194].mxu0 }
 0x35d   : > { %4357 = vrcp.f32 %v5885_v37  ;;  %v5888_v21 = vadd.f32 %v2911_v4, %v2622_v33  ;;  %v2913_v29 = vpop.f32.mrb[195].mxu0 }
 0x35f   : > { %v4354_v9 = vpop.eup %4353  ;;  %4359 = vrcp.f32 %v5888_v21  ;;  %v2627_v36 = vpop.f32.mrb[196].mxu1 }
 0x360   : > { %3251 = vperm.xlu1 %4003, %v4354_v9   ;;  %v2629_v10 = vpop.f32.mrb[197].mxu1 }
 0x361   : > { %v4356_v39 = vpop.eup %4355  ;;  %v2630_v2 = vpop.f32.mrb[198].mxu1 }
 0x362   : > { %v2916_v24 = vpop.f32.mrb[196].mxu0  ;;  %3256 = vperm.xlu0 %4002, %v4356_v39   ;;  %v2632_v46 = vpop.f32.mrb[199].mxu1 }
 0x363   : > { %v5892_v15 = vadd.f32 %v2916_v24, %v2627_v36  ;;  %v2918_v38 = vpop.f32.mrb[197].mxu0  ;;  %v3485_v36 = vld [vmem:[%s5898_s10 + $0x10] sm:$0xff] }
 0x364   : > { %v2919_v14 = vpop.f32.mrb[198].mxu0 }
 0x365   : > { %4361 = vrcp.f32 %v5892_v15  ;;  %v5901_v62 = vadd.f32 %v2919_v14, %v2630_v2  ;;  %v2921_v50 = vpop.f32.mrb[199].mxu0 }
 0x366   : > { %v3486_v50 = vld [vmem:[%s5898_s10 + $0x18] sm:$0xff] }
 0x367   : > { %v4358_v43 = vpop.eup %4357  ;;  %4363 = vrcp.f32 %v5901_v62  ;;  %v3102_v26 = vpop.permute.xlu0 %3101 }
 0x368   : > { %v3419_v55 = vmul.f32 %v3102_v26, %v5772_v60  ;;  %3261 = vperm.xlu1 %4003, %v4358_v43   ;;  %v2635_v44 = vpop.f32.mrb[200].mxu1 }
 0x369   : > { %v4360_v52 = vpop.eup %4359  ;;  %v3107_v47 = vpop.permute.xlu1 %3106 }
 0x36a   : > { %v3547_v18 = vadd.f32 %v3483_v54, %v3419_v55  ;;  %v3420_v49 = vmul.f32 %v3107_v47, %v5776_v6  ;;  %3266 = vperm.xlu0 %4002, %v4360_v52   ;;  %v2637_v57 = vpop.f32.mrb[201].mxu1  ;;  %v2924_v31 = vpop.f32.mrb[200].mxu0 }
 0x36b   : > { %v2638_v58 = vpop.f32.mrb[202].mxu1  ;;  %v5914_v33 = vadd.f32 %v2924_v31, %v2635_v44  ;;  %v2926_v51 = vpop.f32.mrb[201].mxu0 }
 0x36c   : > { %3612 = vst.msk [vmem:[%s5910_s17] sm:$0xff] %vm3611_vm2, %v3547_v18  ;;  %v3548_v60 = vadd.f32 %v3484_v28, %v3420_v49  ;;  %v2640_v53 = vpop.f32.mrb[203].mxu1  ;;  %v2927_v4 = vpop.f32.mrb[202].mxu0  ;;  %v3487_v49 = vld [vmem:[%s5898_s10 + $0x20] sm:$0xff] }
 0x36d   : > { %4365 = vrcp.f32 %v5914_v33  ;;  %v5919_v6 = vadd.f32 %v2927_v4, %v2638_v58  ;;  %v2929_v29 = vpop.f32.mrb[203].mxu0 }
 0x36e   : > { %3613 = vst.msk [vmem:[%s5910_s17 + $0x8] sm:$0xff] %vm3611_vm2, %v3548_v60  ;;  %v3488_v29 = vld [vmem:[%s5898_s10 + $0x28] sm:$0xff] }
 0x36f   : > { %v4362_v9 = vpop.eup %4361  ;;  %v3112_v39 = vpop.permute.xlu1 %3111  ;;  %4367 = vrcp.f32 %v5919_v6 }
 0x370   : > { %v3421_v10 = vmul.f32 %v3112_v39, %v5786_v11  ;;  %3271 = vperm.xlu1 %4003, %v4362_v9   ;;  %v2643_v2 = vpop.f32.mrb[204].mxu1 }
 0x371   : > { %v4364_v24 = vpop.eup %4363  ;;  %v2645_v46 = vpop.f32.mrb[205].mxu1 }
 0x372   : > { %v3549_v38 = vadd.f32 %v3485_v36, %v3421_v10  ;;  %3276 = vperm.xlu0 %4002, %v4364_v24   ;;  %v2932_v14 = vpop.f32.mrb[204].mxu0  ;;  %v2646_v52 = vpop.f32.mrb[206].mxu1 }
 0x373   : > { %v3117_v43 = vpop.permute.xlu1 %3116  ;;  %v5927_v54 = vadd.f32 %v2932_v14, %v2643_v2  ;;  %v2934_v26 = vpop.f32.mrb[205].mxu0 }
 0x374   : > { %3614 = vst.msk [vmem:[%s5910_s17 + $0x10] sm:$0xff] %vm3611_vm2, %v3549_v38  ;;  %v3422_v55 = vmul.f32 %v3117_v43, %v5790_v16  ;;  %v2935_v11 = vpop.f32.mrb[206].mxu0  ;;  %v2648_v28 = vpop.f32.mrb[207].mxu1 }
 0x375   : > { %4369 = vrcp.f32 %v5927_v54  ;;  %v5931_v44 = vadd.f32 %v2935_v11, %v2646_v52  ;;  %v2937_v18 = vpop.f32.mrb[207].mxu0 }
 0x376   : > { %v3550_v47 = vadd.f32 %v3486_v50, %v3422_v55  ;;  %v3489_v50 = vld [vmem:[%s5898_s10 + $0x30] sm:$0xff]  ;;  %v3490_v18 = vld [vmem:[%s5898_s10 + $0x38] sm:$0xff] }
 0x377   : > { %v3122_v57 = vpop.permute.xlu1 %3121  ;;  %v4366_v31 = vpop.eup %4365  ;;  %4371 = vrcp.f32 %v5931_v44 }
 0x378   : > { %3615 = vst.msk [vmem:[%s5910_s17 + $0x18] sm:$0xff] %vm3611_vm2, %v3550_v47  ;;  %v3423_v16 = vmul.f32 %v3122_v57, %v5800_v8  ;;  %3281 = vperm.xlu1 %4003, %v4366_v31   ;;  %v2651_v58 = vpop.f32.mrb[208].mxu1 }
 0x379   : > { %v4368_v60 = vpop.eup %4367  ;;  %v2653_v53 = vpop.f32.mrb[209].mxu1 }
 0x37a   : > { %v3551_v51 = vadd.f32 %v3487_v49, %v3423_v16  ;;  %v2940_v4 = vpop.f32.mrb[208].mxu0  ;;  %3286 = vperm.xlu0 %4002, %v4368_v60   ;;  %v2654_v24 = vpop.f32.mrb[210].mxu1 }
 0x37b   : > { %v3127_v9 = vpop.permute.xlu1 %3126  ;;  %v5941_v36 = vadd.f32 %v2940_v4, %v2651_v58  ;;  %v2942_v39 = vpop.f32.mrb[209].mxu0 }
 0x37c   : > { %3616 = vst.msk [vmem:[%s5910_s17 + $0x20] sm:$0xff] %vm3611_vm2, %v3551_v51  ;;  %v3424_v10 = vmul.f32 %v3127_v9, %v5804_v34  ;;  %v2943_v8 = vpop.f32.mrb[210].mxu0  ;;  %v2656_v2 = vpop.f32.mrb[211].mxu1 }
 0x37d   : > { %4373 = vrcp.f32 %v5941_v36  ;;  %v5945_v46 = vadd.f32 %v2943_v8, %v2654_v24  ;;  %v2945_v14 = vpop.f32.mrb[211].mxu0 }
 0x37e   : > { %v3552_v38 = vadd.f32 %v3488_v29, %v3424_v10  ;;  %v3491_v29 = vld [vmem:[%s5898_s10 + $0x40] sm:$0xff] }
 0x37f   : > { %v4370_v26 = vpop.eup %4369  ;;  %4375 = vrcp.f32 %v5945_v46 }
 0x380   : > { %v3132_v43 = vpop.permute.xlu1 %3131  ;;  %3617 = vst.msk [vmem:[%s5910_s17 + $0x28] sm:$0xff] %vm3611_vm2, %v3552_v38  ;;  %3291 = vperm.xlu1 %4003, %v4370_v26  }
 0x381   : > { %v3425_v34 = vmul.f32 %v3132_v43, %v5807_v48  ;;  %v2659_v55 = vpop.f32.mrb[212].mxu1  ;;  %v4372_v52 = vpop.eup %4371 }
 0x382   : > { %v2661_v28 = vpop.f32.mrb[213].mxu1  ;;  %3296 = vperm.xlu0 %4002, %v4372_v52  }
 0x383   : > { %v3553_v11 = vadd.f32 %v3489_v50, %v3425_v34  ;;  %v2948_v47 = vpop.f32.mrb[212].mxu0  ;;  %v2662_v48 = vpop.f32.mrb[214].mxu1 }
 0x384   : > { %v3137_v49 = vpop.permute.xlu1 %3136  ;;  %v5955_v57 = vadd.f32 %v2948_v47, %v2659_v55  ;;  %v2950_v31 = vpop.f32.mrb[213].mxu0  ;;  %v3493_v47 = vld [vmem:[%s5898_s10 + $0x50] sm:$0xff] }
 0x385   : > { %3618 = vst.msk [vmem:[%s5910_s17 + $0x30] sm:$0xff] %vm3611_vm2, %v3553_v11  ;;  %v3426_v16 = vmul.f32 %v3137_v49, %v5810_v27  ;;  %v2951_v58 = vpop.f32.mrb[214].mxu0  ;;  %v2664_v60 = vpop.f32.mrb[215].mxu1  ;;  %v3492_v27 = vld [vmem:[%s5898_s10 + $0x48] sm:$0xff] }
 0x386   : > { %4377 = vrcp.f32 %v5955_v57  ;;  %v5959_v53 = vadd.f32 %v2951_v58, %v2662_v48  ;;  %v2953_v4 = vpop.f32.mrb[215].mxu0 }
 0x387   : > { %v3554_v51 = vadd.f32 %v3490_v18, %v3426_v16  ;;  %v4374_v39 = vpop.eup %4373  ;;  %v3494_v16 = vld [vmem:[%s5898_s10 + $0x58] sm:$0xff] }
 0x388   : > { %v3142_v9 = vpop.permute.xlu1 %3141  ;;  %4379 = vrcp.f32 %v5959_v53  ;;  %3301 = vperm.xlu1 %4003, %v4374_v39  }
 0x389   : > { %3619 = vst.msk [vmem:[%s5910_s17 + $0x38] sm:$0xff] %vm3611_vm2, %v3554_v51  ;;  %v3427_v10 = vmul.f32 %v3142_v9, %v5813_v22  ;;  %v3147_v24 = vpop.permute.xlu0 %3146  ;;  %v2667_v8 = vpop.f32.mrb[216].mxu1 }
 0x38a   : > { %v4376_v2 = vpop.eup %4375  ;;  %v3428_v14 = vmul.f32 %v3147_v24, %v5816_v56  ;;  %v2669_v50 = vpop.f32.mrb[217].mxu1 }
 0x38b   : > { %v3555_v38 = vadd.f32 %v3491_v29, %v3427_v10  ;;  %v2956_v43 = vpop.f32.mrb[216].mxu0  ;;  %3306 = vperm.xlu0 %4002, %v4376_v2   ;;  %v2670_v26 = vpop.f32.mrb[218].mxu1 }
 0x38c   : > { %v3556_v34 = vadd.f32 %v3492_v27, %v3428_v14  ;;  %v5970_v55 = vadd.f32 %v2956_v43, %v2667_v8  ;;  %v2958_v22 = vpop.f32.mrb[217].mxu0  ;;  %v2672_v52 = vpop.f32.mrb[219].mxu1 }
 0x38d   : > { %3620 = vst.msk [vmem:[%s5910_s17 + $0x40] sm:$0xff] %vm3611_vm2, %v3555_v38  ;;  %v2959_v11 = vpop.f32.mrb[218].mxu0  ;;  %v3495_v38 = vld [vmem:[%s5898_s10 + $0x60] sm:$0xff] }
 0x38e   : > { %3621 = vst.msk [vmem:[%s5910_s17 + $0x48] sm:$0xff] %vm3611_vm2, %v3556_v34  ;;  %4381 = vrcp.f32 %v5970_v55  ;;  %v5975_v28 = vadd.f32 %v2959_v11, %v2670_v26  ;;  %v2961_v56 = vpop.f32.mrb[219].mxu0  ;;  %v3496_v26 = vld [vmem:[%s5898_s10 + $0x68] sm:$0xff] }
 0x38f   : > { %v3152_v18 = vpop.permute.xlu1 %3151 }
 0x390   : > { %v4378_v49 = vpop.eup %4377  ;;  %4383 = vrcp.f32 %v5975_v28  ;;  %v3429_v31 = vmul.f32 %v3152_v18, %v5819_v3 }
 0x391   : > { %3311 = vperm.xlu1 %4003, %v4378_v49   ;;  %v3157_v48 = vpop.permute.xlu0 %3156  ;;  %v2675_v58 = vpop.f32.mrb[220].mxu1 }
 0x392   : > { %v4380_v60 = vpop.eup %4379  ;;  %v3557_v51 = vadd.f32 %v3493_v47, %v3429_v31  ;;  %v3430_v4 = vmul.f32 %v3157_v48, %v5822_v40  ;;  %v2677_v29 = vpop.f32.mrb[221].mxu1 }
 0x393   : > { %v2964_v9 = vpop.f32.mrb[220].mxu0  ;;  %3316 = vperm.xlu0 %4002, %v4380_v60   ;;  %v2678_v39 = vpop.f32.mrb[222].mxu1 }
 0x394   : > { %3622 = vst.msk [vmem:[%s5910_s17 + $0x50] sm:$0xff] %vm3611_vm2, %v3557_v51  ;;  %v3558_v10 = vadd.f32 %v3494_v16, %v3430_v4  ;;  %v5984_v27 = vadd.f32 %v2964_v9, %v2675_v58  ;;  %v2966_v3 = vpop.f32.mrb[221].mxu0  ;;  %v2680_v24 = vpop.f32.mrb[223].mxu1  ;;  %v3497_v51 = vld [vmem:[%s5898_s10 + $0x70] sm:$0xff] }
 0x395   : > { %v2967_v8 = vpop.f32.mrb[222].mxu0 }
 0x396   : > { %3623 = vst.msk [vmem:[%s5910_s17 + $0x58] sm:$0xff] %vm3611_vm2, %v3558_v10  ;;  %4385 = vrcp.f32 %v5984_v27  ;;  %v5989_v2 = vadd.f32 %v2967_v8, %v2678_v39  ;;  %v2969_v40 = vpop.f32.mrb[223].mxu0  ;;  %v3498_v39 = vld [vmem:[%s5898_s10 + $0x78] sm:$0xff] }
 0x397   : > { %v3162_v14 = vpop.permute.xlu1 %3161 }
 0x398   : > { %v4382_v50 = vpop.eup %4381  ;;  %4387 = vrcp.f32 %v5989_v2  ;;  %v3431_v43 = vmul.f32 %v3162_v14, %v5825_v13 }
 0x399   : > { %3321 = vperm.xlu1 %4003, %v4382_v50   ;;  %v3167_v34 = vpop.permute.xlu0 %3166  ;;  %v2683_v22 = vpop.f32.mrb[224].mxu1 }
 0x39a   : > { %v4384_v52 = vpop.eup %4383  ;;  %v3559_v11 = vadd.f32 %v3495_v38, %v3431_v43  ;;  %v3432_v56 = vmul.f32 %v3167_v34, %v5828_v25  ;;  %v2685_v47 = vpop.f32.mrb[225].mxu1 }
 0x39b   : > { %v2972_v18 = vpop.f32.mrb[224].mxu0  ;;  %3326 = vperm.xlu0 %4002, %v4384_v52   ;;  %v2686_v49 = vpop.f32.mrb[226].mxu1 }
 0x39c   : > { %3624 = vst.msk [vmem:[%s5910_s17 + $0x60] sm:$0xff] %vm3611_vm2, %v3559_v11  ;;  %v3560_v31 = vadd.f32 %v3496_v26, %v3432_v56  ;;  %v5998_v16 = vadd.f32 %v2972_v18, %v2683_v22  ;;  %v2974_v13 = vpop.f32.mrb[225].mxu0  ;;  %v2688_v48 = vpop.f32.mrb[227].mxu1  ;;  %v3499_v11 = vld [vmem:[%s5898_s10 + $0x80] sm:$0xff] }
 0x39d   : > { %v2975_v58 = vpop.f32.mrb[226].mxu0 }
 0x39e   : > { %3625 = vst.msk [vmem:[%s5910_s17 + $0x68] sm:$0xff] %vm3611_vm2, %v3560_v31  ;;  %4389 = vrcp.f32 %v5998_v16  ;;  %v6003_v60 = vadd.f32 %v2975_v58, %v2686_v49  ;;  %v2977_v25 = vpop.f32.mrb[227].mxu0  ;;  %v3500_v49 = vld [vmem:[%s5898_s10 + $0x88] sm:$0xff] }
 0x39f   : > { %v3172_v4 = vpop.permute.xlu1 %3171 }
 0x3a0   : > { %v4386_v29 = vpop.eup %4385  ;;  %4391 = vrcp.f32 %v6003_v60  ;;  %v3433_v9 = vmul.f32 %v3172_v4, %v5831_v63 }
 0x3a1   : > { %3331 = vperm.xlu1 %4003, %v4386_v29   ;;  %v3177_v10 = vpop.permute.xlu0 %3176  ;;  %v2691_v3 = vpop.f32.mrb[228].mxu1 }
 0x3a2   : > { %v4388_v24 = vpop.eup %4387  ;;  %v3561_v8 = vadd.f32 %v3497_v51, %v3433_v9  ;;  %v3434_v40 = vmul.f32 %v3177_v10, %v5834_v45  ;;  %v2693_v38 = vpop.f32.mrb[229].mxu1 }
 0x3a3   : > { %v2980_v14 = vpop.f32.mrb[228].mxu0  ;;  %3336 = vperm.xlu0 %4002, %v4388_v24   ;;  %v2694_v50 = vpop.f32.mrb[230].mxu1 }
 0x3a4   : > { %3626 = vst.msk [vmem:[%s5910_s17 + $0x70] sm:$0xff] %vm3611_vm2, %v3561_v8  ;;  %v3562_v43 = vadd.f32 %v3498_v39, %v3434_v40  ;;  %v6012_v26 = vadd.f32 %v2980_v14, %v2691_v3  ;;  %v2982_v63 = vpop.f32.mrb[229].mxu0  ;;  %v2696_v34 = vpop.f32.mrb[231].mxu1  ;;  %v3501_v8 = vld [vmem:[%s5898_s10 + $0x90] sm:$0xff] }
 0x3a5   : > { %v2983_v22 = vpop.f32.mrb[230].mxu0 }
 0x3a6   : > { %3627 = vst.msk [vmem:[%s5910_s17 + $0x78] sm:$0xff] %vm3611_vm2, %v3562_v43  ;;  %4393 = vrcp.f32 %v6012_v26  ;;  %v6017_v52 = vadd.f32 %v2983_v22, %v2694_v50  ;;  %v2985_v45 = vpop.f32.mrb[231].mxu0  ;;  %v3502_v50 = vld [vmem:[%s5898_s10 + $0x98] sm:$0xff] }
 0x3a7   : > { %v3182_v56 = vpop.permute.xlu1 %3181 }
 0x3a8   : > { %v4390_v47 = vpop.eup %4389  ;;  %4395 = vrcp.f32 %v6017_v52  ;;  %v3435_v18 = vmul.f32 %v3182_v56, %v5837_v7 }
 0x3a9   : > { %3341 = vperm.xlu1 %4003, %v4390_v47   ;;  %v3187_v31 = vpop.permute.xlu0 %3186  ;;  %v2699_v13 = vpop.f32.mrb[232].mxu1 }
 0x3aa   : > { %v4392_v48 = vpop.eup %4391  ;;  %v3563_v58 = vadd.f32 %v3499_v11, %v3435_v18  ;;  %v3436_v25 = vmul.f32 %v3187_v31, %v5840_v20  ;;  %v2701_v51 = vpop.f32.mrb[233].mxu1 }
 0x3ab   : > { %v2988_v4 = vpop.f32.mrb[232].mxu0  ;;  %3346 = vperm.xlu0 %4002, %v4392_v48   ;;  %v2702_v29 = vpop.f32.mrb[234].mxu1 }
 0x3ac   : > { %3628 = vst.msk [vmem:[%s5910_s17 + $0x80] sm:$0xff] %vm3611_vm2, %v3563_v58  ;;  %v3564_v9 = vadd.f32 %v3500_v49, %v3436_v25  ;;  %v6026_v39 = vadd.f32 %v2988_v4, %v2699_v13  ;;  %v2990_v7 = vpop.f32.mrb[233].mxu0  ;;  %v2704_v10 = vpop.f32.mrb[235].mxu1  ;;  %v3503_v58 = vld [vmem:[%s5898_s10 + $0xa0] sm:$0xff] }
 0x3ad   : > { %v2991_v3 = vpop.f32.mrb[234].mxu0 }
 0x3ae   : > { %3629 = vst.msk [vmem:[%s5910_s17 + $0x88] sm:$0xff] %vm3611_vm2, %v3564_v9  ;;  %4397 = vrcp.f32 %v6026_v39  ;;  %v6031_v24 = vadd.f32 %v2991_v3, %v2702_v29  ;;  %v2993_v20 = vpop.f32.mrb[235].mxu0  ;;  %v3504_v29 = vld [vmem:[%s5898_s10 + $0xa8] sm:$0xff] }
 0x3af   : > { %v3192_v40 = vpop.permute.xlu1 %3191 }
 0x3b0   : > { %v4394_v38 = vpop.eup %4393  ;;  %4399 = vrcp.f32 %v6031_v24  ;;  %v3437_v14 = vmul.f32 %v3192_v40, %v5843_v1 }
 0x3b1   : > { %3351 = vperm.xlu1 %4003, %v4394_v38   ;;  %v3197_v43 = vpop.permute.xlu0 %3196  ;;  %v2707_v63 = vpop.f32.mrb[236].mxu1 }
 0x3b2   : > { %v4396_v34 = vpop.eup %4395  ;;  %v3565_v22 = vadd.f32 %v3501_v8, %v3437_v14  ;;  %v3438_v45 = vmul.f32 %v3197_v43, %v5846_v35  ;;  %v2709_v11 = vpop.f32.mrb[237].mxu1 }
 0x3b3   : > { %v2996_v56 = vpop.f32.mrb[236].mxu0  ;;  %3356 = vperm.xlu0 %4002, %v4396_v34   ;;  %v2710_v47 = vpop.f32.mrb[238].mxu1 }
 0x3b4   : > { %3630 = vst.msk [vmem:[%s5910_s17 + $0x90] sm:$0xff] %vm3611_vm2, %v3565_v22  ;;  %v3566_v18 = vadd.f32 %v3502_v50, %v3438_v45  ;;  %v6040_v49 = vadd.f32 %v2996_v56, %v2707_v63  ;;  %v2998_v1 = vpop.f32.mrb[237].mxu0  ;;  %v2712_v31 = vpop.f32.mrb[239].mxu1  ;;  %v3505_v22 = vld [vmem:[%s5898_s10 + $0xb0] sm:$0xff] }
 0x3b5   : > { %v2999_v13 = vpop.f32.mrb[238].mxu0 }
 0x3b6   : > { %3631 = vst.msk [vmem:[%s5910_s17 + $0x98] sm:$0xff] %vm3611_vm2, %v3566_v18  ;;  %4401 = vrcp.f32 %v6040_v49  ;;  %v6045_v48 = vadd.f32 %v2999_v13, %v2710_v47  ;;  %v3001_v35 = vpop.f32.mrb[239].mxu0  ;;  %v3506_v47 = vld [vmem:[%s5898_s10 + $0xb8] sm:$0xff] }
 0x3b7   : > { %v3202_v25 = vpop.permute.xlu1 %3201 }
 0x3b8   : > { %v4398_v51 = vpop.eup %4397  ;;  %4403 = vrcp.f32 %v6045_v48  ;;  %v3439_v4 = vmul.f32 %v3202_v25, %v5849_v32 }
 0x3b9   : > { %3361 = vperm.xlu1 %4003, %v4398_v51   ;;  %v3207_v9 = vpop.permute.xlu0 %3206  ;;  %v2715_v7 = vpop.f32.mrb[240].mxu1 }
 0x3ba   : > { %v4400_v10 = vpop.eup %4399  ;;  %v3567_v3 = vadd.f32 %v3503_v58, %v3439_v4  ;;  %v3440_v20 = vmul.f32 %v3207_v9, %v5852_v17  ;;  %v2717_v8 = vpop.f32.mrb[241].mxu1 }
 0x3bb   : > { %v3004_v40 = vpop.f32.mrb[240].mxu0  ;;  %3366 = vperm.xlu0 %4002, %v4400_v10   ;;  %v2718_v38 = vpop.f32.mrb[242].mxu1 }
 0x3bc   : > { %3632 = vst.msk [vmem:[%s5910_s17 + $0xa0] sm:$0xff] %vm3611_vm2, %v3567_v3  ;;  %v3568_v14 = vadd.f32 %v3504_v29, %v3440_v20  ;;  %v6054_v50 = vadd.f32 %v3004_v40, %v2715_v7  ;;  %v3006_v32 = vpop.f32.mrb[241].mxu0  ;;  %v2720_v43 = vpop.f32.mrb[243].mxu1  ;;  %v3507_v3 = vld [vmem:[%s5898_s10 + $0xc0] sm:$0xff] }
 0x3bd   : > { %v3007_v63 = vpop.f32.mrb[242].mxu0 }
 0x3be   : > { %3633 = vst.msk [vmem:[%s5910_s17 + $0xa8] sm:$0xff] %vm3611_vm2, %v3568_v14  ;;  %4405 = vrcp.f32 %v6054_v50  ;;  %v6059_v34 = vadd.f32 %v3007_v63, %v2718_v38  ;;  %v3009_v17 = vpop.f32.mrb[243].mxu0  ;;  %v3508_v38 = vld [vmem:[%s5898_s10 + $0xc8] sm:$0xff] }
 0x3bf   : > { %v3212_v45 = vpop.permute.xlu1 %3211 }
 0x3c0   : > { %v4402_v11 = vpop.eup %4401  ;;  %4407 = vrcp.f32 %v6059_v34  ;;  %v3441_v56 = vmul.f32 %v3212_v45, %v5855_v0 }
 0x3c1   : > { %3371 = vperm.xlu1 %4003, %v4402_v11   ;;  %v3217_v18 = vpop.permute.xlu0 %3216  ;;  %v2723_v1 = vpop.f32.mrb[244].mxu1 }
 0x3c2   : > { %v4404_v31 = vpop.eup %4403  ;;  %v3569_v13 = vadd.f32 %v3505_v22, %v3441_v56  ;;  %v3442_v35 = vmul.f32 %v3217_v18, %v5858_v23  ;;  %v2725_v58 = vpop.f32.mrb[245].mxu1 }
 0x3c3   : > { %v3012_v25 = vpop.f32.mrb[244].mxu0  ;;  %3376 = vperm.xlu0 %4002, %v4404_v31   ;;  %v2726_v51 = vpop.f32.mrb[246].mxu1 }
 0x3c4   : > { %3634 = vst.msk [vmem:[%s5910_s17 + $0xb0] sm:$0xff] %vm3611_vm2, %v3569_v13  ;;  %v3570_v4 = vadd.f32 %v3506_v47, %v3442_v35  ;;  %v6068_v29 = vadd.f32 %v3012_v25, %v2723_v1  ;;  %v3014_v0 = vpop.f32.mrb[245].mxu0  ;;  %v2728_v9 = vpop.f32.mrb[247].mxu1  ;;  %v3509_v13 = vld [vmem:[%s5898_s10 + $0xd0] sm:$0xff] }
 0x3c5   : > { %v3015_v7 = vpop.f32.mrb[246].mxu0 }
 0x3c6   : > { %3635 = vst.msk [vmem:[%s5910_s17 + $0xb8] sm:$0xff] %vm3611_vm2, %v3570_v4  ;;  %4409 = vrcp.f32 %v6068_v29  ;;  %v6073_v10 = vadd.f32 %v3015_v7, %v2726_v51  ;;  %v3017_v23 = vpop.f32.mrb[247].mxu0  ;;  %v3510_v51 = vld [vmem:[%s5898_s10 + $0xd8] sm:$0xff] }
 0x3c7   : > { %v3222_v20 = vpop.permute.xlu1 %3221 }
 0x3c8   : > { %v4406_v8 = vpop.eup %4405  ;;  %4411 = vrcp.f32 %v6073_v10  ;;  %v3443_v40 = vmul.f32 %v3222_v20, %v5861_v59 }
 0x3c9   : > { %3381 = vperm.xlu1 %4003, %v4406_v8   ;;  %v3227_v14 = vpop.permute.xlu0 %3226  ;;  %v2731_v32 = vpop.f32.mrb[248].mxu1 }
 0x3ca   : > { %v4408_v43 = vpop.eup %4407  ;;  %v3571_v63 = vadd.f32 %v3507_v3, %v3443_v40  ;;  %v3444_v17 = vmul.f32 %v3227_v14, %v5864_v41  ;;  %v2733_v22 = vpop.f32.mrb[249].mxu1 }
 0x3cb   : > { %v3020_v45 = vpop.f32.mrb[248].mxu0  ;;  %3386 = vperm.xlu0 %4002, %v4408_v43   ;;  %v2734_v11 = vpop.f32.mrb[250].mxu1 }
 0x3cc   : > { %3636 = vst.msk [vmem:[%s5910_s17 + $0xc0] sm:$0xff] %vm3611_vm2, %v3571_v63  ;;  %v3572_v56 = vadd.f32 %v3508_v38, %v3444_v17  ;;  %v6082_v47 = vadd.f32 %v3020_v45, %v2731_v32  ;;  %v3022_v59 = vpop.f32.mrb[249].mxu0  ;;  %v2736_v18 = vpop.f32.mrb[251].mxu1  ;;  %v3511_v63 = vld [vmem:[%s5898_s10 + $0xe0] sm:$0xff] }
 0x3cd   : > { %v3023_v1 = vpop.f32.mrb[250].mxu0 }
 0x3ce   : > { %3637 = vst.msk [vmem:[%s5910_s17 + $0xc8] sm:$0xff] %vm3611_vm2, %v3572_v56  ;;  %4413 = vrcp.f32 %v6082_v47  ;;  %v6087_v31 = vadd.f32 %v3023_v1, %v2734_v11  ;;  %v3025_v41 = vpop.f32.mrb[251].mxu0  ;;  %v3512_v11 = vld [vmem:[%s5898_s10 + $0xe8] sm:$0xff] }
 0x3cf   : > { %v3232_v35 = vpop.permute.xlu1 %3231 }
 0x3d0   : > { %v4410_v58 = vpop.eup %4409  ;;  %4415 = vrcp.f32 %v6087_v31  ;;  %v3445_v25 = vmul.f32 %v3232_v35, %v5867_v61 }
 0x3d1   : > { %3391 = vperm.xlu1 %4003, %v4410_v58   ;;  %v3237_v4 = vpop.permute.xlu0 %3236 }
 0x3d2   : > { %v2739_v0 = vpop.f32.mrb[252].mxu1  ;;  %v4412_v9 = vpop.eup %4411  ;;  %v3573_v7 = vadd.f32 %v3509_v13, %v3445_v25  ;;  %v3446_v23 = vmul.f32 %v3237_v4, %v5870_v42  ;;  %v3513_v13 = vld [vmem:[%s5898_s10 + $0xf0] sm:$0xff]  ;;  %v3514_v25 = vld [vmem:[%s5898_s10 + $0xf8] sm:$0xff] }
 0x3d3   : > { %v2741_v3 = vpop.f32.mrb[253].mxu1  ;;  %3396 = vperm.xlu0 %4002, %v4412_v9  }
 0x3d4   : > { %v3028_v20 = vpop.f32.mrb[252].mxu0  ;;  %v2742_v8 = vpop.f32.mrb[254].mxu1  ;;  %3638 = vst.msk [vmem:[%s5910_s17 + $0xd0] sm:$0xff] %vm3611_vm2, %v3573_v7  ;;  %v3574_v40 = vadd.f32 %v3510_v51, %v3446_v23  ;;  %v3515_v7 = vld [vmem:[%s5898_s10 + $0x100] sm:$0xff]  ;;  %v3516_v3 = vld [vmem:[%s5898_s10 + $0x108] sm:$0xff] }
 0x3d5   : > { %v6096_v38 = vadd.f32 %v3028_v20, %v2739_v0  ;;  %v3030_v61 = vpop.f32.mrb[253].mxu0  ;;  %v2744_v14 = vpop.f32.mrb[255].mxu1 }
 0x3d6   : > { %v3031_v32 = vpop.f32.mrb[254].mxu0  ;;  %3639 = vst.msk [vmem:[%s5910_s17 + $0xd8] sm:$0xff] %vm3611_vm2, %v3574_v40  ;;  %v3517_v61 = vld [vmem:[%s5898_s10 + $0x110] sm:$0xff] }
 0x3d7   : > { %4417 = vrcp.f32 %v6096_v38  ;;  %v6101_v43 = vadd.f32 %v3031_v32, %v2742_v8  ;;  %v3033_v42 = vpop.f32.mrb[255].mxu0  ;;  %v3242_v17 = vpop.permute.xlu1 %3241 }
 0x3d8   : > { %v4414_v22 = vpop.eup %4413  ;;  %v3447_v45 = vmul.f32 %v3242_v17, %v5873_v12  ;;  %v3518_v42 = vld [vmem:[%s5898_s10 + $0x118] sm:$0xff] }
 0x3d9   : > { %4419 = vrcp.f32 %v6101_v43  ;;  %3401 = vperm.xlu1 %4003, %v4414_v22   ;;  %v3247_v56 = vpop.permute.xlu0 %3246  ;;  %v3519_v22 = vld [vmem:[%s5898_s10 + $0x120] sm:$0xff] }
 0x3da   : > { %v4416_v59 = vpop.eup %4415  ;;  %v3575_v18 = vadd.f32 %v3511_v63, %v3447_v45  ;;  %v3448_v1 = vmul.f32 %v3247_v56, %v5876_v5  ;;  %v3520_v56 = vld [vmem:[%s5898_s10 + $0x128] sm:$0xff] }
 0x3db   : > { %3406 = vperm.xlu0 %4002, %v4416_v59  }
 0x3dc   : > { %3640 = vst.msk [vmem:[%s5910_s17 + $0xe0] sm:$0xff] %vm3611_vm2, %v3575_v18  ;;  %v3576_v41 = vadd.f32 %v3512_v11, %v3448_v1  ;;  %v3521_v1 = vld [vmem:[%s5898_s10 + $0x130] sm:$0xff] }
 0x3de   : > { %3641 = vst.msk [vmem:[%s5910_s17 + $0xe8] sm:$0xff] %vm3611_vm2, %v3576_v41 }
 0x3df   : > { %v3252_v35 = vpop.permute.xlu1 %3251 }
 0x3e0   : > { %v3449_v58 = vmul.f32 %v3252_v35, %v5879_v30  ;;  %v3522_v35 = vld [vmem:[%s5898_s10 + $0x138] sm:$0xff] }
 0x3e1   : > { %v4418_v12 = vpop.eup %4417  ;;  %v3257_v51 = vpop.permute.xlu0 %3256 }
 0x3e2   : > { %3411 = vperm.xlu1 %4003, %v4418_v12   ;;  %v3577_v4 = vadd.f32 %v3513_v13, %v3449_v58  ;;  %v3450_v0 = vmul.f32 %v3257_v51, %v5882_v19 }
 0x3e3   : > { %v4420_v5 = vpop.eup %4419 }
 0x3e4   : > { %3416 = vperm.xlu0 %4002, %v4420_v5   ;;  %3642 = vst.msk [vmem:[%s5910_s17 + $0xf0] sm:$0xff] %vm3611_vm2, %v3577_v4  ;;  %v3578_v9 = vadd.f32 %v3514_v25, %v3450_v0  ;;  %v3523_v25 = vld [vmem:[%s5898_s10 + $0x140] sm:$0xff]  ;;  %v3524_v4 = vld [vmem:[%s5898_s10 + $0x148] sm:$0xff] }
 0x3e6   : > { %3643 = vst.msk [vmem:[%s5910_s17 + $0xf8] sm:$0xff] %vm3611_vm2, %v3578_v9 }
 0x3e7   : > { %v3262_v23 = vpop.permute.xlu1 %3261 }
 0x3e8   : > { %v3451_v30 = vmul.f32 %v3262_v23, %v5885_v37 }
 0x3e9   : > { %v3267_v20 = vpop.permute.xlu0 %3266 }
 0x3ea   : > { %v3579_v8 = vadd.f32 %v3515_v7, %v3451_v30  ;;  %v3452_v40 = vmul.f32 %v3267_v20, %v5888_v21  ;;  %v3525_v7 = vld [vmem:[%s5898_s10 + $0x150] sm:$0xff] }
 0x3ec   : > { %3644 = vst.msk [vmem:[%s5910_s17 + $0x100] sm:$0xff] %vm3611_vm2, %v3579_v8  ;;  %v3580_v19 = vadd.f32 %v3516_v3, %v3452_v40  ;;  %v3526_v3 = vld [vmem:[%s5898_s10 + $0x158] sm:$0xff]  ;;  %v3527_v40 = vld [vmem:[%s5898_s10 + $0x160] sm:$0xff] }
 0x3ee   : > { %3645 = vst.msk [vmem:[%s5910_s17 + $0x108] sm:$0xff] %vm3611_vm2, %v3580_v19 }
 0x3ef   : > { %v3272_v14 = vpop.permute.xlu1 %3271 }
 0x3f0   : > { %v3453_v32 = vmul.f32 %v3272_v14, %v5892_v15  ;;  %v3528_v14 = vld [vmem:[%s5898_s10 + $0x168] sm:$0xff] }
 0x3f1   : > { %v3277_v37 = vpop.permute.xlu0 %3276 }
 0x3f2   : > { %v3581_v63 = vadd.f32 %v3517_v61, %v3453_v32  ;;  %v3454_v17 = vmul.f32 %v3277_v37, %v5901_v62  ;;  %v3529_v37 = vld [vmem:[%s5898_s10 + $0x170] sm:$0xff] }
 0x3f4   : > { %3646 = vst.msk [vmem:[%s5910_s17 + $0x110] sm:$0xff] %vm3611_vm2, %v3581_v63  ;;  %v3582_v21 = vadd.f32 %v3518_v42, %v3454_v17 }
 0x3f6   : > { %3647 = vst.msk [vmem:[%s5910_s17 + $0x118] sm:$0xff] %vm3611_vm2, %v3582_v21  ;;  %v3530_v21 = vld [vmem:[%s5898_s10 + $0x178] sm:$0xff] }
 0x3f7   : > { %v3282_v45 = vpop.permute.xlu1 %3281 }
 0x3f8   : > { %v3455_v11 = vmul.f32 %v3282_v45, %v5914_v33 }
 0x3f9   : > { %v3287_v15 = vpop.permute.xlu0 %3286 }
 0x3fa   : > { %v3583_v59 = vadd.f32 %v3519_v22, %v3455_v11  ;;  %v3456_v18 = vmul.f32 %v3287_v15, %v5919_v6  ;;  %v3531_v11 = vld [vmem:[%s5898_s10 + $0x180] sm:$0xff] }
 0x3fc   : > { %3648 = vst.msk [vmem:[%s5910_s17 + $0x120] sm:$0xff] %vm3611_vm2, %v3583_v59  ;;  %v3584_v62 = vadd.f32 %v3520_v56, %v3456_v18  ;;  %v3532_v59 = vld [vmem:[%s5898_s10 + $0x188] sm:$0xff] }
 0x3fe   : > { %3649 = vst.msk [vmem:[%s5910_s17 + $0x128] sm:$0xff] %vm3611_vm2, %v3584_v62 }
 0x3ff   : > { %v3292_v41 = vpop.permute.xlu1 %3291 }
 0x400   : > { %v3457_v13 = vmul.f32 %v3292_v41, %v5927_v54 }
 0x401   : > { %v3297_v33 = vpop.permute.xlu0 %3296 }
 0x402   : > { %v3585_v12 = vadd.f32 %v3521_v1, %v3457_v13  ;;  %v3458_v58 = vmul.f32 %v3297_v33, %v5931_v44  ;;  %v3533_v1 = vld [vmem:[%s5898_s10 + $0x190] sm:$0xff] }
 0x404   : > { %3650 = vst.msk [vmem:[%s5910_s17 + $0x130] sm:$0xff] %vm3611_vm2, %v3585_v12  ;;  %v3586_v6 = vadd.f32 %v3522_v35, %v3458_v58  ;;  %v3534_v35 = vld [vmem:[%s5898_s10 + $0x198] sm:$0xff]  ;;  %v3535_v58 = vld [vmem:[%s5898_s10 + $0x1a0] sm:$0xff] }
 0x406   : > { %3651 = vst.msk [vmem:[%s5910_s17 + $0x138] sm:$0xff] %vm3611_vm2, %v3586_v6 }
 0x407   : > { %v3302_v51 = vpop.permute.xlu1 %3301 }
 0x408   : > { %v3459_v5 = vmul.f32 %v3302_v51, %v5941_v36  ;;  %v3536_v51 = vld [vmem:[%s5898_s10 + $0x1a8] sm:$0xff] }
 0x40a   : > { %v3307_v54 = vpop.permute.xlu0 %3306  ;;  %v3587_v0 = vadd.f32 %v3523_v25, %v3459_v5 }
 0x40b   : > { %v3460_v9 = vmul.f32 %v3307_v54, %v5945_v46  ;;  %v3537_v54 = vld [vmem:[%s5898_s10 + $0x1b0] sm:$0xff] }
 0x40c   : > { %3652 = vst.msk [vmem:[%s5910_s17 + $0x140] sm:$0xff] %vm3611_vm2, %v3587_v0 }
 0x40d   : > { %v3588_v44 = vadd.f32 %v3524_v4, %v3460_v9 }
 0x40f   : > { %3653 = vst.msk [vmem:[%s5910_s17 + $0x148] sm:$0xff] %vm3611_vm2, %v3588_v44  ;;  %v3538_v44 = vld [vmem:[%s5898_s10 + $0x1b8] sm:$0xff] }
 0x410   : > { %v3312_v23 = vpop.permute.xlu1 %3311 }
 0x411   : > { %v3461_v30 = vmul.f32 %v3312_v23, %v5955_v57 }
 0x412   : > { %v3317_v36 = vpop.permute.xlu0 %3316 }
 0x413   : > { %v3589_v20 = vadd.f32 %v3525_v7, %v3461_v30  ;;  %v3462_v8 = vmul.f32 %v3317_v36, %v5959_v53  ;;  %v3539_v30 = vld [vmem:[%s5898_s10 + $0x1c0] sm:$0xff] }
 0x415   : > { %3654 = vst.msk [vmem:[%s5910_s17 + $0x150] sm:$0xff] %vm3611_vm2, %v3589_v20  ;;  %v3590_v46 = vadd.f32 %v3526_v3, %v3462_v8  ;;  %v3540_v20 = vld [vmem:[%s5898_s10 + $0x1c8] sm:$0xff] }
 0x417   : > { %3655 = vst.msk [vmem:[%s5910_s17 + $0x158] sm:$0xff] %vm3611_vm2, %v3590_v46 }
 0x418   : > { %v3322_v19 = vpop.permute.xlu1 %3321 }
 0x419   : > { %v3463_v61 = vmul.f32 %v3322_v19, %v5970_v55 }
 0x41a   : > { %v3327_v57 = vpop.permute.xlu0 %3326 }
 0x41b   : > { %v3591_v32 = vadd.f32 %v3527_v40, %v3463_v61  ;;  %v3464_v42 = vmul.f32 %v3327_v57, %v5975_v28  ;;  %v3541_v40 = vld [vmem:[%s5898_s10 + $0x1d0] sm:$0xff] }
 0x41d   : > { %3656 = vst.msk [vmem:[%s5910_s17 + $0x160] sm:$0xff] %vm3611_vm2, %v3591_v32  ;;  %v3592_v53 = vadd.f32 %v3528_v14, %v3464_v42  ;;  %v3542_v14 = vld [vmem:[%s5898_s10 + $0x1d8] sm:$0xff]  ;;  %v3543_v42 = vld [vmem:[%s5898_s10 + $0x1e0] sm:$0xff] }
 0x41f   : > { %3657 = vst.msk [vmem:[%s5910_s17 + $0x168] sm:$0xff] %vm3611_vm2, %v3592_v53 }
 0x420   : > { %v3332_v63 = vpop.permute.xlu1 %3331 }
 0x421   : > { %v3465_v17 = vmul.f32 %v3332_v63, %v5984_v27 }
 0x422   : > { %v3337_v55 = vpop.permute.xlu0 %3336 }
 0x423   : > { %v3593_v22 = vadd.f32 %v3529_v37, %v3465_v17  ;;  %v3466_v45 = vmul.f32 %v3337_v55, %v5989_v2  ;;  %v3545_v55 = vld [vmem:[%s5898_s10 + $0x1f0] sm:$0xff] }
 0x425   : > { %3658 = vst.msk [vmem:[%s5910_s17 + $0x170] sm:$0xff] %vm3611_vm2, %v3593_v22  ;;  %v3594_v28 = vadd.f32 %v3530_v21, %v3466_v45 }
 0x427   : > { %3659 = vst.msk [vmem:[%s5910_s17 + $0x178] sm:$0xff] %vm3611_vm2, %v3594_v28 }
 0x428   : > { %v3342_v56 = vpop.permute.xlu1 %3341 }
 0x429   : > { %v3467_v15 = vmul.f32 %v3342_v56, %v5998_v16 }
 0x42a   : > { %v3347_v27 = vpop.permute.xlu0 %3346 }
 0x42b   : > { %v3595_v18 = vadd.f32 %v3531_v11, %v3467_v15  ;;  %v3468_v62 = vmul.f32 %v3347_v27, %v6003_v60 }
 0x42d   : > { %3660 = vst.msk [vmem:[%s5910_s17 + $0x180] sm:$0xff] %vm3611_vm2, %v3595_v18  ;;  %v3596_v2 = vadd.f32 %v3532_v59, %v3468_v62 }
 0x42f   : > { %3661 = vst.msk [vmem:[%s5910_s17 + $0x188] sm:$0xff] %vm3611_vm2, %v3596_v2 }
 0x430   : > { %v3352_v41 = vpop.permute.xlu1 %3351 }
 0x431   : > { %v3469_v13 = vmul.f32 %v3352_v41, %v6012_v26 }
 0x432   : > { %v3357_v16 = vpop.permute.xlu0 %3356 }
 0x433   : > { %v3597_v33 = vadd.f32 %v3533_v1, %v3469_v13  ;;  %v3470_v12 = vmul.f32 %v3357_v16, %v6017_v52 }
 0x435   : > { %3662 = vst.msk [vmem:[%s5910_s17 + $0x190] sm:$0xff] %vm3611_vm2, %v3597_v33  ;;  %v3598_v60 = vadd.f32 %v3534_v35, %v3470_v12 }
 0x437   : > { %3663 = vst.msk [vmem:[%s5910_s17 + $0x198] sm:$0xff] %vm3611_vm2, %v3598_v60 }
 0x438   : > { %v3362_v6 = vpop.permute.xlu1 %3361 }
 0x439   : > { %v3471_v25 = vmul.f32 %v3362_v6, %v6026_v39 }
 0x43a   : > { %v3367_v26 = vpop.permute.xlu0 %3366 }
 0x43b   : > { %v3599_v5 = vadd.f32 %v3535_v58, %v3471_v25  ;;  %v3472_v4 = vmul.f32 %v3367_v26, %v6031_v24 }
 0x43d   : > { %3664 = vst.msk [vmem:[%s5910_s17 + $0x1a0] sm:$0xff] %vm3611_vm2, %v3599_v5  ;;  %v3600_v52 = vadd.f32 %v3536_v51, %v3472_v4 }
 0x43f   : > { %3665 = vst.msk [vmem:[%s5910_s17 + $0x1a8] sm:$0xff] %vm3611_vm2, %v3600_v52 }
 0x440   : > { %v3372_v0 = vpop.permute.xlu1 %3371 }
 0x441   : > { %v3473_v9 = vmul.f32 %v3372_v0, %v6040_v49 }
 0x442   : > { %v3377_v39 = vpop.permute.xlu0 %3376 }
 0x443   : > { %v3601_v7 = vadd.f32 %v3537_v54, %v3473_v9  ;;  %v3474_v23 = vmul.f32 %v3377_v39, %v6045_v48 }
 0x445   : > { %3666 = vst.msk [vmem:[%s5910_s17 + $0x1b0] sm:$0xff] %vm3611_vm2, %v3601_v7  ;;  %v3602_v24 = vadd.f32 %v3538_v44, %v3474_v23 }
 0x447   : > { %3667 = vst.msk [vmem:[%s5910_s17 + $0x1b8] sm:$0xff] %vm3611_vm2, %v3602_v24 }
 0x448   : > { %v3382_v3 = vpop.permute.xlu1 %3381 }
 0x449   : > { %v3475_v36 = vmul.f32 %v3382_v3, %v6054_v50 }
 0x44a   : > { %v3387_v49 = vpop.permute.xlu0 %3386 }
 0x44b   : > { %v3603_v8 = vadd.f32 %v3539_v30, %v3475_v36  ;;  %v3476_v46 = vmul.f32 %v3387_v49, %v6059_v34 }
 0x44d   : > { %3668 = vst.msk [vmem:[%s5910_s17 + $0x1c0] sm:$0xff] %vm3611_vm2, %v3603_v8  ;;  %v3604_v48 = vadd.f32 %v3540_v20, %v3476_v46 }
 0x44f   : > { %3669 = vst.msk [vmem:[%s5910_s17 + $0x1c8] sm:$0xff] %vm3611_vm2, %v3604_v48 }
 0x450   : > { %v3392_v19 = vpop.permute.xlu1 %3391 }
 0x451   : > { %v3477_v61 = vmul.f32 %v3392_v19, %v6068_v29  ;;  %v3544_v29 = vld [vmem:[%s5898_s10 + $0x1e8] sm:$0xff] }
 0x452   : > { %v3397_v50 = vpop.permute.xlu0 %3396 }
 0x453   : > { %v3605_v57 = vadd.f32 %v3541_v40, %v3477_v61  ;;  %v3478_v32 = vmul.f32 %v3397_v50, %v6073_v10 }
 0x455   : > { %3670 = vst.msk [vmem:[%s5910_s17 + $0x1d0] sm:$0xff] %vm3611_vm2, %v3605_v57  ;;  %v3606_v34 = vadd.f32 %v3542_v14, %v3478_v32 }
 0x457   : > { %3671 = vst.msk [vmem:[%s5910_s17 + $0x1d8] sm:$0xff] %vm3611_vm2, %v3606_v34 }
 0x458   : > { %v3402_v53 = vpop.permute.xlu1 %3401 }
 0x459   : > { %v3479_v37 = vmul.f32 %v3402_v53, %v6082_v47  ;;  %v3546_v47 = vld [vmem:[%s5898_s10 + $0x1f8] sm:$0xff] }
 0x45a   : > { %v3407_v63 = vpop.permute.xlu0 %3406 }
 0x45b   : > { %v3607_v17 = vadd.f32 %v3543_v42, %v3479_v37  ;;  %v3480_v21 = vmul.f32 %v3407_v63, %v6087_v31 }
 0x45d   : > { %3672 = vst.msk [vmem:[%s5910_s17 + $0x1e0] sm:$0xff] %vm3611_vm2, %v3607_v17  ;;  %v3608_v10 = vadd.f32 %v3544_v29, %v3480_v21 }
 0x45f   : > { %3673 = vst.msk [vmem:[%s5910_s17 + $0x1e8] sm:$0xff] %vm3611_vm2, %v3608_v10 }
 0x461   : > { %v3412_v22 = vpop.permute.xlu1 %3411 }
 0x462   : > { %v3481_v45 = vmul.f32 %v3412_v22, %v6096_v38 }
 0x463   : > { %v3417_v28 = vpop.permute.xlu0 %3416 }
 0x464   : > { %v3609_v11 = vadd.f32 %v3545_v55, %v3481_v45  ;;  %v3482_v56 = vmul.f32 %v3417_v28, %v6101_v43 }
 0x466   : > { %3674 = vst.msk [vmem:[%s5910_s17 + $0x1f0] sm:$0xff] %vm3611_vm2, %v3609_v11  ;;  %v3610_v31 = vadd.f32 %v3546_v47, %v3482_v56 }
 0x468   : > { %3675 = vst.msk [vmem:[%s5910_s17 + $0x1f8] sm:$0xff] %vm3611_vm2, %v3610_v31 }
 0x469   : > { %4434 = shalt.err (!%p4431_p3)
}
 0x46a   : > { %s4435_s4 = scalar_lea.hbm %s6249_s26, 8192  ;;  %s4439_s7 = scalar_lea.hbm %s6303_s3, 16384 }
 0x46b   : > { %p4436_p4 = scmp.ne.s32.totalorder %s6249_s26, %s4435_s4  ;;  %p4440_p9 = scmp.lt.u32.totalorder %s6249_s26, %s6303_s3 }
 0x46c   : > { %p4441_p10 = scmp.lt.u32.totalorder %s4439_s7, %s4435_s4  ;;  %p4443_p12 = scmp.lt.u32.totalorder %s4435_s4, %s6249_s26 }
 0x46d   : > { %p4437_p7 = pnand %p4436_p4, %p4549_p5 }
 0x46e   : > { %p4442_p11 = por %p4441_p10, %p4440_p9 }
 0x46f   : > { %p4438_p8 = pneg %p4437_p7 }
 0x470   : > { %p4444_p13 = por %p4443_p12, %p4442_p11 }
 0x472   : > { %p4445_p0 = pnand %p4444_p13, %p4438_p8 }
 0x474   : > { %4448 = shalt.err (!%p4445_p0)
}
 0x475   : > { %s4489_s10 = smov 128   ;;  %s4490_s11 = smov 8  }
 0x476   : > { %3958 = dma.vmem_to_hbm [thread:$0]  (%p4549_p5), %s6251_s20, 8192, %s6249_s26, %s6259_s16, %s4489_s10, %s4489_s10, %s4490_s11  }
 0x477 PF: > { %p3964_p1 = scmp.ge.s32.totalorder %s4483_s15, 2  ;;  %s3705_s17 = sand.u32 1, %s4471_s12  }
 0x478   : > { %s3706_s19 = scalar_lea.sflag [#allocation3], %s3705_s17 }
 0x479   : > { %p3961_p2 = pnand %p3964_p1, %p4553_p6 }
 0x47b   : > { %4466 = dma.done.wait (!%p3961_p2), %s3706_s19, 8192  }
 0x47c   : > { %4468 = vsyncadd (!%p3961_p2), %s3706_s19, 4294959104  ;;  %p13_p3 = scmp.ge.s32.totalorder %s4536_s18, 4   ;;  %s6828_s12 = smov %s4475_s13 }
 0x47d   : > { %s6829_s13 = smov %s4479_s14  ;;  %s6830_s14 = smov %s4547_s21 }
 0x47e   : > { %s6831_s15 = smov %s4536_s18  ;;  %15 = sbr.rel (!%p13_p3) target bundleno = 3 (0x3), region = 73 }
 0x485   :  { %3711 = vsyncpa [#allocation3], 1 }
 0x486   :  { %3713 = vsyncpa [#allocation3 + $0x1], 1 }

</bundles_post_ra>
